<compile_context>
chip_gen: v7x
topology: tpu7x:2x2x1
jax: 0.10.0
libtpu: 0.0.40
codegen_flags: <defaults>
</compile_context>

<pallas_src>
import jax
import jax.numpy as jnp
from jax.experimental import pallas as pl
from jax.experimental.pallas import tpu as pltpu

CPAD = 128                 # lane-dense channel padding for all Pallas outputs
_BN_EPS = 1e-5
_KH = ((3, 1), (2, 0))     # ConvT k=4,s=2,p=1: kernel taps used by output parity 0 / 1
_LAYER_CFG = [(1, 0), (2, 1), (2, 1), (2, 1), (2, 1)]   # (stride, pad), reference only


def _pick_tile(m, cap=1024):
    """Largest row tile <= cap dividing m (multiple of 8 unless it is the full dim)."""
    t = min(m, cap)
    while m % t:
        t //= 2
    if t < m and t % 8:
        t = m                      # single full block is always layout-legal
    return t


# ---------------- Pallas kernels ----------------

def _mm_stats_kernel(a_ref, b_ref, o_ref, s_ref, q_ref):
    """Tile matmul fused with BatchNorm sum / sum-of-squares accumulation."""
    @pl.when((pl.program_id(0) == 0) & (pl.program_id(1) == 0))
    def _():
        s_ref[...] = jnp.zeros_like(s_ref)
        q_ref[...] = jnp.zeros_like(q_ref)
    out = jnp.dot(a_ref[0], b_ref[0], preferred_element_type=jnp.float32)
    o_ref[0] = out
    s_ref[...] += jnp.sum(out, axis=0, keepdims=True)
    q_ref[...] += jnp.sum(out * out, axis=0, keepdims=True)


def pallas_conv_mm_stats(a, b):
    """a: (Pa, M, K) with Pa in {1, P} (Pa==1 broadcasts over parities);
       b: (P, K, CPAD).  Returns conv (P, M, CPAD), sum (1, CPAD), sumsq (1, CPAD)."""
    pa, m, k = a.shape
    p, _, n = b.shape
    tm = _pick_tile(m)
    a_map = (lambda pi, i: (0, i, 0)) if pa == 1 else (lambda pi, i: (pi, i, 0))
    return pl.pallas_call(
        _mm_stats_kernel,
        out_shape=(jax.ShapeDtypeStruct((p, m, n), jnp.float32),
                   jax.ShapeDtypeStruct((1, n), jnp.float32),
                   jax.ShapeDtypeStruct((1, n), jnp.float32)),
        grid=(p, m // tm),
        in_specs=[pl.BlockSpec((1, tm, k), a_map),
                  pl.BlockSpec((1, k, n), lambda pi, i: (pi, 0, 0))],
        out_specs=(pl.BlockSpec((1, tm, n), lambda pi, i: (pi, i, 0)),
                   pl.BlockSpec((1, n), lambda pi, i: (0, 0)),
                   pl.BlockSpec((1, n), lambda pi, i: (0, 0))),
        compiler_params=pltpu.CompilerParams(
            dimension_semantics=("arbitrary", "arbitrary")),   # stats accumulate over grid
    )(a, b)


def _mm_tanh_kernel(a_ref, b_ref, o_ref):
    out = jnp.dot(a_ref[0], b_ref[0], preferred_element_type=jnp.float32)
    o_ref[0] = jnp.tanh(out)


def pallas_conv_mm_tanh(a, b):
    pa, m, k = a.shape
    p, _, n = b.shape
    tm = _pick_tile(m)
    a_map = (lambda pi, i: (0, i, 0)) if pa == 1 else (lambda pi, i: (pi, i, 0))
    return pl.pallas_call(
        _mm_tanh_kernel,
        out_shape=jax.ShapeDtypeStruct((p, m, n), jnp.float32),
        grid=(p, m // tm),
        in_specs=[pl.BlockSpec((1, tm, k), a_map),
                  pl.BlockSpec((1, k, n), lambda pi, i: (pi, 0, 0))],
        out_specs=pl.BlockSpec((1, tm, n), lambda pi, i: (pi, i, 0)),
        compiler_params=pltpu.CompilerParams(
            dimension_semantics=("parallel", "parallel")),      # megacore-shardable (v7x)
    )(a, b)


def _bn_lrelu_kernel(x_ref, scale_ref, shift_ref, o_ref):
    y = x_ref[...] * scale_ref[...] + shift_ref[...]
    o_ref[...] = jnp.where(y > 0, y, 0.2 * y)   # LeakyReLU(0.2)


def pallas_bn_lrelu(x, scale, shift):
    m, c = x.shape
    tm = _pick_tile(m)
    return pl.pallas_call(
        _bn_lrelu_kernel,
        out_shape=jax.ShapeDtypeStruct((m, c), jnp.float32),
        grid=(m // tm,),
        in_specs=[pl.BlockSpec((tm, c), lambda i: (i, 0)),
                  pl.BlockSpec((1, c), lambda i: (0, 0)),
                  pl.BlockSpec((1, c), lambda i: (0, 0))],
        out_specs=pl.BlockSpec((tm, c), lambda i: (i, 0)),
        compiler_params=pltpu.CompilerParams(dimension_semantics=("parallel",)),
    )(x, scale, shift)


# ---------------- XLA glue: sub-pixel patches / weights, interleave ----------------

def _subpixel_patches(x):
    """x: (N, H, W, Cin) -> (4, N*H*W, 4*Cin).  Parity p = ph*2 + pw, tap order a*2+b.
    out[n, 2i+ph, 2j+pw] = sum_{a,b} pad(x)[n, i+ph+a, j+pw+b] * w[kh=_KH[ph][a], kw=_KH[pw][b]]."""
    n, h, w, c = x.shape
    xp = jnp.pad(x, ((0, 0), (1, 1), (1, 1), (0, 0)))
    pats = []
    for ph in range(2):
        for pw in range(2):
            taps = [xp[:, ph + a:ph + a + h, pw + b:pw + b + w, :]
                    for a in range(2) for b in range(2)]
            pats.append(jnp.concatenate(taps, axis=-1).reshape(n * h * w, 4 * c))
    return jnp.stack(pats, axis=0)


def _subpixel_weights(w):
    """PyTorch ConvTranspose2d weight (Cin, Cout, 4, 4) -> (4, 4*Cin, CPAD)."""
    cin, cout, _, _ = w.shape
    mats = []
    for ph in range(2):
        for pw in range(2):
            taps = [w[:, :, _KH[ph][a], _KH[pw][b]]            # (Cin, Cout)
                    for a in range(2) for b in range(2)]
            wm = jnp.concatenate(taps, axis=0)                 # (4*Cin, Cout)
            mats.append(jnp.pad(wm, ((0, 0), (0, CPAD - cout))))
    return jnp.stack(mats, axis=0)


def _interleave(res, n, h, w):
    """res: (4, N*H*W, C), parity p = ph*2+pw -> (N, 2H, 2W, C)."""
    c = res.shape[-1]
    r = res.reshape(2, 2, n, h, w, c)
    r = jnp.transpose(r, (2, 3, 0, 4, 1, 5))
    return r.reshape(n, 2 * h, 2 * w, c)


def _layer0_weights(w):
    """(Cin, Cout, 4, 4) -> (16, Cin, CPAD); output position p = kh*4 + kw."""
    cin, cout, _, _ = w.shape
    mats = [jnp.pad(w[:, :, kh, kw], ((0, 0), (0, CPAD - cout)))
            for kh in range(4) for kw in range(4)]
    return jnp.stack(mats, axis=0)


def _deparity_l0(res, n):
    """res: (16, N, C), p = kh*4+kw -> (N, 4, 4, C)."""
    c = res.shape[-1]
    return jnp.transpose(res.reshape(4, 4, n, c), (2, 0, 1, 3))


def _bn_lrelu_from_stats(conv, s, q, count, gamma, beta):
    """conv: (P, M, CPAD) raw conv output; training-mode BN (biased var) + LeakyReLU."""
    p, m, c = conv.shape
    mean = s / count
    var = jnp.maximum(q / count - mean * mean, 0.0)
    rstd = jax.lax.rsqrt(var + _BN_EPS)
    gpad = jnp.pad(gamma, (0, c - gamma.shape[0]))[None, :]
    bpad = jnp.pad(beta, (0, c - beta.shape[0]))[None, :]
    scale = gpad * rstd                        # zero for padded channels (gamma pad = 0)
    shift = bpad - mean * scale
    out = pallas_bn_lrelu(conv.reshape(p * m, c), scale, shift)
    return out.reshape(p, m, c)


# ---------------- Full generator forward ----------------

def conv_generator_transpose(z, params):
    """z: (N, latent) -> (N, num_channels, 64, 64), matching the PyTorch module."""
    n, _ = z.shape
    weights, gammas, betas = params["weights"], params["gammas"], params["betas"]
    nlayers = len(weights)

    # Layer 0: ConvTranspose2d(latent, fm*8, 4, stride=1, pad=0) + BN + LeakyReLU.
    # 1x1 input -> the 16 output positions are z @ w[:, :, kh, kw] ("16 parities").
    a0 = z.reshape(1, n, -1)                               # broadcast over the 16 taps
    conv, s, q = pallas_conv_mm_stats(a0, _layer0_weights(weights[0]))
    act = _bn_lrelu_from_stats(conv, s, q, float(16 * n), gammas[0], betas[0])
    x = _deparity_l0(act, n)[..., :weights[0].shape[1]]    # (N, 4, 4, fm*8)

    # Layers 1..n-2: ConvTranspose2d(k=4, stride=2, pad=1) + BN + LeakyReLU.
    for li in range(1, nlayers - 1):
        w = weights[li]
        nb, h, wd, _ = x.shape
        pats = _subpixel_patches(x)                        # (4, N*H*W, 4*cin)
        conv, s, q = pallas_conv_mm_stats(pats, _subpixel_weights(w))
        act = _bn_lrelu_from_stats(conv, s, q, float(4 * nb * h * wd),
                                   gammas[li], betas[li])
        x = _interleave(act, nb, h, wd)[..., :w.shape[1]]  # (N, 2H, 2W, cout)

    # Last layer: ConvTranspose2d(k=4, stride=2, pad=1) with Tanh fused in the kernel.
    w = weights[-1]
    nb, h, wd, _ = x.shape
    res = pallas_conv_mm_tanh(_subpixel_patches(x), _subpixel_weights(w))
    y = _interleave(res, nb, h, wd)[..., :w.shape[1]]      # (N, 64, 64, num_channels)
    return jnp.transpose(y, (0, 3, 1, 2))                  # NHWC -> NCHW (PyTorch)


def init_params(key, latent_sz, fm, num_channels):
    chs = [latent_sz, fm * 8, fm * 4, fm * 2, fm, num_channels]
    keys = jax.random.split(key, 5)
    weights, gammas, betas = [], [], []
    for i in range(5):
        cin, cout = chs[i], chs[i + 1]
        # PyTorch ConvTranspose2d weight layout (Cin, Cout, 4, 4), DCGAN-style init.
        weights.append(0.02 * jax.random.normal(keys[i], (cin, cout, 4, 4), jnp.float32))
        if i < 4:
            gammas.append(jnp.ones((cout,), jnp.float32))   # BatchNorm2d default affine
            betas.append(jnp.zeros((cout,), jnp.float32))
    return {"weights": weights, "gammas": gammas, "betas": betas}


# ---------------- pure-JAX reference (sanity check) ----------------

def _ref_conv_transpose(x_nhwc, w, stride, pad):
    k = w.shape[2]
    wf = jnp.transpose(jnp.flip(w, (2, 3)), (2, 3, 0, 1))   # HWIO, spatially flipped
    p = k - 1 - pad
    return jax.lax.conv_general_dilated(
        x_nhwc, wf, window_strides=(1, 1), padding=[(p, p), (p, p)],
        lhs_dilation=(stride, stride),
        dimension_numbers=("NHWC", "HWIO", "NHWC"))


def _ref_forward(z, params):
    n = z.shape[0]
    x = z.reshape(n, 1, 1, -1)
    nlayers = len(params["weights"])
    for li, (w, (stride, pad)) in enumerate(zip(params["weights"], _LAYER_CFG)):
        x = _ref_conv_transpose(x, w, stride, pad)
        if li < nlayers - 1:
            mean = jnp.mean(x, axis=(0, 1, 2), keepdims=True)
            var = jnp.mean((x - mean) ** 2, axis=(0, 1, 2), keepdims=True)
            y = (x - mean) / jnp.sqrt(var + _BN_EPS)
            y = y * params["gammas"][li] + params["betas"][li]
            x = jnp.where(y > 0, y, 0.2 * y)
        else:
            x = jnp.tanh(x)
    return jnp.transpose(x, (0, 3, 1, 2))


if __name__ == "__main__":
    latent_sz, feature_map_sz, num_channels, batch = 32, 8, 3, 2
    key = jax.random.PRNGKey(0)
    kz, kp = jax.random.split(key)
    params = init_params(kp, latent_sz, feature_map_sz, num_channels)
    z = jax.random.normal(kz, (batch, latent_sz), jnp.float32)

    fwd = jax.jit(conv_generator_transpose)
    out = jax.block_until_ready(fwd(z, params))
    assert out.shape == (batch, num_channels, 64, 64), out.shape

    ref = jax.block_until_ready(_ref_forward(z, params))
    max_err = float(jnp.max(jnp.abs(out - ref)))
    assert max_err < 2e-3, f"mismatch vs reference: {max_err}"

    print("KERNEL_OK")
</pallas_src>

<mosaic_0001>
module attributes {stable_mosaic.version = 11 : i64} {
  func.func @_mm_stats_kernel(%arg0: i32, %arg1: i32, %arg2: memref<1x2x32xf32, #tpu.memory_space<vmem>>, %arg3: memref<1x32x128xf32, #tpu.memory_space<vmem>>, %arg4: memref<1x2x128xf32, #tpu.memory_space<vmem>>, %arg5: memref<1x128xf32, #tpu.memory_space<vmem>>, %arg6: memref<1x128xf32, #tpu.memory_space<vmem>>) attributes {dimension_semantics = [#tpu.dimension_semantics<arbitrary>, #tpu.dimension_semantics<arbitrary>], iteration_bounds = array<i64: 16, 1>, scalar_prefetch = 0 : i64, scratch_operands = 0 : i64, tpu.core_type = #tpu.core_type<tc>, window_params = [{transform_indices = @transform_0, window_bounds = array<i64: 1, 2, 32>}, {transform_indices = @transform_1, window_bounds = array<i64: 1, 32, 128>}, {transform_indices = @transform_2, window_bounds = array<i64: 1, 2, 128>}, {pipeline_mode = #tpu.pipeline_mode<synchronous>, transform_indices = @transform_3, window_bounds = array<i64: 1, 128>}, {pipeline_mode = #tpu.pipeline_mode<synchronous>, transform_indices = @transform_4, window_bounds = array<i64: 1, 128>}]} {
    %c0_i32 = arith.constant 0 : i32
    %0 = arith.cmpi eq, %arg0, %c0_i32 : i32
    %c0_i32_0 = arith.constant 0 : i32
    %1 = arith.cmpi eq, %arg1, %c0_i32_0 : i32
    %2 = arith.andi %0, %1 : i1
    %3 = arith.extui %2 : i1 to i32
    %c0_i32_1 = arith.constant 0 : i32
    %4 = arith.cmpi ne, %3, %c0_i32_1 : i32
    scf.if %4 {
      %cst_20 = arith.constant 0.000000e+00 : f32
      %24 = vector.broadcast %cst_20 : f32 to vector<1x128xf32>
      %c0_21 = arith.constant 0 : index
      %c0_22 = arith.constant 0 : index
      %25 = vector.load %arg5[%c0_21, %c0_22] : memref<1x128xf32, #tpu.memory_space<vmem>>, vector<1x128xf32>
      tpu.vector_store %arg5[%c0_21, %c0_22], %24 {strides = array<i32>} : memref<1x128xf32, #tpu.memory_space<vmem>>, vector<1x128xf32>,
      %cst_23 = arith.constant 0.000000e+00 : f32
      %26 = vector.broadcast %cst_23 : f32 to vector<1x128xf32>
      %c0_24 = arith.constant 0 : index
      %c0_25 = arith.constant 0 : index
      %27 = vector.load %arg6[%c0_24, %c0_25] : memref<1x128xf32, #tpu.memory_space<vmem>>, vector<1x128xf32>
      tpu.vector_store %arg6[%c0_24, %c0_25], %26 {strides = array<i32>} : memref<1x128xf32, #tpu.memory_space<vmem>>, vector<1x128xf32>,
    } else {
    }
    %c0 = arith.constant 0 : index
    %c0_2 = arith.constant 0 : index
    %c0_3 = arith.constant 0 : index
    %5 = vector.load %arg2[%c0, %c0_2, %c0_3] : memref<1x2x32xf32, #tpu.memory_space<vmem>>, vector<1x2x32xf32>
    %6 = vector.shape_cast %5 : vector<1x2x32xf32> to vector<2x32xf32>
    %c0_4 = arith.constant 0 : index
    %c0_5 = arith.constant 0 : index
    %c0_6 = arith.constant 0 : index
    %7 = vector.load %arg3[%c0_4, %c0_5, %c0_6] : memref<1x32x128xf32, #tpu.memory_space<vmem>>, vector<1x32x128xf32>
    %8 = vector.shape_cast %7 : vector<1x32x128xf32> to vector<32x128xf32>
    %cst = arith.constant dense<0.000000e+00> : vector<2x128xf32>
    %9 = tpu.matmul %6, %8, %cst {dimension_numbers = #tpu.dot_dimension_numbers<[1], [0], [0], [1], [0, 0, 1, 1], [], []>} : vector<2x32xf32>, vector<32x128xf32>, vector<2x128xf32> -> vector<2x128xf32>
    %c0_7 = arith.constant 0 : index
    %c0_8 = arith.constant 0 : index
    %c0_9 = arith.constant 0 : index
    %10 = vector.load %arg4[%c0_7, %c0_8, %c0_9] : memref<1x2x128xf32, #tpu.memory_space<vmem>>, vector<1x2x128xf32>
    %11 = vector.shape_cast %10 : vector<1x2x128xf32> to vector<2x128xf32>
    %12 = vector.shape_cast %9 : vector<2x128xf32> to vector<1x2x128xf32>
    tpu.vector_store %arg4[%c0_7, %c0_8, %c0_9], %12 {strides = array<i32>} : memref<1x2x128xf32, #tpu.memory_space<vmem>>, vector<1x2x128xf32>,
    %c0_10 = arith.constant 0 : index
    %c0_11 = arith.constant 0 : index
    %13 = vector.load %arg5[%c0_10, %c0_11] : memref<1x128xf32, #tpu.memory_space<vmem>>, vector<1x128xf32>
    %cst_12 = arith.constant dense<0.000000e+00> : vector<128xf32>
    %14 = vector.multi_reduction <add>, %9, %cst_12 [0] : vector<2x128xf32> to vector<128xf32>
    %15 = vector.shape_cast %14 : vector<128xf32> to vector<1x128xf32>
    %16 = arith.addf %13, %15 : vector<1x128xf32>
    %c0_13 = arith.constant 0 : index
    %c0_14 = arith.constant 0 : index
    %17 = vector.load %arg5[%c0_13, %c0_14] : memref<1x128xf32, #tpu.memory_space<vmem>>, vector<1x128xf32>
    tpu.vector_store %arg5[%c0_13, %c0_14], %16 {strides = array<i32>} : memref<1x128xf32, #tpu.memory_space<vmem>>, vector<1x128xf32>,
    %c0_15 = arith.constant 0 : index
    %c0_16 = arith.constant 0 : index
    %18 = vector.load %arg6[%c0_15, %c0_16] : memref<1x128xf32, #tpu.memory_space<vmem>>, vector<1x128xf32>
    %19 = arith.mulf %9, %9 : vector<2x128xf32>
    %cst_17 = arith.constant dense<0.000000e+00> : vector<128xf32>
    %20 = vector.multi_reduction <add>, %19, %cst_17 [0] : vector<2x128xf32> to vector<128xf32>
    %21 = vector.shape_cast %20 : vector<128xf32> to vector<1x128xf32>
    %22 = arith.addf %18, %21 : vector<1x128xf32>
    %c0_18 = arith.constant 0 : index
    %c0_19 = arith.constant 0 : index
    %23 = vector.load %arg6[%c0_18, %c0_19] : memref<1x128xf32, #tpu.memory_space<vmem>>, vector<1x128xf32>
    tpu.vector_store %arg6[%c0_18, %c0_19], %22 {strides = array<i32>} : memref<1x128xf32, #tpu.memory_space<vmem>>, vector<1x128xf32>,
    return
  }
  func.func @transform_0(%arg0: i32, %arg1: i32) -> (i32, i32, i32) {
    %c0_i32 = arith.constant 0 : i32
    %c0_i32_0 = arith.constant 0 : i32
    %c0_i32_1 = arith.constant 0 : i32
    return %c0_i32, %arg1, %c0_i32_0 : i32, i32, i32
  }
  func.func @transform_1(%arg0: i32, %arg1: i32) -> (i32, i32, i32) {
    %c0_i32 = arith.constant 0 : i32
    %c0_i32_0 = arith.constant 0 : i32
    %c0_i32_1 = arith.constant 0 : i32
    return %arg0, %c0_i32, %c0_i32_0 : i32, i32, i32
  }
  func.func @transform_2(%arg0: i32, %arg1: i32) -> (i32, i32, i32) {
    %c0_i32 = arith.constant 0 : i32
    %c0_i32_0 = arith.constant 0 : i32
    return %arg0, %arg1, %c0_i32 : i32, i32, i32
  }
  func.func @transform_3(%arg0: i32, %arg1: i32) -> (i32, i32) {
    %c0_i32 = arith.constant 0 : i32
    %c0_i32_0 = arith.constant 0 : i32
    %c0_i32_1 = arith.constant 0 : i32
    return %c0_i32, %c0_i32_0 : i32, i32
  }
  func.func @transform_4(%arg0: i32, %arg1: i32) -> (i32, i32) {
    %c0_i32 = arith.constant 0 : i32
    %c0_i32_0 = arith.constant 0 : i32
    %c0_i32_1 = arith.constant 0 : i32
    return %c0_i32, %c0_i32_0 : i32, i32
  }
}

module attributes {stable_mosaic.version = 11 : i64} {
  func.func @_bn_lrelu_kernel(%arg0: i32, %arg1: memref<32x128xf32, #tpu.memory_space<vmem>>, %arg2: memref<1x128xf32, #tpu.memory_space<vmem>>, %arg3: memref<1x128xf32, #tpu.memory_space<vmem>>, %arg4: memref<32x128xf32, #tpu.memory_space<vmem>>) attributes {dimension_semantics = [#tpu.dimension_semantics<parallel>], iteration_bounds = array<i64: 1>, scalar_prefetch = 0 : i64, scratch_operands = 0 : i64, tpu.core_type = #tpu.core_type<tc>, window_params = [{transform_indices = @transform_0, window_bounds = array<i64: 32, 128>}, {pipeline_mode = #tpu.pipeline_mode<synchronous>, transform_indices = @transform_1, window_bounds = array<i64: 1, 128>}, {pipeline_mode = #tpu.pipeline_mode<synchronous>, transform_indices = @transform_2, window_bounds = array<i64: 1, 128>}, {transform_indices = @transform_3, window_bounds = array<i64: 32, 128>}]} {
    %c0 = arith.constant 0 : index
    %c0_0 = arith.constant 0 : index
    %0 = vector.load %arg1[%c0, %c0_0] : memref<32x128xf32, #tpu.memory_space<vmem>>, vector<32x128xf32>
    %c0_1 = arith.constant 0 : index
    %c0_2 = arith.constant 0 : index
    %1 = vector.load %arg2[%c0_1, %c0_2] : memref<1x128xf32, #tpu.memory_space<vmem>>, vector<1x128xf32>
    %2 = vector.broadcast %1 : vector<1x128xf32> to vector<32x128xf32>
    %3 = arith.mulf %0, %2 : vector<32x128xf32>
    %c0_3 = arith.constant 0 : index
    %c0_4 = arith.constant 0 : index
    %4 = vector.load %arg3[%c0_3, %c0_4] : memref<1x128xf32, #tpu.memory_space<vmem>>, vector<1x128xf32>
    %5 = vector.broadcast %4 : vector<1x128xf32> to vector<32x128xf32>
    %6 = arith.addf %3, %5 : vector<32x128xf32>
    %cst = arith.constant 0.000000e+00 : f32
    %7 = vector.broadcast %cst : f32 to vector<32x128xf32>
    %8 = arith.cmpf ogt, %6, %7 : vector<32x128xf32>
    %cst_5 = arith.constant 2.000000e-01 : f32
    %9 = vector.broadcast %cst_5 : f32 to vector<32x128xf32>
    %10 = arith.mulf %9, %6 : vector<32x128xf32>
    %11 = arith.select %8, %6, %10 : vector<32x128xi1>, vector<32x128xf32>
    %c0_6 = arith.constant 0 : index
    %c0_7 = arith.constant 0 : index
    %12 = vector.load %arg4[%c0_6, %c0_7] : memref<32x128xf32, #tpu.memory_space<vmem>>, vector<32x128xf32>
    tpu.vector_store %arg4[%c0_6, %c0_7], %11 {strides = array<i32>} : memref<32x128xf32, #tpu.memory_space<vmem>>, vector<32x128xf32>,
    return
  }
  func.func @transform_0(%arg0: i32) -> (i32, i32) {
    %c0_i32 = arith.constant 0 : i32
    %c0_i32_0 = arith.constant 0 : i32
    return %arg0, %c0_i32 : i32, i32
  }
  func.func @transform_1(%arg0: i32) -> (i32, i32) {
    %c0_i32 = arith.constant 0 : i32
    %c0_i32_0 = arith.constant 0 : i32
    %c0_i32_1 = arith.constant 0 : i32
    return %c0_i32, %c0_i32_0 : i32, i32
  }
  func.func @transform_2(%arg0: i32) -> (i32, i32) {
    %c0_i32 = arith.constant 0 : i32
    %c0_i32_0 = arith.constant 0 : i32
    %c0_i32_1 = arith.constant 0 : i32
    return %c0_i32, %c0_i32_0 : i32, i32
  }
  func.func @transform_3(%arg0: i32) -> (i32, i32) {
    %c0_i32 = arith.constant 0 : i32
    %c0_i32_0 = arith.constant 0 : i32
    return %arg0, %c0_i32 : i32, i32
  }
}

module attributes {stable_mosaic.version = 11 : i64} {
  func.func @_mm_stats_kernel(%arg0: i32, %arg1: i32, %arg2: memref<1x32x256xf32, #tpu.memory_space<vmem>>, %arg3: memref<1x256x128xf32, #tpu.memory_space<vmem>>, %arg4: memref<1x32x128xf32, #tpu.memory_space<vmem>>, %arg5: memref<1x128xf32, #tpu.memory_space<vmem>>, %arg6: memref<1x128xf32, #tpu.memory_space<vmem>>) attributes {dimension_semantics = [#tpu.dimension_semantics<arbitrary>, #tpu.dimension_semantics<arbitrary>], iteration_bounds = array<i64: 4, 1>, scalar_prefetch = 0 : i64, scratch_operands = 0 : i64, tpu.core_type = #tpu.core_type<tc>, window_params = [{transform_indices = @transform_0, window_bounds = array<i64: 1, 32, 256>}, {transform_indices = @transform_1, window_bounds = array<i64: 1, 256, 128>}, {transform_indices = @transform_2, window_bounds = array<i64: 1, 32, 128>}, {pipeline_mode = #tpu.pipeline_mode<synchronous>, transform_indices = @transform_3, window_bounds = array<i64: 1, 128>}, {pipeline_mode = #tpu.pipeline_mode<synchronous>, transform_indices = @transform_4, window_bounds = array<i64: 1, 128>}]} {
    %c0_i32 = arith.constant 0 : i32
    %0 = arith.cmpi eq, %arg0, %c0_i32 : i32
    %c0_i32_0 = arith.constant 0 : i32
    %1 = arith.cmpi eq, %arg1, %c0_i32_0 : i32
    %2 = arith.andi %0, %1 : i1
    %3 = arith.extui %2 : i1 to i32
    %c0_i32_1 = arith.constant 0 : i32
    %4 = arith.cmpi ne, %3, %c0_i32_1 : i32
    scf.if %4 {
      %cst_20 = arith.constant 0.000000e+00 : f32
      %24 = vector.broadcast %cst_20 : f32 to vector<1x128xf32>
      %c0_21 = arith.constant 0 : index
      %c0_22 = arith.constant 0 : index
      %25 = vector.load %arg5[%c0_21, %c0_22] : memref<1x128xf32, #tpu.memory_space<vmem>>, vector<1x128xf32>
      tpu.vector_store %arg5[%c0_21, %c0_22], %24 {strides = array<i32>} : memref<1x128xf32, #tpu.memory_space<vmem>>, vector<1x128xf32>,
      %cst_23 = arith.constant 0.000000e+00 : f32
      %26 = vector.broadcast %cst_23 : f32 to vector<1x128xf32>
      %c0_24 = arith.constant 0 : index
      %c0_25 = arith.constant 0 : index
      %27 = vector.load %arg6[%c0_24, %c0_25] : memref<1x128xf32, #tpu.memory_space<vmem>>, vector<1x128xf32>
      tpu.vector_store %arg6[%c0_24, %c0_25], %26 {strides = array<i32>} : memref<1x128xf32, #tpu.memory_space<vmem>>, vector<1x128xf32>,
    } else {
    }
    %c0 = arith.constant 0 : index
    %c0_2 = arith.constant 0 : index
    %c0_3 = arith.constant 0 : index
    %5 = vector.load %arg2[%c0, %c0_2, %c0_3] : memref<1x32x256xf32, #tpu.memory_space<vmem>>, vector<1x32x256xf32>
    %6 = vector.shape_cast %5 : vector<1x32x256xf32> to vector<32x256xf32>
    %c0_4 = arith.constant 0 : index
    %c0_5 = arith.constant 0 : index
    %c0_6 = arith.constant 0 : index
    %7 = vector.load %arg3[%c0_4, %c0_5, %c0_6] : memref<1x256x128xf32, #tpu.memory_space<vmem>>, vector<1x256x128xf32>
    %8 = vector.shape_cast %7 : vector<1x256x128xf32> to vector<256x128xf32>
    %cst = arith.constant dense<0.000000e+00> : vector<32x128xf32>
    %9 = tpu.matmul %6, %8, %cst {dimension_numbers = #tpu.dot_dimension_numbers<[1], [0], [0], [1], [0, 0, 1, 1], [], []>} : vector<32x256xf32>, vector<256x128xf32>, vector<32x128xf32> -> vector<32x128xf32>
    %c0_7 = arith.constant 0 : index
    %c0_8 = arith.constant 0 : index
    %c0_9 = arith.constant 0 : index
    %10 = vector.load %arg4[%c0_7, %c0_8, %c0_9] : memref<1x32x128xf32, #tpu.memory_space<vmem>>, vector<1x32x128xf32>
    %11 = vector.shape_cast %10 : vector<1x32x128xf32> to vector<32x128xf32>
    %12 = vector.shape_cast %9 : vector<32x128xf32> to vector<1x32x128xf32>
    tpu.vector_store %arg4[%c0_7, %c0_8, %c0_9], %12 {strides = array<i32>} : memref<1x32x128xf32, #tpu.memory_space<vmem>>, vector<1x32x128xf32>,
    %c0_10 = arith.constant 0 : index
    %c0_11 = arith.constant 0 : index
    %13 = vector.load %arg5[%c0_10, %c0_11] : memref<1x128xf32, #tpu.memory_space<vmem>>, vector<1x128xf32>
    %cst_12 = arith.constant dense<0.000000e+00> : vector<128xf32>
    %14 = vector.multi_reduction <add>, %9, %cst_12 [0] : vector<32x128xf32> to vector<128xf32>
    %15 = vector.shape_cast %14 : vector<128xf32> to vector<1x128xf32>
    %16 = arith.addf %13, %15 : vector<1x128xf32>
    %c0_13 = arith.constant 0 : index
    %c0_14 = arith.constant 0 : index
    %17 = vector.load %arg5[%c0_13, %c0_14] : memref<1x128xf32, #tpu.memory_space<vmem>>, vector<1x128xf32>
    tpu.vector_store %arg5[%c0_13, %c0_14], %16 {strides = array<i32>} : memref<1x128xf32, #tpu.memory_space<vmem>>, vector<1x128xf32>,
    %c0_15 = arith.constant 0 : index
    %c0_16 = arith.constant 0 : index
    %18 = vector.load %arg6[%c0_15, %c0_16] : memref<1x128xf32, #tpu.memory_space<vmem>>, vector<1x128xf32>
    %19 = arith.mulf %9, %9 : vector<32x128xf32>
    %cst_17 = arith.constant dense<0.000000e+00> : vector<128xf32>
    %20 = vector.multi_reduction <add>, %19, %cst_17 [0] : vector<32x128xf32> to vector<128xf32>
    %21 = vector.shape_cast %20 : vector<128xf32> to vector<1x128xf32>
    %22 = arith.addf %18, %21 : vector<1x128xf32>
    %c0_18 = arith.constant 0 : index
    %c0_19 = arith.constant 0 : index
    %23 = vector.load %arg6[%c0_18, %c0_19] : memref<1x128xf32, #tpu.memory_space<vmem>>, vector<1x128xf32>
    tpu.vector_store %arg6[%c0_18, %c0_19], %22 {strides = array<i32>} : memref<1x128xf32, #tpu.memory_space<vmem>>, vector<1x128xf32>,
    return
  }
  func.func @transform_0(%arg0: i32, %arg1: i32) -> (i32, i32, i32) {
    %c0_i32 = arith.constant 0 : i32
    %c0_i32_0 = arith.constant 0 : i32
    return %arg0, %arg1, %c0_i32 : i32, i32, i32
  }
  func.func @transform_1(%arg0: i32, %arg1: i32) -> (i32, i32, i32) {
    %c0_i32 = arith.constant 0 : i32
    %c0_i32_0 = arith.constant 0 : i32
    %c0_i32_1 = arith.constant 0 : i32
    return %arg0, %c0_i32, %c0_i32_0 : i32, i32, i32
  }
  func.func @transform_2(%arg0: i32, %arg1: i32) -> (i32, i32, i32) {
    %c0_i32 = arith.constant 0 : i32
    %c0_i32_0 = arith.constant 0 : i32
    return %arg0, %arg1, %c0_i32 : i32, i32, i32
  }
  func.func @transform_3(%arg0: i32, %arg1: i32) -> (i32, i32) {
    %c0_i32 = arith.constant 0 : i32
    %c0_i32_0 = arith.constant 0 : i32
    %c0_i32_1 = arith.constant 0 : i32
    return %c0_i32, %c0_i32_0 : i32, i32
  }
  func.func @transform_4(%arg0: i32, %arg1: i32) -> (i32, i32) {
    %c0_i32 = arith.constant 0 : i32
    %c0_i32_0 = arith.constant 0 : i32
    %c0_i32_1 = arith.constant 0 : i32
    return %c0_i32, %c0_i32_0 : i32, i32
  }
}

module attributes {stable_mosaic.version = 11 : i64} {
  func.func @_bn_lrelu_kernel(%arg0: i32, %arg1: memref<128x128xf32, #tpu.memory_space<vmem>>, %arg2: memref<1x128xf32, #tpu.memory_space<vmem>>, %arg3: memref<1x128xf32, #tpu.memory_space<vmem>>, %arg4: memref<128x128xf32, #tpu.memory_space<vmem>>) attributes {dimension_semantics = [#tpu.dimension_semantics<parallel>], iteration_bounds = array<i64: 1>, scalar_prefetch = 0 : i64, scratch_operands = 0 : i64, tpu.core_type = #tpu.core_type<tc>, window_params = [{transform_indices = @transform_0, window_bounds = array<i64: 128, 128>}, {pipeline_mode = #tpu.pipeline_mode<synchronous>, transform_indices = @transform_1, window_bounds = array<i64: 1, 128>}, {pipeline_mode = #tpu.pipeline_mode<synchronous>, transform_indices = @transform_2, window_bounds = array<i64: 1, 128>}, {transform_indices = @transform_3, window_bounds = array<i64: 128, 128>}]} {
    %c0 = arith.constant 0 : index
    %c0_0 = arith.constant 0 : index
    %0 = vector.load %arg1[%c0, %c0_0] : memref<128x128xf32, #tpu.memory_space<vmem>>, vector<128x128xf32>
    %c0_1 = arith.constant 0 : index
    %c0_2 = arith.constant 0 : index
    %1 = vector.load %arg2[%c0_1, %c0_2] : memref<1x128xf32, #tpu.memory_space<vmem>>, vector<1x128xf32>
    %2 = vector.broadcast %1 : vector<1x128xf32> to vector<128x128xf32>
    %3 = arith.mulf %0, %2 : vector<128x128xf32>
    %c0_3 = arith.constant 0 : index
    %c0_4 = arith.constant 0 : index
    %4 = vector.load %arg3[%c0_3, %c0_4] : memref<1x128xf32, #tpu.memory_space<vmem>>, vector<1x128xf32>
    %5 = vector.broadcast %4 : vector<1x128xf32> to vector<128x128xf32>
    %6 = arith.addf %3, %5 : vector<128x128xf32>
    %cst = arith.constant 0.000000e+00 : f32
    %7 = vector.broadcast %cst : f32 to vector<128x128xf32>
    %8 = arith.cmpf ogt, %6, %7 : vector<128x128xf32>
    %cst_5 = arith.constant 2.000000e-01 : f32
    %9 = vector.broadcast %cst_5 : f32 to vector<128x128xf32>
    %10 = arith.mulf %9, %6 : vector<128x128xf32>
    %11 = arith.select %8, %6, %10 : vector<128x128xi1>, vector<128x128xf32>
    %c0_6 = arith.constant 0 : index
    %c0_7 = arith.constant 0 : index
    %12 = vector.load %arg4[%c0_6, %c0_7] : memref<128x128xf32, #tpu.memory_space<vmem>>, vector<128x128xf32>
    tpu.vector_store %arg4[%c0_6, %c0_7], %11 {strides = array<i32>} : memref<128x128xf32, #tpu.memory_space<vmem>>, vector<128x128xf32>,
    return
  }
  func.func @transform_0(%arg0: i32) -> (i32, i32) {
    %c0_i32 = arith.constant 0 : i32
    %c0_i32_0 = arith.constant 0 : i32
    return %arg0, %c0_i32 : i32, i32
  }
  func.func @transform_1(%arg0: i32) -> (i32, i32) {
    %c0_i32 = arith.constant 0 : i32
    %c0_i32_0 = arith.constant 0 : i32
    %c0_i32_1 = arith.constant 0 : i32
    return %c0_i32, %c0_i32_0 : i32, i32
  }
  func.func @transform_2(%arg0: i32) -> (i32, i32) {
    %c0_i32 = arith.constant 0 : i32
    %c0_i32_0 = arith.constant 0 : i32
    %c0_i32_1 = arith.constant 0 : i32
    return %c0_i32, %c0_i32_0 : i32, i32
  }
  func.func @transform_3(%arg0: i32) -> (i32, i32) {
    %c0_i32 = arith.constant 0 : i32
    %c0_i32_0 = arith.constant 0 : i32
    return %arg0, %c0_i32 : i32, i32
  }
}

module attributes {stable_mosaic.version = 11 : i64} {
  func.func @_bn_lrelu_kernel(%arg0: i32, %arg1: memref<512x128xf32, #tpu.memory_space<vmem>>, %arg2: memref<1x128xf32, #tpu.memory_space<vmem>>, %arg3: memref<1x128xf32, #tpu.memory_space<vmem>>, %arg4: memref<512x128xf32, #tpu.memory_space<vmem>>) attributes {dimension_semantics = [#tpu.dimension_semantics<parallel>], iteration_bounds = array<i64: 1>, scalar_prefetch = 0 : i64, scratch_operands = 0 : i64, tpu.core_type = #tpu.core_type<tc>, window_params = [{transform_indices = @transform_0, window_bounds = array<i64: 512, 128>}, {pipeline_mode = #tpu.pipeline_mode<synchronous>, transform_indices = @transform_1, window_bounds = array<i64: 1, 128>}, {pipeline_mode = #tpu.pipeline_mode<synchronous>, transform_indices = @transform_2, window_bounds = array<i64: 1, 128>}, {transform_indices = @transform_3, window_bounds = array<i64: 512, 128>}]} {
    %c0 = arith.constant 0 : index
    %c0_0 = arith.constant 0 : index
    %0 = vector.load %arg1[%c0, %c0_0] : memref<512x128xf32, #tpu.memory_space<vmem>>, vector<512x128xf32>
    %c0_1 = arith.constant 0 : index
    %c0_2 = arith.constant 0 : index
    %1 = vector.load %arg2[%c0_1, %c0_2] : memref<1x128xf32, #tpu.memory_space<vmem>>, vector<1x128xf32>
    %2 = vector.broadcast %1 : vector<1x128xf32> to vector<512x128xf32>
    %3 = arith.mulf %0, %2 : vector<512x128xf32>
    %c0_3 = arith.constant 0 : index
    %c0_4 = arith.constant 0 : index
    %4 = vector.load %arg3[%c0_3, %c0_4] : memref<1x128xf32, #tpu.memory_space<vmem>>, vector<1x128xf32>
    %5 = vector.broadcast %4 : vector<1x128xf32> to vector<512x128xf32>
    %6 = arith.addf %3, %5 : vector<512x128xf32>
    %cst = arith.constant 0.000000e+00 : f32
    %7 = vector.broadcast %cst : f32 to vector<512x128xf32>
    %8 = arith.cmpf ogt, %6, %7 : vector<512x128xf32>
    %cst_5 = arith.constant 2.000000e-01 : f32
    %9 = vector.broadcast %cst_5 : f32 to vector<512x128xf32>
    %10 = arith.mulf %9, %6 : vector<512x128xf32>
    %11 = arith.select %8, %6, %10 : vector<512x128xi1>, vector<512x128xf32>
    %c0_6 = arith.constant 0 : index
    %c0_7 = arith.constant 0 : index
    %12 = vector.load %arg4[%c0_6, %c0_7] : memref<512x128xf32, #tpu.memory_space<vmem>>, vector<512x128xf32>
    tpu.vector_store %arg4[%c0_6, %c0_7], %11 {strides = array<i32>} : memref<512x128xf32, #tpu.memory_space<vmem>>, vector<512x128xf32>,
    return
  }
  func.func @transform_0(%arg0: i32) -> (i32, i32) {
    %c0_i32 = arith.constant 0 : i32
    %c0_i32_0 = arith.constant 0 : i32
    return %arg0, %c0_i32 : i32, i32
  }
  func.func @transform_1(%arg0: i32) -> (i32, i32) {
    %c0_i32 = arith.constant 0 : i32
    %c0_i32_0 = arith.constant 0 : i32
    %c0_i32_1 = arith.constant 0 : i32
    return %c0_i32, %c0_i32_0 : i32, i32
  }
  func.func @transform_2(%arg0: i32) -> (i32, i32) {
    %c0_i32 = arith.constant 0 : i32
    %c0_i32_0 = arith.constant 0 : i32
    %c0_i32_1 = arith.constant 0 : i32
    return %c0_i32, %c0_i32_0 : i32, i32
  }
  func.func @transform_3(%arg0: i32) -> (i32, i32) {
    %c0_i32 = arith.constant 0 : i32
    %c0_i32_0 = arith.constant 0 : i32
    return %arg0, %c0_i32 : i32, i32
  }
}

module attributes {stable_mosaic.version = 11 : i64} {
  func.func @_mm_stats_kernel(%arg0: i32, %arg1: i32, %arg2: memref<1x128x128xf32, #tpu.memory_space<vmem>>, %arg3: memref<1x128x128xf32, #tpu.memory_space<vmem>>, %arg4: memref<1x128x128xf32, #tpu.memory_space<vmem>>, %arg5: memref<1x128xf32, #tpu.memory_space<vmem>>, %arg6: memref<1x128xf32, #tpu.memory_space<vmem>>) attributes {dimension_semantics = [#tpu.dimension_semantics<arbitrary>, #tpu.dimension_semantics<arbitrary>], iteration_bounds = array<i64: 4, 1>, scalar_prefetch = 0 : i64, scratch_operands = 0 : i64, tpu.core_type = #tpu.core_type<tc>, window_params = [{transform_indices = @transform_0, window_bounds = array<i64: 1, 128, 128>}, {transform_indices = @transform_1, window_bounds = array<i64: 1, 128, 128>}, {transform_indices = @transform_2, window_bounds = array<i64: 1, 128, 128>}, {pipeline_mode = #tpu.pipeline_mode<synchronous>, transform_indices = @transform_3, window_bounds = array<i64: 1, 128>}, {pipeline_mode = #tpu.pipeline_mode<synchronous>, transform_indices = @transform_4, window_bounds = array<i64: 1, 128>}]} {
    %c0_i32 = arith.constant 0 : i32
    %0 = arith.cmpi eq, %arg0, %c0_i32 : i32
    %c0_i32_0 = arith.constant 0 : i32
    %1 = arith.cmpi eq, %arg1, %c0_i32_0 : i32
    %2 = arith.andi %0, %1 : i1
    %3 = arith.extui %2 : i1 to i32
    %c0_i32_1 = arith.constant 0 : i32
    %4 = arith.cmpi ne, %3, %c0_i32_1 : i32
    scf.if %4 {
      %cst_20 = arith.constant 0.000000e+00 : f32
      %24 = vector.broadcast %cst_20 : f32 to vector<1x128xf32>
      %c0_21 = arith.constant 0 : index
      %c0_22 = arith.constant 0 : index
      %25 = vector.load %arg5[%c0_21, %c0_22] : memref<1x128xf32, #tpu.memory_space<vmem>>, vector<1x128xf32>
      tpu.vector_store %arg5[%c0_21, %c0_22], %24 {strides = array<i32>} : memref<1x128xf32, #tpu.memory_space<vmem>>, vector<1x128xf32>,
      %cst_23 = arith.constant 0.000000e+00 : f32
      %26 = vector.broadcast %cst_23 : f32 to vector<1x128xf32>
      %c0_24 = arith.constant 0 : index
      %c0_25 = arith.constant 0 : index
      %27 = vector.load %arg6[%c0_24, %c0_25] : memref<1x128xf32, #tpu.memory_space<vmem>>, vector<1x128xf32>
      tpu.vector_store %arg6[%c0_24, %c0_25], %26 {strides = array<i32>} : memref<1x128xf32, #tpu.memory_space<vmem>>, vector<1x128xf32>,
    } else {
    }
    %c0 = arith.constant 0 : index
    %c0_2 = arith.constant 0 : index
    %c0_3 = arith.constant 0 : index
    %5 = vector.load %arg2[%c0, %c0_2, %c0_3] : memref<1x128x128xf32, #tpu.memory_space<vmem>>, vector<1x128x128xf32>
    %6 = vector.shape_cast %5 : vector<1x128x128xf32> to vector<128x128xf32>
    %c0_4 = arith.constant 0 : index
    %c0_5 = arith.constant 0 : index
    %c0_6 = arith.constant 0 : index
    %7 = vector.load %arg3[%c0_4, %c0_5, %c0_6] : memref<1x128x128xf32, #tpu.memory_space<vmem>>, vector<1x128x128xf32>
    %8 = vector.shape_cast %7 : vector<1x128x128xf32> to vector<128x128xf32>
    %cst = arith.constant dense<0.000000e+00> : vector<128x128xf32>
    %9 = tpu.matmul %6, %8, %cst {dimension_numbers = #tpu.dot_dimension_numbers<[1], [0], [0], [1], [0, 0, 1, 1], [], []>} : vector<128x128xf32>, vector<128x128xf32>, vector<128x128xf32> -> vector<128x128xf32>
    %c0_7 = arith.constant 0 : index
    %c0_8 = arith.constant 0 : index
    %c0_9 = arith.constant 0 : index
    %10 = vector.load %arg4[%c0_7, %c0_8, %c0_9] : memref<1x128x128xf32, #tpu.memory_space<vmem>>, vector<1x128x128xf32>
    %11 = vector.shape_cast %10 : vector<1x128x128xf32> to vector<128x128xf32>
    %12 = vector.shape_cast %9 : vector<128x128xf32> to vector<1x128x128xf32>
    tpu.vector_store %arg4[%c0_7, %c0_8, %c0_9], %12 {strides = array<i32>} : memref<1x128x128xf32, #tpu.memory_space<vmem>>, vector<1x128x128xf32>,
    %c0_10 = arith.constant 0 : index
    %c0_11 = arith.constant 0 : index
    %13 = vector.load %arg5[%c0_10, %c0_11] : memref<1x128xf32, #tpu.memory_space<vmem>>, vector<1x128xf32>
    %cst_12 = arith.constant dense<0.000000e+00> : vector<128xf32>
    %14 = vector.multi_reduction <add>, %9, %cst_12 [0] : vector<128x128xf32> to vector<128xf32>
    %15 = vector.shape_cast %14 : vector<128xf32> to vector<1x128xf32>
    %16 = arith.addf %13, %15 : vector<1x128xf32>
    %c0_13 = arith.constant 0 : index
    %c0_14 = arith.constant 0 : index
    %17 = vector.load %arg5[%c0_13, %c0_14] : memref<1x128xf32, #tpu.memory_space<vmem>>, vector<1x128xf32>
    tpu.vector_store %arg5[%c0_13, %c0_14], %16 {strides = array<i32>} : memref<1x128xf32, #tpu.memory_space<vmem>>, vector<1x128xf32>,
    %c0_15 = arith.constant 0 : index
    %c0_16 = arith.constant 0 : index
    %18 = vector.load %arg6[%c0_15, %c0_16] : memref<1x128xf32, #tpu.memory_space<vmem>>, vector<1x128xf32>
    %19 = arith.mulf %9, %9 : vector<128x128xf32>
    %cst_17 = arith.constant dense<0.000000e+00> : vector<128xf32>
    %20 = vector.multi_reduction <add>, %19, %cst_17 [0] : vector<128x128xf32> to vector<128xf32>
    %21 = vector.shape_cast %20 : vector<128xf32> to vector<1x128xf32>
    %22 = arith.addf %18, %21 : vector<1x128xf32>
    %c0_18 = arith.constant 0 : index
    %c0_19 = arith.constant 0 : index
    %23 = vector.load %arg6[%c0_18, %c0_19] : memref<1x128xf32, #tpu.memory_space<vmem>>, vector<1x128xf32>
    tpu.vector_store %arg6[%c0_18, %c0_19], %22 {strides = array<i32>} : memref<1x128xf32, #tpu.memory_space<vmem>>, vector<1x128xf32>,
    return
  }
  func.func @transform_0(%arg0: i32, %arg1: i32) -> (i32, i32, i32) {
    %c0_i32 = arith.constant 0 : i32
    %c0_i32_0 = arith.constant 0 : i32
    return %arg0, %arg1, %c0_i32 : i32, i32, i32
  }
  func.func @transform_1(%arg0: i32, %arg1: i32) -> (i32, i32, i32) {
    %c0_i32 = arith.constant 0 : i32
    %c0_i32_0 = arith.constant 0 : i32
    %c0_i32_1 = arith.constant 0 : i32
    return %arg0, %c0_i32, %c0_i32_0 : i32, i32, i32
  }
  func.func @transform_2(%arg0: i32, %arg1: i32) -> (i32, i32, i32) {
    %c0_i32 = arith.constant 0 : i32
    %c0_i32_0 = arith.constant 0 : i32
    return %arg0, %arg1, %c0_i32 : i32, i32, i32
  }
  func.func @transform_3(%arg0: i32, %arg1: i32) -> (i32, i32) {
    %c0_i32 = arith.constant 0 : i32
    %c0_i32_0 = arith.constant 0 : i32
    %c0_i32_1 = arith.constant 0 : i32
    return %c0_i32, %c0_i32_0 : i32, i32
  }
  func.func @transform_4(%arg0: i32, %arg1: i32) -> (i32, i32) {
    %c0_i32 = arith.constant 0 : i32
    %c0_i32_0 = arith.constant 0 : i32
    %c0_i32_1 = arith.constant 0 : i32
    return %c0_i32, %c0_i32_0 : i32, i32
  }
}

module attributes {stable_mosaic.version = 11 : i64} {
  func.func @_bn_lrelu_kernel(%arg0: i32, %arg1: memref<1024x128xf32, #tpu.memory_space<vmem>>, %arg2: memref<1x128xf32, #tpu.memory_space<vmem>>, %arg3: memref<1x128xf32, #tpu.memory_space<vmem>>, %arg4: memref<1024x128xf32, #tpu.memory_space<vmem>>) attributes {dimension_semantics = [#tpu.dimension_semantics<parallel>], iteration_bounds = array<i64: 2>, scalar_prefetch = 0 : i64, scratch_operands = 0 : i64, tpu.core_type = #tpu.core_type<tc>, window_params = [{transform_indices = @transform_0, window_bounds = array<i64: 1024, 128>}, {pipeline_mode = #tpu.pipeline_mode<synchronous>, transform_indices = @transform_1, window_bounds = array<i64: 1, 128>}, {pipeline_mode = #tpu.pipeline_mode<synchronous>, transform_indices = @transform_2, window_bounds = array<i64: 1, 128>}, {transform_indices = @transform_3, window_bounds = array<i64: 1024, 128>}]} {
    %c0 = arith.constant 0 : index
    %c0_0 = arith.constant 0 : index
    %0 = vector.load %arg1[%c0, %c0_0] : memref<1024x128xf32, #tpu.memory_space<vmem>>, vector<1024x128xf32>
    %c0_1 = arith.constant 0 : index
    %c0_2 = arith.constant 0 : index
    %1 = vector.load %arg2[%c0_1, %c0_2] : memref<1x128xf32, #tpu.memory_space<vmem>>, vector<1x128xf32>
    %2 = vector.broadcast %1 : vector<1x128xf32> to vector<1024x128xf32>
    %3 = arith.mulf %0, %2 : vector<1024x128xf32>
    %c0_3 = arith.constant 0 : index
    %c0_4 = arith.constant 0 : index
    %4 = vector.load %arg3[%c0_3, %c0_4] : memref<1x128xf32, #tpu.memory_space<vmem>>, vector<1x128xf32>
    %5 = vector.broadcast %4 : vector<1x128xf32> to vector<1024x128xf32>
    %6 = arith.addf %3, %5 : vector<1024x128xf32>
    %cst = arith.constant 0.000000e+00 : f32
    %7 = vector.broadcast %cst : f32 to vector<1024x128xf32>
    %8 = arith.cmpf ogt, %6, %7 : vector<1024x128xf32>
    %cst_5 = arith.constant 2.000000e-01 : f32
    %9 = vector.broadcast %cst_5 : f32 to vector<1024x128xf32>
    %10 = arith.mulf %9, %6 : vector<1024x128xf32>
    %11 = arith.select %8, %6, %10 : vector<1024x128xi1>, vector<1024x128xf32>
    %c0_6 = arith.constant 0 : index
    %c0_7 = arith.constant 0 : index
    %12 = vector.load %arg4[%c0_6, %c0_7] : memref<1024x128xf32, #tpu.memory_space<vmem>>, vector<1024x128xf32>
    tpu.vector_store %arg4[%c0_6, %c0_7], %11 {strides = array<i32>} : memref<1024x128xf32, #tpu.memory_space<vmem>>, vector<1024x128xf32>,
    return
  }
  func.func @transform_0(%arg0: i32) -> (i32, i32) {
    %c0_i32 = arith.constant 0 : i32
    %c0_i32_0 = arith.constant 0 : i32
    return %arg0, %c0_i32 : i32, i32
  }
  func.func @transform_1(%arg0: i32) -> (i32, i32) {
    %c0_i32 = arith.constant 0 : i32
    %c0_i32_0 = arith.constant 0 : i32
    %c0_i32_1 = arith.constant 0 : i32
    return %c0_i32, %c0_i32_0 : i32, i32
  }
  func.func @transform_2(%arg0: i32) -> (i32, i32) {
    %c0_i32 = arith.constant 0 : i32
    %c0_i32_0 = arith.constant 0 : i32
    %c0_i32_1 = arith.constant 0 : i32
    return %c0_i32, %c0_i32_0 : i32, i32
  }
  func.func @transform_3(%arg0: i32) -> (i32, i32) {
    %c0_i32 = arith.constant 0 : i32
    %c0_i32_0 = arith.constant 0 : i32
    return %arg0, %c0_i32 : i32, i32
  }
}

module attributes {stable_mosaic.version = 11 : i64} {
  func.func @_mm_stats_kernel(%arg0: i32, %arg1: i32, %arg2: memref<1x512x64xf32, #tpu.memory_space<vmem>>, %arg3: memref<1x64x128xf32, #tpu.memory_space<vmem>>, %arg4: memref<1x512x128xf32, #tpu.memory_space<vmem>>, %arg5: memref<1x128xf32, #tpu.memory_space<vmem>>, %arg6: memref<1x128xf32, #tpu.memory_space<vmem>>) attributes {dimension_semantics = [#tpu.dimension_semantics<arbitrary>, #tpu.dimension_semantics<arbitrary>], iteration_bounds = array<i64: 4, 1>, scalar_prefetch = 0 : i64, scratch_operands = 0 : i64, tpu.core_type = #tpu.core_type<tc>, window_params = [{transform_indices = @transform_0, window_bounds = array<i64: 1, 512, 64>}, {transform_indices = @transform_1, window_bounds = array<i64: 1, 64, 128>}, {transform_indices = @transform_2, window_bounds = array<i64: 1, 512, 128>}, {pipeline_mode = #tpu.pipeline_mode<synchronous>, transform_indices = @transform_3, window_bounds = array<i64: 1, 128>}, {pipeline_mode = #tpu.pipeline_mode<synchronous>, transform_indices = @transform_4, window_bounds = array<i64: 1, 128>}]} {
    %c0_i32 = arith.constant 0 : i32
    %0 = arith.cmpi eq, %arg0, %c0_i32 : i32
    %c0_i32_0 = arith.constant 0 : i32
    %1 = arith.cmpi eq, %arg1, %c0_i32_0 : i32
    %2 = arith.andi %0, %1 : i1
    %3 = arith.extui %2 : i1 to i32
    %c0_i32_1 = arith.constant 0 : i32
    %4 = arith.cmpi ne, %3, %c0_i32_1 : i32
    scf.if %4 {
      %cst_20 = arith.constant 0.000000e+00 : f32
      %24 = vector.broadcast %cst_20 : f32 to vector<1x128xf32>
      %c0_21 = arith.constant 0 : index
      %c0_22 = arith.constant 0 : index
      %25 = vector.load %arg5[%c0_21, %c0_22] : memref<1x128xf32, #tpu.memory_space<vmem>>, vector<1x128xf32>
      tpu.vector_store %arg5[%c0_21, %c0_22], %24 {strides = array<i32>} : memref<1x128xf32, #tpu.memory_space<vmem>>, vector<1x128xf32>,
      %cst_23 = arith.constant 0.000000e+00 : f32
      %26 = vector.broadcast %cst_23 : f32 to vector<1x128xf32>
      %c0_24 = arith.constant 0 : index
      %c0_25 = arith.constant 0 : index
      %27 = vector.load %arg6[%c0_24, %c0_25] : memref<1x128xf32, #tpu.memory_space<vmem>>, vector<1x128xf32>
      tpu.vector_store %arg6[%c0_24, %c0_25], %26 {strides = array<i32>} : memref<1x128xf32, #tpu.memory_space<vmem>>, vector<1x128xf32>,
    } else {
    }
    %c0 = arith.constant 0 : index
    %c0_2 = arith.constant 0 : index
    %c0_3 = arith.constant 0 : index
    %5 = vector.load %arg2[%c0, %c0_2, %c0_3] : memref<1x512x64xf32, #tpu.memory_space<vmem>>, vector<1x512x64xf32>
    %6 = vector.shape_cast %5 : vector<1x512x64xf32> to vector<512x64xf32>
    %c0_4 = arith.constant 0 : index
    %c0_5 = arith.constant 0 : index
    %c0_6 = arith.constant 0 : index
    %7 = vector.load %arg3[%c0_4, %c0_5, %c0_6] : memref<1x64x128xf32, #tpu.memory_space<vmem>>, vector<1x64x128xf32>
    %8 = vector.shape_cast %7 : vector<1x64x128xf32> to vector<64x128xf32>
    %cst = arith.constant dense<0.000000e+00> : vector<512x128xf32>
    %9 = tpu.matmul %6, %8, %cst {dimension_numbers = #tpu.dot_dimension_numbers<[1], [0], [0], [1], [0, 0, 1, 1], [], []>} : vector<512x64xf32>, vector<64x128xf32>, vector<512x128xf32> -> vector<512x128xf32>
    %c0_7 = arith.constant 0 : index
    %c0_8 = arith.constant 0 : index
    %c0_9 = arith.constant 0 : index
    %10 = vector.load %arg4[%c0_7, %c0_8, %c0_9] : memref<1x512x128xf32, #tpu.memory_space<vmem>>, vector<1x512x128xf32>
    %11 = vector.shape_cast %10 : vector<1x512x128xf32> to vector<512x128xf32>
    %12 = vector.shape_cast %9 : vector<512x128xf32> to vector<1x512x128xf32>
    tpu.vector_store %arg4[%c0_7, %c0_8, %c0_9], %12 {strides = array<i32>} : memref<1x512x128xf32, #tpu.memory_space<vmem>>, vector<1x512x128xf32>,
    %c0_10 = arith.constant 0 : index
    %c0_11 = arith.constant 0 : index
    %13 = vector.load %arg5[%c0_10, %c0_11] : memref<1x128xf32, #tpu.memory_space<vmem>>, vector<1x128xf32>
    %cst_12 = arith.constant dense<0.000000e+00> : vector<128xf32>
    %14 = vector.multi_reduction <add>, %9, %cst_12 [0] : vector<512x128xf32> to vector<128xf32>
    %15 = vector.shape_cast %14 : vector<128xf32> to vector<1x128xf32>
    %16 = arith.addf %13, %15 : vector<1x128xf32>
    %c0_13 = arith.constant 0 : index
    %c0_14 = arith.constant 0 : index
    %17 = vector.load %arg5[%c0_13, %c0_14] : memref<1x128xf32, #tpu.memory_space<vmem>>, vector<1x128xf32>
    tpu.vector_store %arg5[%c0_13, %c0_14], %16 {strides = array<i32>} : memref<1x128xf32, #tpu.memory_space<vmem>>, vector<1x128xf32>,
    %c0_15 = arith.constant 0 : index
    %c0_16 = arith.constant 0 : index
    %18 = vector.load %arg6[%c0_15, %c0_16] : memref<1x128xf32, #tpu.memory_space<vmem>>, vector<1x128xf32>
    %19 = arith.mulf %9, %9 : vector<512x128xf32>
    %cst_17 = arith.constant dense<0.000000e+00> : vector<128xf32>
    %20 = vector.multi_reduction <add>, %19, %cst_17 [0] : vector<512x128xf32> to vector<128xf32>
    %21 = vector.shape_cast %20 : vector<128xf32> to vector<1x128xf32>
    %22 = arith.addf %18, %21 : vector<1x128xf32>
    %c0_18 = arith.constant 0 : index
    %c0_19 = arith.constant 0 : index
    %23 = vector.load %arg6[%c0_18, %c0_19] : memref<1x128xf32, #tpu.memory_space<vmem>>, vector<1x128xf32>
    tpu.vector_store %arg6[%c0_18, %c0_19], %22 {strides = array<i32>} : memref<1x128xf32, #tpu.memory_space<vmem>>, vector<1x128xf32>,
    return
  }
  func.func @transform_0(%arg0: i32, %arg1: i32) -> (i32, i32, i32) {
    %c0_i32 = arith.constant 0 : i32
    %c0_i32_0 = arith.constant 0 : i32
    return %arg0, %arg1, %c0_i32 : i32, i32, i32
  }
  func.func @transform_1(%arg0: i32, %arg1: i32) -> (i32, i32, i32) {
    %c0_i32 = arith.constant 0 : i32
    %c0_i32_0 = arith.constant 0 : i32
    %c0_i32_1 = arith.constant 0 : i32
    return %arg0, %c0_i32, %c0_i32_0 : i32, i32, i32
  }
  func.func @transform_2(%arg0: i32, %arg1: i32) -> (i32, i32, i32) {
    %c0_i32 = arith.constant 0 : i32
    %c0_i32_0 = arith.constant 0 : i32
    return %arg0, %arg1, %c0_i32 : i32, i32, i32
  }
  func.func @transform_3(%arg0: i32, %arg1: i32) -> (i32, i32) {
    %c0_i32 = arith.constant 0 : i32
    %c0_i32_0 = arith.constant 0 : i32
    %c0_i32_1 = arith.constant 0 : i32
    return %c0_i32, %c0_i32_0 : i32, i32
  }
  func.func @transform_4(%arg0: i32, %arg1: i32) -> (i32, i32) {
    %c0_i32 = arith.constant 0 : i32
    %c0_i32_0 = arith.constant 0 : i32
    %c0_i32_1 = arith.constant 0 : i32
    return %c0_i32, %c0_i32_0 : i32, i32
  }
}

module attributes {stable_mosaic.version = 11 : i64} {
  func.func @_mm_tanh_kernel(%arg0: i32, %arg1: i32, %arg2: memref<1x1024x32xf32, #tpu.memory_space<vmem>>, %arg3: memref<1x32x128xf32, #tpu.memory_space<vmem>>, %arg4: memref<1x1024x128xf32, #tpu.memory_space<vmem>>) attributes {dimension_semantics = [#tpu.dimension_semantics<parallel>, #tpu.dimension_semantics<parallel>], iteration_bounds = array<i64: 4, 2>, scalar_prefetch = 0 : i64, scratch_operands = 0 : i64, tpu.core_type = #tpu.core_type<tc>, window_params = [{transform_indices = @transform_0, window_bounds = array<i64: 1, 1024, 32>}, {transform_indices = @transform_1, window_bounds = array<i64: 1, 32, 128>}, {transform_indices = @transform_2, window_bounds = array<i64: 1, 1024, 128>}]} {
    %c0 = arith.constant 0 : index
    %c0_0 = arith.constant 0 : index
    %c0_1 = arith.constant 0 : index
    %0 = vector.load %arg2[%c0, %c0_0, %c0_1] : memref<1x1024x32xf32, #tpu.memory_space<vmem>>, vector<1x1024x32xf32>
    %1 = vector.shape_cast %0 : vector<1x1024x32xf32> to vector<1024x32xf32>
    %c0_2 = arith.constant 0 : index
    %c0_3 = arith.constant 0 : index
    %c0_4 = arith.constant 0 : index
    %2 = vector.load %arg3[%c0_2, %c0_3, %c0_4] : memref<1x32x128xf32, #tpu.memory_space<vmem>>, vector<1x32x128xf32>
    %3 = vector.shape_cast %2 : vector<1x32x128xf32> to vector<32x128xf32>
    %cst = arith.constant dense<0.000000e+00> : vector<1024x128xf32>
    %4 = tpu.matmul %1, %3, %cst {dimension_numbers = #tpu.dot_dimension_numbers<[1], [0], [0], [1], [0, 0, 1, 1], [], []>} : vector<1024x32xf32>, vector<32x128xf32>, vector<1024x128xf32> -> vector<1024x128xf32>
    %5 = math.tanh %4 : vector<1024x128xf32>
    %c0_5 = arith.constant 0 : index
    %c0_6 = arith.constant 0 : index
    %c0_7 = arith.constant 0 : index
    %6 = vector.load %arg4[%c0_5, %c0_6, %c0_7] : memref<1x1024x128xf32, #tpu.memory_space<vmem>>, vector<1x1024x128xf32>
    %7 = vector.shape_cast %6 : vector<1x1024x128xf32> to vector<1024x128xf32>
    %8 = vector.shape_cast %5 : vector<1024x128xf32> to vector<1x1024x128xf32>
    tpu.vector_store %arg4[%c0_5, %c0_6, %c0_7], %8 {strides = array<i32>} : memref<1x1024x128xf32, #tpu.memory_space<vmem>>, vector<1x1024x128xf32>,
    return
  }
  func.func @transform_0(%arg0: i32, %arg1: i32) -> (i32, i32, i32) {
    %c0_i32 = arith.constant 0 : i32
    %c0_i32_0 = arith.constant 0 : i32
    return %arg0, %arg1, %c0_i32 : i32, i32, i32
  }
  func.func @transform_1(%arg0: i32, %arg1: i32) -> (i32, i32, i32) {
    %c0_i32 = arith.constant 0 : i32
    %c0_i32_0 = arith.constant 0 : i32
    %c0_i32_1 = arith.constant 0 : i32
    return %arg0, %c0_i32, %c0_i32_0 : i32, i32, i32
  }
  func.func @transform_2(%arg0: i32, %arg1: i32) -> (i32, i32, i32) {
    %c0_i32 = arith.constant 0 : i32
    %c0_i32_0 = arith.constant 0 : i32
    return %arg0, %arg1, %c0_i32 : i32, i32, i32
  }
}

</mosaic_0001>

<bundles_post_ra>
// kernel: conv_generator_transpose.10
= control target key start
LH: loop header
LB: loop body
LE: loop exit
PB: predicated region body
PF: predicated region fallthrough
CT: control target
= control target key end

     0   :  { %s112_s0 = inlined_call_operand.vmem [shape: f32[32,128], index: 0, kind: input, shape index: {}]   ;;  %s113_s1 = inlined_call_operand.vmem [shape: f32[1,128], index: 1, kind: input, shape index: {}]   ;;  %s114_s2 = inlined_call_operand.vmem [shape: f32[1,128], index: 2, kind: input, shape index: {}]   ;;  %s115_s3 = inlined_call_operand.vmem [shape: f32[32,128], index: 3, kind: output, shape index: {}]  }
   0x1   :  { %v14_v0 = vld [vmem:[%s112_s0] sm:$0xff]  ;;  %v15_v4 = vld [vmem:[%s112_s0 + $0x8] sm:$0xff]  ;;  %v16_v5 = vld [vmem:[%s112_s0 + $0x10] sm:$0xff] }
   0x2   :  { %v60_v1 = vld [vmem:[%s113_s1] ss:$0 sm:$0xff]  ;;  %v17_v6 = vld [vmem:[%s112_s0 + $0x18] sm:$0xff] }
   0x3   :  { %v61_v2 = vld [vmem:[%s114_s2] ss:$0 sm:$0xff]  ;;  %v25_v3 = vmul.f32 %v60_v1, %v14_v0  ;;  %v26_v7 = vmul.f32 %v60_v1, %v15_v4  ;;  %v27_v8 = vmul.f32 %v60_v1, %v16_v5  ;;  %v28_v9 = vmul.f32 %v60_v1, %v17_v6 }
   0x5   :  { %v36_v10 = vadd.f32 %v61_v2, %v25_v3  ;;  %v37_v11 = vadd.f32 %v61_v2, %v26_v7  ;;  %v38_v12 = vadd.f32 %v61_v2, %v27_v8  ;;  %v39_v13 = vadd.f32 %v61_v2, %v28_v9 }
   0x7   :  { %vm40_vm0 = vcmp.gt.f32.partialorder %v36_v10, 0.0  ;;  %v44_v14 = vmul.f32 0.2, %v36_v10  ;;  %vm41_vm1 = vcmp.gt.f32.partialorder %v37_v11, 0.0  ;;  %v45_v15 = vmul.f32 0.2, %v37_v11 }
   0x8   :  { %vm42_vm2 = vcmp.gt.f32.partialorder %v38_v12, 0.0  ;;  %v46_v16 = vmul.f32 0.2, %v38_v12  ;;  %vm43_vm3 = vcmp.gt.f32.partialorder %v39_v13, 0.0  ;;  %v47_v18 = vmul.f32 0.2, %v39_v13 }
   0x9   :  { %v48_v17 = vsel %vm40_vm0, %v36_v10, %v44_v14  ;;  %v49_v19 = vsel %vm41_vm1, %v37_v11, %v45_v15 }
   0xa   :  { %52 = vst [vmem:[%s115_s3] sm:$0xff] %v48_v17  ;;  %v50_v20 = vsel %vm42_vm2, %v38_v12, %v46_v16  ;;  %53 = vst [vmem:[%s115_s3 + $0x8] sm:$0xff] %v49_v19  ;;  %v51_v21 = vsel %vm43_vm3, %v39_v13, %v47_v18 }
   0xb   :  { %54 = vst [vmem:[%s115_s3 + $0x10] sm:$0xff] %v50_v20  ;;  %55 = vst [vmem:[%s115_s3 + $0x18] sm:$0xff] %v51_v21 }

// kernel: conv_generator_transpose.9
= control target key start
LH: loop header
LB: loop body
LE: loop exit
PB: predicated region body
PF: predicated region fallthrough
CT: control target
= control target key end

     0   :  { %s555_s15 = smov 0   ;;  %s557_s16 = smov 0   ;;  %s609_s0 = inlined_call_operand.vmem [shape: f32[1,2,32], index: 0, kind: input, shape index: {}]   ;;  %s610_s1 = inlined_call_operand.vmem [shape: f32[16,32,128], index: 1, kind: input, shape index: {}]   ;;  %s611_s2 = inlined_call_operand.vmem [shape: f32[16,2,128], index: 2, kind: output, shape index: {0}]   ;;  %s612_s3 = inlined_call_operand.vmem [shape: f32[1,128], index: 3, kind: output, shape index: {1}]   ;;  %s613_s4 = inlined_call_operand.vmem [shape: f32[1,128], index: 4, kind: output, shape index: {2}]  }
   0x1   :  { %s559_s17 = smov 0  }
   0x2 LB: > { %s27_s18 = sadd.s32 1, %s520_s16  ;;  %p442_p0 = scmp.ge.s32.totalorder %s524_s17, 1  ;;  %s524_s17 = sphi %s559_s17, %s15_s17   ;;  %s520_s16 = sphi %s557_s16, %s615_s16   ;;  %s516_s15 = sphi %s555_s15, %s614_s15  }
   0x3   : > { %p29_p1 = scmp.ge.s32.totalorder %s27_s18, 16  ;;  %p180_p2 = scmp.lt.s32.totalorder %s524_s17, 17 }
   0x5   : > { %s617_s18 = smov (%p29_p1, %s27_s18), 0  ;;  %p181_p3 = pnand %p442_p0, %p180_p2 }
   0x6   : > { %p216_p4 = scmp.lt.s32.totalorder (!%p181_p3), %s516_s15, 15  ;;  %p228_p5 = scmp.eq.s32.totalorder (!%p181_p3), %s516_s15, 0 }
   0x7   : > { %184 = sbr.rel (%p181_p3) target bundleno = 261 (0x105), region = 28 }
   0xe   : > { %s619_s15 = smov (!%p216_p4, %s516_s15), 15  ;;  %233 = sbr.rel (!%p228_p5) target bundleno = 21 (0x15), region = 32 }
   0xf   : > { %s450_s19 = sshll.u32 %s619_s15, 5  ;;  %s445_s20 = sshll.u32 %s619_s15, 1  ;;  %v526_v0 = vmov (%p228_p5), 0.0  }
  0x10   : > { %s220_s23 = scalar_lea.vmem %s610_s1, %s450_s19  ;;  %s227_s26 = scalar_lea.vmem %s611_s2, %s445_s20  ;;  %234 = vst [vmem:[%s612_s3] sm:$0x1] (%p228_p5), %v526_v0  ;;  %235 = vst [vmem:[%s613_s4] sm:$0x1] (%p228_p5), %v526_v0 }
  0x15 PF: > { %v237_v1 = vld [vmem:[%s220_s23] sm:$0xff]  ;;  %v238_v2 = vld [vmem:[%s220_s23 + $0x8] sm:$0xff]  ;;  %v239_v3 = vld [vmem:[%s220_s23 + $0x10] sm:$0xff]  ;;  %v527_v4 = vmov 0.0|0.0   ;;  %vm528_vm0 = vmmov 0   ;;  %v529_v7 = vmov 0.0  }
  0x16   : > { %468 = vmatprep.subr.bf16.mxu0 %v527_v4  ;;  %v469_v5 = vpack.c.bf16 %v238_v2, %v237_v1  ;;  %v240_v6 = vld [vmem:[%s220_s23 + $0x18] sm:$0xff]  ;;  %465 = vmatprep.mubr.msk.f32.mxu0 %vm528_vm0, %v529_v7  ;;  %v236_v9 = vld [vmem:[%s609_s0] sm:$0x3]  ;;  %vm241_vm1 = vcmask 261120   ;;  %vm317_vm2 = vcmask 1041408  }
  0x17   : > { %v472_v8 = vpack.c.bf16 %v240_v6, %v239_v3  ;;  %v316_v24 = vld [vmem:[%s612_s3] sm:$0x1] }
  0x18   : > { %470 = vmatpush3.bf16.msra.mxu0 %v469_v5  ;;  %v327_v27 = vld [vmem:[%s613_s4] sm:$0x1] }
  0x19   : > { %471 = vmatprep.subr.bf16.mxu0 %v527_v4 }
  0x1c   : > { %473 = vmatpush3.bf16.msra.mxu0 %v472_v8 }
  0x1f   : > { %466 = vmatmul.mubr.msk.f32.vlgmr.msra.gmra.mrb[0].mxu0 %vm241_vm1, %v236_v9 }
  0xf2   : > { %v311_v10 = vpop.f32.mrb[0].mxu0 }
  0xf3   : > { %315 = vst [vmem:[%s227_s26] sm:$0x3] %v311_v10  ;;  %v318_v11 = vsel %vm317_vm2, %v311_v10, 0.0  ;;  %v328_v12 = vmul.f32 %v311_v10, %v311_v10  ;;  %v467_v13 = vpop.f32.mrb[1].mxu0 }
  0xf4   : > { %v319_v14 = vrot.slane %v318_v11, 4 }
  0xf5   : > { %v329_v15 = vsel %vm317_vm2, %v328_v12, 0.0 }
  0xf6   : > { %v320_v16 = vadd.f32 %v319_v14, %v318_v11  ;;  %v330_v17 = vrot.slane %v329_v15, 4 }
  0xf8   : > { %v321_v18 = vrot.slane %v320_v16, 2  ;;  %v331_v19 = vadd.f32 %v330_v17, %v329_v15 }
  0xfa   : > { %v322_v20 = vadd.f32 %v321_v18, %v320_v16  ;;  %v332_v21 = vrot.slane %v331_v19, 2 }
  0xfc   : > { %v323_v22 = vrot.slane %v322_v20, 1  ;;  %v333_v23 = vadd.f32 %v332_v21, %v331_v19 }
  0xfe   : > { %v324_v25 = vadd.f32 %v323_v22, %v322_v20  ;;  %v334_v26 = vrot.slane %v333_v23, 1 }
 0x100   : > { %v325_v28 = vadd.f32 %v324_v25, %v316_v24  ;;  %v335_v29 = vadd.f32 %v334_v26, %v333_v23 }
 0x102   : > { %326 = vst [vmem:[%s612_s3] sm:$0x1] %v325_v28  ;;  %v336_v30 = vadd.f32 %v335_v29, %v327_v27 }
 0x104   : > { %337 = vst [vmem:[%s613_s4] sm:$0x1] %v336_v30 }
 0x105 PF: > { %s15_s17 = sadd.s32 1, %s524_s17   ;;  %s614_s15 = smov %s520_s16 }
 0x106   : > { %p12_p6 = scmp.ge.s32.totalorder %s15_s17, 18   ;;  %s615_s16 = smov %s617_s18 }
 0x108   :  { %14 = sbr.rel (!%p12_p6) target bundleno = 2 (0x2), region = 81 }

// kernel: conv_generator_transpose.11
= control target key start
LH: loop header
LB: loop body
LE: loop exit
PB: predicated region body
PF: predicated region fallthrough
CT: control target
= control target key end

     0   :  { %s719_s15 = smov 0   ;;  %s721_s16 = smov 0   ;;  %s823_s0 = inlined_call_operand.vmem [shape: f32[4,32,256], index: 0, kind: input, shape index: {}]   ;;  %s824_s1 = inlined_call_operand.vmem [shape: f32[4,256,128], index: 1, kind: input, shape index: {}]   ;;  %s825_s2 = inlined_call_operand.vmem [shape: f32[4,32,128], index: 2, kind: output, shape index: {0}]   ;;  %s826_s3 = inlined_call_operand.vmem [shape: f32[1,128], index: 3, kind: output, shape index: {1}]   ;;  %s827_s4 = inlined_call_operand.vmem [shape: f32[1,128], index: 4, kind: output, shape index: {2}]  }
   0x1   :  { %s723_s17 = smov 0  }
   0x2 LB: > { %s27_s18 = sadd.s32 1, %s687_s16  ;;  %p538_p0 = scmp.ge.s32.totalorder %s691_s17, 1  ;;  %s691_s17 = sphi %s723_s17, %s15_s17   ;;  %s687_s16 = sphi %s721_s16, %s829_s16   ;;  %s683_s15 = sphi %s719_s15, %s828_s15  }
   0x3   : > { %p29_p1 = scmp.ge.s32.totalorder %s27_s18, 4  ;;  %p189_p2 = scmp.lt.s32.totalorder %s691_s17, 5 }
   0x5   : > { %s831_s18 = smov (%p29_p1, %s27_s18), 0  ;;  %p190_p3 = pnand %p538_p0, %p189_p2 }
   0x6   : > { %p230_p4 = scmp.lt.s32.totalorder (!%p190_p3), %s683_s15, 3  ;;  %p255_p5 = scmp.eq.s32.totalorder (!%p190_p3), %s683_s15, 0 }
   0x7   : > { %193 = sbr.rel (%p190_p3) target bundleno = 298 (0x12a), region = 28 }
   0xe   : > { %s833_s15 = smov (!%p230_p4, %s683_s15), 3  ;;  %260 = sbr.rel (!%p255_p5) target bundleno = 21 (0x15), region = 32 }
   0xf   : > { %s548_s19 = sshll.u32 %s833_s15, 6  ;;  %s549_s20 = sshll.u32 %s833_s15, 8  ;;  %v693_v0 = vmov (%p255_p5), 0.0  }
  0x10   : > { %s740_s23 = scalar_lea.vmem %s823_s0, %s548_s19  ;;  %s745_s26 = scalar_lea.vmem %s824_s1, %s549_s20  ;;  %261 = vst [vmem:[%s826_s3] sm:$0x1] (%p255_p5), %v693_v0  ;;  %262 = vst [vmem:[%s827_s4] sm:$0x1] (%p255_p5), %v693_v0 }
  0x11   : > { %s550_s27 = sshll.u32 %s833_s15, 5 }
  0x12   : > { %s750_s30 = scalar_lea.vmem %s825_s2, %s550_s27 }
  0x15 PF: > { %v287_v1 = vld [vmem:[%s745_s26 + $0x80] sm:$0xff]  ;;  %v288_v2 = vld [vmem:[%s745_s26 + $0x88] sm:$0xff]  ;;  %v289_v6 = vld [vmem:[%s745_s26 + $0x90] sm:$0xff] }
  0x16   : > { %v271_v3 = vld [vmem:[%s745_s26] sm:$0xff]  ;;  %v596_v4 = vpack.c.bf16 %v288_v2, %v287_v1  ;;  %v272_v5 = vld [vmem:[%s745_s26 + $0x8] sm:$0xff]  ;;  %v290_v7 = vld [vmem:[%s745_s26 + $0x98] sm:$0xff] }
  0x17   : > { %v598_v8 = vpack.c.bf16 %v272_v5, %v271_v3  ;;  %v600_v9 = vpack.c.bf16 %v290_v7, %v289_v6  ;;  %v273_v10 = vld [vmem:[%s745_s26 + $0x10] sm:$0xff]  ;;  %v274_v11 = vld [vmem:[%s745_s26 + $0x18] sm:$0xff]  ;;  %v291_v12 = vld [vmem:[%s745_s26 + $0xa0] sm:$0xff] }
  0x18   : > { %597 = vmatprep.subr.bf16.mxu0 %v596_v4  ;;  %628 = vmatprep.subr.bf16.mxu1 %v596_v4  ;;  %v292_v13 = vld [vmem:[%s745_s26 + $0xa8] sm:$0xff]  ;;  %v602_v14 = vpack.c.bf16 %v274_v11, %v273_v10  ;;  %v275_v16 = vld [vmem:[%s745_s26 + $0x20] sm:$0xff]  ;;  %v293_v18 = vld [vmem:[%s745_s26 + $0xb0] sm:$0xff] }
  0x19   : > { %599 = vmatpush3.bf16.msra.mxu0 %v598_v8  ;;  %636 = vmatpush3.bf16.msra.mxu1 %v598_v8  ;;  %v604_v15 = vpack.c.bf16 %v292_v13, %v291_v12  ;;  %v276_v17 = vld [vmem:[%s745_s26 + $0x28] sm:$0xff]  ;;  %v294_v19 = vld [vmem:[%s745_s26 + $0xb8] sm:$0xff]  ;;  %v277_v22 = vld [vmem:[%s745_s26 + $0x30] sm:$0xff] }
  0x1a   : > { %601 = vmatprep.subr.bf16.mxu0 %v600_v9  ;;  %629 = vmatprep.subr.bf16.mxu1 %v600_v9  ;;  %v606_v20 = vpack.c.bf16 %v276_v17, %v275_v16  ;;  %v608_v21 = vpack.c.bf16 %v294_v19, %v293_v18  ;;  %v278_v23 = vld [vmem:[%s745_s26 + $0x38] sm:$0xff]  ;;  %v295_v24 = vld [vmem:[%s745_s26 + $0xc0] sm:$0xff]  ;;  %v296_v25 = vld [vmem:[%s745_s26 + $0xc8] sm:$0xff] }
  0x1b   : > { %v264_v26 = vld [vmem:[%s740_s23 + $0x8] sm:$0xff]  ;;  %v610_v28 = vpack.c.bf16 %v278_v23, %v277_v22  ;;  %v612_v29 = vpack.c.bf16 %v296_v25, %v295_v24  ;;  %v279_v30 = vld [vmem:[%s745_s26 + $0x40] sm:$0xff]  ;;  %v297_v32 = vld [vmem:[%s745_s26 + $0xd0] sm:$0xff] }
  0x1c   : > { %367 = vmatprep.mubr.f32.mxu0 %v264_v26  ;;  %v268_v27 = vld [vmem:[%s740_s23 + $0x28] sm:$0xff]  ;;  %v298_v33 = vld [vmem:[%s745_s26 + $0xd8] sm:$0xff]  ;;  %v281_v36 = vld [vmem:[%s745_s26 + $0x50] sm:$0xff] }
  0x1d   : > { %603 = vmatpush3.bf16.msra.mxu0 %v602_v14  ;;  %637 = vmatpush3.bf16.msra.mxu1 %v602_v14  ;;  %v280_v31 = vld [vmem:[%s745_s26 + $0x48] sm:$0xff]  ;;  %v616_v35 = vpack.c.bf16 %v298_v33, %v297_v32  ;;  %v282_v37 = vld [vmem:[%s745_s26 + $0x58] sm:$0xff]  ;;  %v299_v38 = vld [vmem:[%s745_s26 + $0xe0] sm:$0xff] }
  0x1e   : > { %605 = vmatprep.subr.bf16.mxu0 %v604_v15  ;;  %630 = vmatprep.subr.bf16.mxu1 %v604_v15  ;;  %v614_v34 = vpack.c.bf16 %v280_v31, %v279_v30  ;;  %v300_v39 = vld [vmem:[%s745_s26 + $0xe8] sm:$0xff]  ;;  %v618_v40 = vpack.c.bf16 %v282_v37, %v281_v36  ;;  %v283_v42 = vld [vmem:[%s745_s26 + $0x60] sm:$0xff]  ;;  %v301_v44 = vld [vmem:[%s745_s26 + $0xf0] sm:$0xff] }
  0x1f   : > { %377 = vmatprep.mubr.f32.mxu1 %v268_v27  ;;  %v620_v41 = vpack.c.bf16 %v300_v39, %v299_v38  ;;  %v284_v43 = vld [vmem:[%s745_s26 + $0x68] sm:$0xff]  ;;  %v302_v45 = vld [vmem:[%s745_s26 + $0xf8] sm:$0xff]  ;;  %v285_v48 = vld [vmem:[%s745_s26 + $0x70] sm:$0xff] }
  0x20   : > { %v622_v46 = vpack.c.bf16 %v284_v43, %v283_v42  ;;  %v624_v47 = vpack.c.bf16 %v302_v45, %v301_v44  ;;  %v286_v49 = vld [vmem:[%s745_s26 + $0x78] sm:$0xff]  ;;  %v263_v51 = vld [vmem:[%s740_s23] sm:$0xff]  ;;  %v265_v55 = vld [vmem:[%s740_s23 + $0x10] sm:$0xff] }
  0x21   : > { %607 = vmatpush3.bf16.msra.mxu0 %v606_v20  ;;  %638 = vmatpush3.bf16.msra.mxu1 %v606_v20  ;;  %v626_v50 = vpack.c.bf16 %v286_v49, %v285_v48  ;;  %v267_v52 = vld [vmem:[%s740_s23 + $0x20] sm:$0xff]  ;;  %v266_v53 = vld [vmem:[%s740_s23 + $0x18] sm:$0xff]  ;;  %v269_v56 = vld [vmem:[%s740_s23 + $0x30] sm:$0xff] }
  0x22   : > { %609 = vmatprep.subr.bf16.mxu0 %v608_v21  ;;  %631 = vmatprep.subr.bf16.mxu1 %v608_v21  ;;  %v270_v54 = vld [vmem:[%s740_s23 + $0x38] sm:$0xff]  ;;  %v392_v24 = vld [vmem:[%s826_s3] sm:$0x1] }
  0x23   : > { %v404_v27 = vld [vmem:[%s827_s4] sm:$0x1] }
  0x25   : > { %611 = vmatpush3.bf16.msra.mxu0 %v610_v28  ;;  %639 = vmatpush3.bf16.msra.mxu1 %v610_v28 }
  0x26   : > { %613 = vmatprep.subr.bf16.mxu0 %v612_v29  ;;  %632 = vmatprep.subr.bf16.mxu1 %v612_v29 }
  0x29   : > { %615 = vmatpush3.bf16.msra.mxu0 %v614_v34  ;;  %640 = vmatpush3.bf16.msra.mxu1 %v614_v34 }
  0x2a   : > { %617 = vmatprep.subr.bf16.mxu0 %v616_v35  ;;  %633 = vmatprep.subr.bf16.mxu1 %v616_v35 }
  0x2d   : > { %619 = vmatpush3.bf16.msra.mxu0 %v618_v40  ;;  %641 = vmatpush3.bf16.msra.mxu1 %v618_v40 }
  0x2e   : > { %621 = vmatprep.subr.bf16.mxu0 %v620_v41  ;;  %634 = vmatprep.subr.bf16.mxu1 %v620_v41 }
  0x31   : > { %623 = vmatpush3.bf16.msra.mxu0 %v622_v46  ;;  %642 = vmatpush3.bf16.msra.mxu1 %v622_v46 }
  0x32   : > { %625 = vmatprep.subr.bf16.mxu0 %v624_v47  ;;  %635 = vmatprep.subr.bf16.mxu1 %v624_v47 }
  0x35   : > { %627 = vmatpush3.bf16.msra.mxu0 %v626_v50  ;;  %643 = vmatpush3.bf16.msra.mxu1 %v626_v50 }
  0x38   : > { %368 = vmatmul.mubr.f32.vlgmr.msra.gmra.mrb[0].mxu0 %v263_v51  ;;  %378 = vmatmul.mubr.f32.vlgmr.msra.gmra.mrb[0].mxu1 %v267_v52 }
  0x39   : > { %372 = vmatprep.mubr.f32.mxu0 %v266_v53  ;;  %382 = vmatprep.mubr.f32.mxu1 %v270_v54 }
  0x3c   : > { %373 = vmatmul.mubr.f32.gmra.mrb[2].mxu0 %v265_v55  ;;  %383 = vmatmul.mubr.f32.gmra.mrb[2].mxu1 %v269_v56 }
 0x10b   : > { %v584_v57 = vpop.f32.mrb[0].mxu0  ;;  %v590_v58 = vpop.f32.mrb[0].mxu1 }
 0x10c   : > { %v585_v59 = vpop.f32.mrb[1].mxu0  ;;  %v591_v60 = vpop.f32.mrb[1].mxu1 }
 0x10d   : > { %v586_v61 = vadd.f32 %v585_v59, %v584_v57  ;;  %v592_v62 = vadd.f32 %v591_v60, %v590_v58 }
 0x10f   : > { %388 = vst [vmem:[%s750_s30] sm:$0xff] %v586_v61  ;;  %v587_v63 = vpop.f32.mrb[2].mxu0  ;;  %390 = vst [vmem:[%s750_s30 + $0x10] sm:$0xff] %v592_v62  ;;  %v593_v0 = vpop.f32.mrb[2].mxu1  ;;  %v405_v5 = vmul.f32 %v586_v61, %v586_v61  ;;  %v407_v8 = vmul.f32 %v592_v62, %v592_v62 }
 0x110   : > { %v588_v1 = vpop.f32.mrb[3].mxu0  ;;  %v594_v2 = vpop.f32.mrb[3].mxu1 }
 0x111   : > { %v589_v3 = vadd.f32 %v588_v1, %v587_v63  ;;  %v595_v4 = vadd.f32 %v594_v2, %v593_v0 }
 0x113   : > { %389 = vst [vmem:[%s750_s30 + $0x8] sm:$0xff] %v589_v3  ;;  %v393_v6 = vadd.f32 %v589_v3, %v586_v61  ;;  %v406_v7 = vmul.f32 %v589_v3, %v589_v3  ;;  %391 = vst [vmem:[%s750_s30 + $0x18] sm:$0xff] %v595_v4  ;;  %v408_v11 = vmul.f32 %v595_v4, %v595_v4 }
 0x115   : > { %v409_v9 = vadd.f32 %v406_v7, %v405_v5  ;;  %v394_v10 = vadd.f32 %v592_v62, %v393_v6 }
 0x117   : > { %v395_v12 = vadd.f32 %v595_v4, %v394_v10  ;;  %v410_v13 = vadd.f32 %v409_v9, %v407_v8 }
 0x119   : > { %v396_v14 = vrot.slane %v395_v12, 4  ;;  %v411_v15 = vadd.f32 %v410_v13, %v408_v11 }
 0x11b   : > { %v397_v16 = vadd.f32 %v396_v14, %v395_v12  ;;  %v412_v17 = vrot.slane %v411_v15, 4 }
 0x11d   : > { %v398_v18 = vrot.slane %v397_v16, 2  ;;  %v413_v19 = vadd.f32 %v412_v17, %v411_v15 }
 0x11f   : > { %v399_v20 = vadd.f32 %v398_v18, %v397_v16  ;;  %v414_v21 = vrot.slane %v413_v19, 2 }
 0x121   : > { %v400_v22 = vrot.slane %v399_v20, 1  ;;  %v415_v23 = vadd.f32 %v414_v21, %v413_v19 }
 0x123   : > { %v401_v25 = vadd.f32 %v400_v22, %v399_v20  ;;  %v416_v26 = vrot.slane %v415_v23, 1 }
 0x125   : > { %v402_v28 = vadd.f32 %v401_v25, %v392_v24  ;;  %v417_v29 = vadd.f32 %v416_v26, %v415_v23 }
 0x127   : > { %403 = vst [vmem:[%s826_s3] sm:$0x1] %v402_v28  ;;  %v418_v30 = vadd.f32 %v417_v29, %v404_v27 }
 0x129   : > { %419 = vst [vmem:[%s827_s4] sm:$0x1] %v418_v30 }
 0x12a PF: > { %s15_s17 = sadd.s32 1, %s691_s17   ;;  %s828_s15 = smov %s687_s16 }
 0x12b   : > { %p12_p6 = scmp.ge.s32.totalorder %s15_s17, 6   ;;  %s829_s16 = smov %s831_s18 }
 0x12d   :  { %14 = sbr.rel (!%p12_p6) target bundleno = 2 (0x2), region = 81 }

// kernel: conv_generator_transpose.12
= control target key start
LH: loop header
LB: loop body
LE: loop exit
PB: predicated region body
PF: predicated region fallthrough
CT: control target
= control target key end

     0   :  { %s305_s0 = inlined_call_operand.vmem [shape: f32[128,128], index: 0, kind: input, shape index: {}]   ;;  %s306_s1 = inlined_call_operand.vmem [shape: f32[1,128], index: 1, kind: input, shape index: {}]   ;;  %s307_s2 = inlined_call_operand.vmem [shape: f32[1,128], index: 2, kind: input, shape index: {}]   ;;  %s308_s3 = inlined_call_operand.vmem [shape: f32[128,128], index: 3, kind: output, shape index: {}]  }
   0x1   :  { %v14_v0 = vld [vmem:[%s305_s0] sm:$0xff]  ;;  %v15_v4 = vld [vmem:[%s305_s0 + $0x8] sm:$0xff]  ;;  %v16_v5 = vld [vmem:[%s305_s0 + $0x10] sm:$0xff] }
   0x2   :  { %v172_v1 = vld [vmem:[%s306_s1] ss:$0 sm:$0xff]  ;;  %v17_v6 = vld [vmem:[%s305_s0 + $0x18] sm:$0xff]  ;;  %v19_v11 = vld [vmem:[%s305_s0 + $0x28] sm:$0xff] }
   0x3   :  { %v177_v2 = vld [vmem:[%s307_s2] ss:$0 sm:$0xff]  ;;  %v37_v3 = vmul.f32 %v172_v1, %v14_v0  ;;  %v38_v7 = vmul.f32 %v172_v1, %v15_v4  ;;  %v39_v8 = vmul.f32 %v172_v1, %v16_v5  ;;  %v40_v9 = vmul.f32 %v172_v1, %v17_v6  ;;  %v20_v12 = vld [vmem:[%s305_s0 + $0x30] sm:$0xff]  ;;  %v21_v17 = vld [vmem:[%s305_s0 + $0x38] sm:$0xff] }
   0x4   :  { %v18_v10 = vld [vmem:[%s305_s0 + $0x20] sm:$0xff]  ;;  %v42_v15 = vmul.f32 %v172_v1, %v19_v11  ;;  %v43_v16 = vmul.f32 %v172_v1, %v20_v12  ;;  %v44_v21 = vmul.f32 %v172_v1, %v21_v17  ;;  %v23_v30 = vld [vmem:[%s305_s0 + $0x48] sm:$0xff]  ;;  %v24_v31 = vld [vmem:[%s305_s0 + $0x50] sm:$0xff] }
   0x5   :  { %v60_v13 = vadd.f32 %v177_v2, %v37_v3  ;;  %v41_v14 = vmul.f32 %v172_v1, %v18_v10  ;;  %v61_v18 = vadd.f32 %v177_v2, %v38_v7  ;;  %v62_v19 = vadd.f32 %v177_v2, %v39_v8  ;;  %v22_v25 = vld [vmem:[%s305_s0 + $0x40] sm:$0xff]  ;;  %v25_v43 = vld [vmem:[%s305_s0 + $0x58] sm:$0xff]  ;;  %v27_v45 = vld [vmem:[%s305_s0 + $0x68] sm:$0xff] }
   0x6   :  { %v63_v20 = vadd.f32 %v177_v2, %v40_v9  ;;  %v65_v24 = vadd.f32 %v177_v2, %v42_v15  ;;  %v66_v37 = vadd.f32 %v177_v2, %v43_v16  ;;  %v67_v38 = vadd.f32 %v177_v2, %v44_v21  ;;  %v26_v44 = vld [vmem:[%s305_s0 + $0x60] sm:$0xff]  ;;  %v28_v56 = vld [vmem:[%s305_s0 + $0x70] sm:$0xff]  ;;  %v29_v4 = vld [vmem:[%s305_s0 + $0x78] sm:$0xff] }
   0x7   :  { %vm76_vm0 = vcmp.gt.f32.partialorder %v60_v13, 0.0  ;;  %v92_v22 = vmul.f32 0.2, %v60_v13  ;;  %v64_v23 = vadd.f32 %v177_v2, %v41_v14  ;;  %vm77_vm1 = vcmp.gt.f32.partialorder %v61_v18, 0.0 }
   0x8   :  { %v93_v26 = vmul.f32 0.2, %v61_v18  ;;  %vm78_vm2 = vcmp.gt.f32.partialorder %v62_v19, 0.0  ;;  %v94_v27 = vmul.f32 0.2, %v62_v19  ;;  %vm79_vm3 = vcmp.gt.f32.partialorder %v63_v20, 0.0 }
   0x9   :  { %v108_v28 = vsel %vm76_vm0, %v60_v13, %v92_v22  ;;  %v95_v29 = vmul.f32 0.2, %v63_v20  ;;  %vm80_vm4 = vcmp.gt.f32.partialorder %v64_v23, 0.0  ;;  %v96_v34 = vmul.f32 0.2, %v64_v23 }
   0xa   :  { %124 = vst [vmem:[%s308_s3] sm:$0xff] %v108_v28  ;;  %v109_v32 = vsel %vm77_vm1, %v61_v18, %v93_v26  ;;  %v110_v33 = vsel %vm78_vm2, %v62_v19, %v94_v27  ;;  %vm81_vm5 = vcmp.gt.f32.partialorder %v65_v24, 0.0  ;;  %v97_v36 = vmul.f32 0.2, %v65_v24 }
   0xb   :  { %125 = vst [vmem:[%s308_s3 + $0x8] sm:$0xff] %v109_v32  ;;  %126 = vst [vmem:[%s308_s3 + $0x10] sm:$0xff] %v110_v33  ;;  %v111_v35 = vsel %vm79_vm3, %v63_v20, %v95_v29  ;;  %v112_v39 = vsel %vm80_vm4, %v64_v23, %v96_v34  ;;  %v45_v40 = vmul.f32 %v172_v1, %v22_v25  ;;  %vm82_vm6 = vcmp.gt.f32.partialorder %v66_v37, 0.0 }
   0xc   :  { %127 = vst [vmem:[%s308_s3 + $0x18] sm:$0xff] %v111_v35  ;;  %v46_v41 = vmul.f32 %v172_v1, %v23_v30  ;;  %v47_v42 = vmul.f32 %v172_v1, %v24_v31  ;;  %128 = vst [vmem:[%s308_s3 + $0x20] sm:$0xff] %v112_v39  ;;  %v113_v46 = vsel %vm81_vm5, %v65_v24, %v97_v36  ;;  %v98_v47 = vmul.f32 0.2, %v66_v37 }
   0xd   :  { %vm83_vm7 = vcmp.gt.f32.partialorder %v67_v38, 0.0  ;;  %129 = vst [vmem:[%s308_s3 + $0x28] sm:$0xff] %v113_v46  ;;  %v99_v48 = vmul.f32 0.2, %v67_v38  ;;  %v68_v49 = vadd.f32 %v177_v2, %v45_v40  ;;  %v48_v53 = vmul.f32 %v172_v1, %v25_v43 }
   0xe   :  { %v69_v50 = vadd.f32 %v177_v2, %v46_v41  ;;  %v70_v51 = vadd.f32 %v177_v2, %v47_v42  ;;  %v114_v52 = vsel %vm82_vm6, %v66_v37, %v98_v47  ;;  %v49_v54 = vmul.f32 %v172_v1, %v26_v44 }
   0xf   :  { %v50_v55 = vmul.f32 %v172_v1, %v27_v45  ;;  %130 = vst [vmem:[%s308_s3 + $0x30] sm:$0xff] %v114_v52  ;;  %v115_v57 = vsel %vm83_vm7, %v67_v38, %v99_v48  ;;  %vm84_vm8 = vcmp.gt.f32.partialorder %v68_v49, 0.0  ;;  %v100_v58 = vmul.f32 0.2, %v68_v49 }
  0x10   :  { %vm85_vm9 = vcmp.gt.f32.partialorder %v69_v50, 0.0  ;;  %131 = vst [vmem:[%s308_s3 + $0x38] sm:$0xff] %v115_v57  ;;  %v101_v59 = vmul.f32 0.2, %v69_v50  ;;  %vm86_vm10 = vcmp.gt.f32.partialorder %v70_v51, 0.0  ;;  %v71_v61 = vadd.f32 %v177_v2, %v48_v53 }
  0x11   :  { %v102_v60 = vmul.f32 0.2, %v70_v51  ;;  %v116_v62 = vsel %vm84_vm8, %v68_v49, %v100_v58  ;;  %v72_v63 = vadd.f32 %v177_v2, %v49_v54  ;;  %v73_v0 = vadd.f32 %v177_v2, %v50_v55 }
  0x12   :  { %v51_v3 = vmul.f32 %v172_v1, %v28_v56  ;;  %132 = vst [vmem:[%s308_s3 + $0x40] sm:$0xff] %v116_v62  ;;  %v117_v5 = vsel %vm85_vm9, %v69_v50, %v101_v59  ;;  %vm87_vm11 = vcmp.gt.f32.partialorder %v71_v61, 0.0  ;;  %v103_v7 = vmul.f32 0.2, %v71_v61 }
  0x13   :  { %v118_v6 = vsel %vm86_vm10, %v70_v51, %v102_v60  ;;  %133 = vst [vmem:[%s308_s3 + $0x48] sm:$0xff] %v117_v5  ;;  %vm88_vm12 = vcmp.gt.f32.partialorder %v72_v63, 0.0  ;;  %v104_v8 = vmul.f32 0.2, %v72_v63  ;;  %vm89_vm13 = vcmp.gt.f32.partialorder %v73_v0, 0.0 }
  0x14   :  { %134 = vst [vmem:[%s308_s3 + $0x50] sm:$0xff] %v118_v6  ;;  %v105_v9 = vmul.f32 0.2, %v73_v0  ;;  %v119_v10 = vsel %vm87_vm11, %v71_v61, %v103_v7  ;;  %v74_v11 = vadd.f32 %v177_v2, %v51_v3  ;;  %v52_v12 = vmul.f32 %v172_v1, %v29_v4 }
  0x15   :  { %135 = vst [vmem:[%s308_s3 + $0x58] sm:$0xff] %v119_v10  ;;  %v120_v13 = vsel %vm88_vm12, %v72_v63, %v104_v8 }
  0x16   :  { %v121_v14 = vsel %vm89_vm13, %v73_v0, %v105_v9  ;;  %136 = vst [vmem:[%s308_s3 + $0x60] sm:$0xff] %v120_v13  ;;  %vm90_vm14 = vcmp.gt.f32.partialorder %v74_v11, 0.0  ;;  %v106_v15 = vmul.f32 0.2, %v74_v11  ;;  %v75_v16 = vadd.f32 %v177_v2, %v52_v12 }
  0x17   :  { %137 = vst [vmem:[%s308_s3 + $0x68] sm:$0xff] %v121_v14 }
  0x18   :  { %v122_v17 = vsel %vm90_vm14, %v74_v11, %v106_v15  ;;  %vm91_vm15 = vcmp.gt.f32.partialorder %v75_v16, 0.0  ;;  %v107_v1 = vmul.f32 0.2, %v75_v16 }
  0x19   :  { %138 = vst [vmem:[%s308_s3 + $0x70] sm:$0xff] %v122_v17 }
  0x1a   :  { %v123_v18 = vsel %vm91_vm15, %v75_v16, %v107_v1 }
  0x1b   :  { %139 = vst [vmem:[%s308_s3 + $0x78] sm:$0xff] %v123_v18 }

// kernel: conv_generator_transpose.13
= control target key start
LH: loop header
LB: loop body
LE: loop exit
PB: predicated region body
PF: predicated region fallthrough
CT: control target
= control target key end

     0   :  { %s857_s15 = smov 0   ;;  %s859_s16 = smov 0   ;;  %s965_s0 = inlined_call_operand.vmem [shape: f32[4,128,128], index: 0, kind: input, shape index: {}]   ;;  %s966_s1 = inlined_call_operand.vmem [shape: f32[4,128,128], index: 1, kind: input, shape index: {}]   ;;  %s967_s2 = inlined_call_operand.vmem [shape: f32[4,128,128], index: 2, kind: output, shape index: {0}]   ;;  %s968_s3 = inlined_call_operand.vmem [shape: f32[1,128], index: 3, kind: output, shape index: {1}]   ;;  %s969_s4 = inlined_call_operand.vmem [shape: f32[1,128], index: 4, kind: output, shape index: {2}]  }
   0x1   :  { %s861_s17 = smov 0  }
   0x2 LB: > { %s27_s18 = sadd.s32 1, %s825_s16  ;;  %p632_p0 = scmp.ge.s32.totalorder %s829_s17, 1  ;;  %s829_s17 = sphi %s861_s17, %s15_s17   ;;  %s825_s16 = sphi %s859_s16, %s971_s16   ;;  %s821_s15 = sphi %s857_s15, %s970_s15  }
   0x3   : > { %p29_p1 = scmp.ge.s32.totalorder %s27_s18, 4  ;;  %p188_p2 = scmp.lt.s32.totalorder %s829_s17, 5 }
   0x5   : > { %s973_s18 = smov (%p29_p1, %s27_s18), 0  ;;  %p189_p3 = pnand %p632_p0, %p188_p2 }
   0x6   : > { %p228_p4 = scmp.lt.s32.totalorder (!%p189_p3), %s821_s15, 3  ;;  %p252_p5 = scmp.eq.s32.totalorder (!%p189_p3), %s821_s15, 0 }
   0x7   : > { %192 = sbr.rel (%p189_p3) target bundleno = 318 (0x13e), region = 28 }
   0xe   : > { %s975_s15 = smov (!%p228_p4, %s821_s15), 3  ;;  %257 = sbr.rel (!%p252_p5) target bundleno = 21 (0x15), region = 32 }
   0xf   : > { %s642_s19 = sshll.u32 %s975_s15, 7  ;;  %v831_v0 = vmov (%p252_p5), 0.0  }
  0x10   : > { %s878_s22 = scalar_lea.vmem %s965_s0, %s642_s19  ;;  %s883_s25 = scalar_lea.vmem %s966_s1, %s642_s19  ;;  %258 = vst [vmem:[%s968_s3] sm:$0x1] (%p252_p5), %v831_v0  ;;  %259 = vst [vmem:[%s969_s4] sm:$0x1] (%p252_p5), %v831_v0 }
  0x11   : > { %s888_s28 = scalar_lea.vmem %s967_s2, %s642_s19 }
  0x15 PF: > { %v276_v1 = vld [vmem:[%s883_s25] sm:$0xff]  ;;  %v277_v2 = vld [vmem:[%s883_s25 + $0x8] sm:$0xff]  ;;  %v278_v3 = vld [vmem:[%s883_s25 + $0x10] sm:$0xff] }
  0x16   : > { %v734_v4 = vpack.c.bf16 %v277_v2, %v276_v1  ;;  %v279_v5 = vld [vmem:[%s883_s25 + $0x18] sm:$0xff]  ;;  %v280_v7 = vld [vmem:[%s883_s25 + $0x20] sm:$0xff]  ;;  %v281_v8 = vld [vmem:[%s883_s25 + $0x28] sm:$0xff] }
  0x17   : > { %v738_v6 = vpack.c.bf16 %v279_v5, %v278_v3  ;;  %v742_v9 = vpack.c.bf16 %v281_v8, %v280_v7  ;;  %v260_v10 = vld [vmem:[%s878_s22] sm:$0xff]  ;;  %v282_v11 = vld [vmem:[%s883_s25 + $0x30] sm:$0xff]  ;;  %v283_v12 = vld [vmem:[%s883_s25 + $0x38] sm:$0xff] }
  0x18   : > { %735 = vmatprep.subr.bf16.mxu0 %v734_v4  ;;  %766 = vmatprep.subr.bf16.mxu1 %v734_v4  ;;  %v268_v13 = vld [vmem:[%s878_s22 + $0x40] sm:$0xff]  ;;  %v746_v14 = vpack.c.bf16 %v283_v12, %v282_v11  ;;  %v285_v16 = vld [vmem:[%s883_s25 + $0x48] sm:$0xff]  ;;  %v286_v18 = vld [vmem:[%s883_s25 + $0x50] sm:$0xff] }
  0x19   : > { %737 = vmatpush3.bf16.msra.mxu0 %v734_v4  ;;  %774 = vmatpush3.bf16.msra.mxu1 %v734_v4  ;;  %v284_v15 = vld [vmem:[%s883_s25 + $0x40] sm:$0xff]  ;;  %v287_v19 = vld [vmem:[%s883_s25 + $0x58] sm:$0xff]  ;;  %v289_v22 = vld [vmem:[%s883_s25 + $0x68] sm:$0xff] }
  0x1a   : > { %739 = vmatprep.subr.bf16.mxu0 %v738_v6  ;;  %767 = vmatprep.subr.bf16.mxu1 %v738_v6  ;;  %v750_v17 = vpack.c.bf16 %v285_v16, %v284_v15  ;;  %v754_v20 = vpack.c.bf16 %v287_v19, %v286_v18  ;;  %v288_v21 = vld [vmem:[%s883_s25 + $0x60] sm:$0xff]  ;;  %v290_v24 = vld [vmem:[%s883_s25 + $0x70] sm:$0xff]  ;;  %v291_v25 = vld [vmem:[%s883_s25 + $0x78] sm:$0xff] }
  0x1b   : > { %710 = vmatprep.mubr.f32.mxu0 %v260_v10  ;;  %722 = vmatprep.mubr.f32.mxu1 %v268_v13  ;;  %v758_v23 = vpack.c.bf16 %v289_v22, %v288_v21  ;;  %v762_v26 = vpack.c.bf16 %v291_v25, %v290_v24  ;;  %v261_v27 = vld [vmem:[%s878_s22 + $0x8] sm:$0xff]  ;;  %v262_v29 = vld [vmem:[%s878_s22 + $0x10] sm:$0xff]  ;;  %v263_v31 = vld [vmem:[%s878_s22 + $0x18] sm:$0xff] }
  0x1c   : > { %v269_v28 = vld [vmem:[%s878_s22 + $0x48] sm:$0xff]  ;;  %v270_v30 = vld [vmem:[%s878_s22 + $0x50] sm:$0xff]  ;;  %v271_v32 = vld [vmem:[%s878_s22 + $0x58] sm:$0xff] }
  0x1d   : > { %741 = vmatpush3.bf16.msra.mxu0 %v738_v6  ;;  %775 = vmatpush3.bf16.msra.mxu1 %v738_v6  ;;  %v264_v33 = vld [vmem:[%s878_s22 + $0x20] sm:$0xff]  ;;  %v265_v35 = vld [vmem:[%s878_s22 + $0x28] sm:$0xff]  ;;  %v266_v37 = vld [vmem:[%s878_s22 + $0x30] sm:$0xff] }
  0x1e   : > { %743 = vmatprep.subr.bf16.mxu0 %v742_v9  ;;  %768 = vmatprep.subr.bf16.mxu1 %v742_v9  ;;  %v272_v34 = vld [vmem:[%s878_s22 + $0x60] sm:$0xff]  ;;  %v273_v36 = vld [vmem:[%s878_s22 + $0x68] sm:$0xff]  ;;  %v274_v38 = vld [vmem:[%s878_s22 + $0x70] sm:$0xff] }
  0x1f   : > { %v267_v39 = vld [vmem:[%s878_s22 + $0x38] sm:$0xff] }
  0x20   : > { %v275_v40 = vld [vmem:[%s878_s22 + $0x78] sm:$0xff] }
  0x21   : > { %745 = vmatpush3.bf16.msra.mxu0 %v742_v9  ;;  %776 = vmatpush3.bf16.msra.mxu1 %v742_v9 }
  0x22   : > { %747 = vmatprep.subr.bf16.mxu0 %v746_v14  ;;  %769 = vmatprep.subr.bf16.mxu1 %v746_v14 }
  0x25   : > { %749 = vmatpush3.bf16.msra.mxu0 %v746_v14  ;;  %777 = vmatpush3.bf16.msra.mxu1 %v746_v14 }
  0x26   : > { %751 = vmatprep.subr.bf16.mxu0 %v750_v17  ;;  %770 = vmatprep.subr.bf16.mxu1 %v750_v17 }
  0x29   : > { %753 = vmatpush3.bf16.msra.mxu0 %v750_v17  ;;  %778 = vmatpush3.bf16.msra.mxu1 %v750_v17 }
  0x2a   : > { %755 = vmatprep.subr.bf16.mxu0 %v754_v20  ;;  %771 = vmatprep.subr.bf16.mxu1 %v754_v20 }
  0x2d   : > { %757 = vmatpush3.bf16.msra.mxu0 %v754_v20  ;;  %779 = vmatpush3.bf16.msra.mxu1 %v754_v20 }
  0x2e   : > { %759 = vmatprep.subr.bf16.mxu0 %v758_v23  ;;  %772 = vmatprep.subr.bf16.mxu1 %v758_v23 }
  0x31   : > { %761 = vmatpush3.bf16.msra.mxu0 %v758_v23  ;;  %780 = vmatpush3.bf16.msra.mxu1 %v758_v23 }
  0x32   : > { %763 = vmatprep.subr.bf16.mxu0 %v762_v26  ;;  %773 = vmatprep.subr.bf16.mxu1 %v762_v26 }
  0x35   : > { %765 = vmatpush3.bf16.msra.mxu0 %v762_v26  ;;  %781 = vmatpush3.bf16.msra.mxu1 %v762_v26 }
  0x38   : > { %711 = vmatmul.mubr.f32.vlgmr.msra.gmra.mrb[0].mxu0 %v261_v27  ;;  %723 = vmatmul.mubr.f32.vlgmr.msra.gmra.mrb[0].mxu1 %v269_v28 }
  0x39   : > { %713 = vmatprep.mubr.f32.mxu0 %v262_v29  ;;  %725 = vmatprep.mubr.f32.mxu1 %v270_v30 }
  0x3c   : > { %714 = vmatmul.mubr.f32.gmra.mrb[2].mxu0 %v263_v31  ;;  %726 = vmatmul.mubr.f32.gmra.mrb[2].mxu1 %v271_v32 }
  0x3d   : > { %716 = vmatprep.mubr.f32.mxu0 %v264_v33  ;;  %728 = vmatprep.mubr.f32.mxu1 %v272_v34 }
  0x40   : > { %717 = vmatmul.mubr.f32.gmra.mrb[4].mxu0 %v265_v35  ;;  %729 = vmatmul.mubr.f32.gmra.mrb[4].mxu1 %v273_v36 }
  0x41   : > { %719 = vmatprep.mubr.f32.mxu0 %v266_v37  ;;  %731 = vmatprep.mubr.f32.mxu1 %v274_v38 }
  0x44   : > { %720 = vmatmul.mubr.f32.gmra.mrb[6].mxu0 %v267_v39  ;;  %732 = vmatmul.mubr.f32.gmra.mrb[6].mxu1 %v275_v40 }
 0x10b   : > { %v712_v41 = vpop.f32.mrb[0].mxu0  ;;  %v724_v42 = vpop.f32.mrb[0].mxu1 }
 0x10c   : > { %438 = vst [vmem:[%s888_s28 + $0x8] sm:$0xff] %v712_v41  ;;  %v479_v43 = vmul.f32 %v712_v41, %v712_v41  ;;  %v358_v44 = vpop.f32.mrb[1].mxu0  ;;  %446 = vst [vmem:[%s888_s28 + $0x48] sm:$0xff] %v724_v42  ;;  %v398_v45 = vpop.f32.mrb[1].mxu1  ;;  %v487_v17 = vmul.f32 %v724_v42, %v724_v42 }
 0x10d   : > { %437 = vst [vmem:[%s888_s28] sm:$0xff] %v358_v44  ;;  %v454_v46 = vadd.f32 %v712_v41, %v358_v44  ;;  %v478_v47 = vmul.f32 %v358_v44, %v358_v44  ;;  %445 = vst [vmem:[%s888_s28 + $0x40] sm:$0xff] %v398_v45  ;;  %v486_v14 = vmul.f32 %v398_v45, %v398_v45 }
 0x10f   : > { %v494_v48 = vadd.f32 %v479_v43, %v478_v47  ;;  %v715_v49 = vpop.f32.mrb[2].mxu0  ;;  %v727_v50 = vpop.f32.mrb[2].mxu1 }
 0x110   : > { %440 = vst [vmem:[%s888_s28 + $0x18] sm:$0xff] %v715_v49  ;;  %v368_v51 = vpop.f32.mrb[3].mxu0  ;;  %448 = vst [vmem:[%s888_s28 + $0x58] sm:$0xff] %v727_v50  ;;  %v408_v52 = vpop.f32.mrb[3].mxu1  ;;  %v481_v55 = vmul.f32 %v715_v49, %v715_v49  ;;  %v489_v23 = vmul.f32 %v727_v50, %v727_v50 }
 0x111   : > { %439 = vst [vmem:[%s888_s28 + $0x10] sm:$0xff] %v368_v51  ;;  %v455_v53 = vadd.f32 %v454_v46, %v368_v51  ;;  %v480_v54 = vmul.f32 %v368_v51, %v368_v51  ;;  %447 = vst [vmem:[%s888_s28 + $0x50] sm:$0xff] %v408_v52  ;;  %v488_v20 = vmul.f32 %v408_v52, %v408_v52  ;;  %v477_v51 = vld [vmem:[%s969_s4] sm:$0x1] }
 0x113   : > { %v495_v56 = vadd.f32 %v494_v48, %v480_v54  ;;  %v718_v57 = vpop.f32.mrb[4].mxu0  ;;  %v456_v58 = vadd.f32 %v715_v49, %v455_v53  ;;  %v730_v59 = vpop.f32.mrb[4].mxu1  ;;  %v453_v48 = vld [vmem:[%s968_s3] sm:$0x1] }
 0x114   : > { %442 = vst [vmem:[%s888_s28 + $0x28] sm:$0xff] %v718_v57  ;;  %v378_v60 = vpop.f32.mrb[5].mxu0  ;;  %450 = vst [vmem:[%s888_s28 + $0x68] sm:$0xff] %v730_v59  ;;  %v418_v61 = vpop.f32.mrb[5].mxu1  ;;  %v483_v1 = vmul.f32 %v718_v57, %v718_v57  ;;  %v491_v29 = vmul.f32 %v730_v59, %v730_v59 }
 0x115   : > { %441 = vst [vmem:[%s888_s28 + $0x20] sm:$0xff] %v378_v60  ;;  %v457_v62 = vadd.f32 %v456_v58, %v378_v60  ;;  %v482_v63 = vmul.f32 %v378_v60, %v378_v60  ;;  %v496_v0 = vadd.f32 %v495_v56, %v481_v55  ;;  %449 = vst [vmem:[%s888_s28 + $0x60] sm:$0xff] %v418_v61 }
 0x116   : > { %v490_v26 = vmul.f32 %v418_v61, %v418_v61 }
 0x117   : > { %v497_v2 = vadd.f32 %v496_v0, %v482_v63  ;;  %v721_v3 = vpop.f32.mrb[6].mxu0  ;;  %v458_v4 = vadd.f32 %v718_v57, %v457_v62  ;;  %v733_v5 = vpop.f32.mrb[6].mxu1 }
 0x118   : > { %444 = vst [vmem:[%s888_s28 + $0x38] sm:$0xff] %v721_v3  ;;  %v388_v6 = vpop.f32.mrb[7].mxu0  ;;  %452 = vst [vmem:[%s888_s28 + $0x78] sm:$0xff] %v733_v5  ;;  %v428_v7 = vpop.f32.mrb[7].mxu1  ;;  %v485_v11 = vmul.f32 %v721_v3, %v721_v3  ;;  %v493_v35 = vmul.f32 %v733_v5, %v733_v5 }
 0x119   : > { %443 = vst [vmem:[%s888_s28 + $0x30] sm:$0xff] %v388_v6  ;;  %v459_v8 = vadd.f32 %v458_v4, %v388_v6  ;;  %v484_v9 = vmul.f32 %v388_v6, %v388_v6  ;;  %v498_v10 = vadd.f32 %v497_v2, %v483_v1  ;;  %451 = vst [vmem:[%s888_s28 + $0x70] sm:$0xff] %v428_v7 }
 0x11a   : > { %v492_v32 = vmul.f32 %v428_v7, %v428_v7 }
 0x11b   : > { %v460_v12 = vadd.f32 %v721_v3, %v459_v8  ;;  %v499_v13 = vadd.f32 %v498_v10, %v484_v9 }
 0x11d   : > { %v500_v15 = vadd.f32 %v499_v13, %v485_v11  ;;  %v461_v16 = vadd.f32 %v460_v12, %v398_v45 }
 0x11f   : > { %v501_v18 = vadd.f32 %v500_v15, %v486_v14  ;;  %v462_v19 = vadd.f32 %v724_v42, %v461_v16 }
 0x121   : > { %v463_v21 = vadd.f32 %v462_v19, %v408_v52  ;;  %v502_v22 = vadd.f32 %v501_v18, %v487_v17 }
 0x123   : > { %v503_v24 = vadd.f32 %v502_v22, %v488_v20  ;;  %v464_v25 = vadd.f32 %v727_v50, %v463_v21 }
 0x125   : > { %v465_v27 = vadd.f32 %v464_v25, %v418_v61  ;;  %v504_v28 = vadd.f32 %v503_v24, %v489_v23 }
 0x127   : > { %v505_v30 = vadd.f32 %v504_v28, %v490_v26  ;;  %v466_v31 = vadd.f32 %v730_v59, %v465_v27 }
 0x129   : > { %v467_v33 = vadd.f32 %v466_v31, %v428_v7  ;;  %v506_v34 = vadd.f32 %v505_v30, %v491_v29 }
 0x12b   : > { %v468_v36 = vadd.f32 %v733_v5, %v467_v33  ;;  %v507_v37 = vadd.f32 %v506_v34, %v492_v32 }
 0x12d   : > { %v469_v38 = vrot.slane %v468_v36, 4  ;;  %v508_v39 = vadd.f32 %v507_v37, %v493_v35 }
 0x12f   : > { %v470_v40 = vadd.f32 %v469_v38, %v468_v36  ;;  %v509_v41 = vrot.slane %v508_v39, 4 }
 0x131   : > { %v471_v42 = vrot.slane %v470_v40, 2  ;;  %v510_v43 = vadd.f32 %v509_v41, %v508_v39 }
 0x133   : > { %v472_v44 = vadd.f32 %v471_v42, %v470_v40  ;;  %v511_v45 = vrot.slane %v510_v43, 2 }
 0x135   : > { %v473_v46 = vrot.slane %v472_v44, 1  ;;  %v512_v47 = vadd.f32 %v511_v45, %v510_v43 }
 0x137   : > { %v474_v49 = vadd.f32 %v473_v46, %v472_v44  ;;  %v513_v50 = vrot.slane %v512_v47, 1 }
 0x139   : > { %v475_v52 = vadd.f32 %v474_v49, %v453_v48  ;;  %v514_v53 = vadd.f32 %v513_v50, %v512_v47 }
 0x13b   : > { %476 = vst [vmem:[%s968_s3] sm:$0x1] %v475_v52  ;;  %v515_v54 = vadd.f32 %v514_v53, %v477_v51 }
 0x13d   : > { %516 = vst [vmem:[%s969_s4] sm:$0x1] %v515_v54 }
 0x13e PF: > { %s15_s17 = sadd.s32 1, %s829_s17   ;;  %s970_s15 = smov %s825_s16 }
 0x13f   : > { %p12_p6 = scmp.ge.s32.totalorder %s15_s17, 6   ;;  %s971_s16 = smov %s973_s18 }
 0x141   :  { %14 = sbr.rel (!%p12_p6) target bundleno = 2 (0x2), region = 81 }

// kernel: conv_generator_transpose.14
= control target key start
LH: loop header
LB: loop body
LE: loop exit
PB: predicated region body
PF: predicated region fallthrough
CT: control target
= control target key end

     0   :  { %s1030_s0 = inlined_call_operand.vmem [shape: f32[512,128], index: 0, kind: input, shape index: {}]   ;;  %s1031_s1 = inlined_call_operand.vmem [shape: f32[1,128], index: 1, kind: input, shape index: {}]   ;;  %s1032_s2 = inlined_call_operand.vmem [shape: f32[1,128], index: 2, kind: input, shape index: {}]   ;;  %s1033_s3 = inlined_call_operand.vmem [shape: f32[512,128], index: 3, kind: output, shape index: {}]  }
   0x1   :  { %v14_v0 = vld [vmem:[%s1030_s0] sm:$0xff]  ;;  %v15_v4 = vld [vmem:[%s1030_s0 + $0x8] sm:$0xff]  ;;  %v16_v5 = vld [vmem:[%s1030_s0 + $0x10] sm:$0xff] }
   0x2   :  { %v508_v1 = vld [vmem:[%s1031_s1] ss:$0 sm:$0xff]  ;;  %v17_v6 = vld [vmem:[%s1030_s0 + $0x18] sm:$0xff]  ;;  %v19_v11 = vld [vmem:[%s1030_s0 + $0x28] sm:$0xff] }
   0x3   :  { %v513_v2 = vld [vmem:[%s1032_s2] ss:$0 sm:$0xff]  ;;  %v85_v3 = vmul.f32 %v508_v1, %v14_v0  ;;  %v86_v7 = vmul.f32 %v508_v1, %v15_v4  ;;  %v87_v8 = vmul.f32 %v508_v1, %v16_v5  ;;  %v88_v9 = vmul.f32 %v508_v1, %v17_v6  ;;  %v20_v12 = vld [vmem:[%s1030_s0 + $0x30] sm:$0xff]  ;;  %v21_v17 = vld [vmem:[%s1030_s0 + $0x38] sm:$0xff] }
   0x4   :  { %v18_v10 = vld [vmem:[%s1030_s0 + $0x20] sm:$0xff]  ;;  %v90_v15 = vmul.f32 %v508_v1, %v19_v11  ;;  %v91_v16 = vmul.f32 %v508_v1, %v20_v12  ;;  %v92_v21 = vmul.f32 %v508_v1, %v21_v17  ;;  %v23_v30 = vld [vmem:[%s1030_s0 + $0x48] sm:$0xff]  ;;  %v24_v31 = vld [vmem:[%s1030_s0 + $0x50] sm:$0xff] }
   0x5   :  { %v156_v13 = vadd.f32 %v513_v2, %v85_v3  ;;  %v89_v14 = vmul.f32 %v508_v1, %v18_v10  ;;  %v157_v18 = vadd.f32 %v513_v2, %v86_v7  ;;  %v158_v19 = vadd.f32 %v513_v2, %v87_v8  ;;  %v22_v25 = vld [vmem:[%s1030_s0 + $0x40] sm:$0xff]  ;;  %v25_v43 = vld [vmem:[%s1030_s0 + $0x58] sm:$0xff]  ;;  %v27_v45 = vld [vmem:[%s1030_s0 + $0x68] sm:$0xff] }
   0x6   :  { %v159_v20 = vadd.f32 %v513_v2, %v88_v9  ;;  %v161_v24 = vadd.f32 %v513_v2, %v90_v15  ;;  %v162_v37 = vadd.f32 %v513_v2, %v91_v16  ;;  %v163_v38 = vadd.f32 %v513_v2, %v92_v21  ;;  %v26_v44 = vld [vmem:[%s1030_s0 + $0x60] sm:$0xff]  ;;  %v28_v56 = vld [vmem:[%s1030_s0 + $0x70] sm:$0xff]  ;;  %v29_v4 = vld [vmem:[%s1030_s0 + $0x78] sm:$0xff] }
   0x7   :  { %vm220_vm0 = vcmp.gt.f32.partialorder %v156_v13, 0.0  ;;  %v284_v22 = vmul.f32 0.2, %v156_v13  ;;  %v160_v23 = vadd.f32 %v513_v2, %v89_v14  ;;  %vm221_vm1 = vcmp.gt.f32.partialorder %v157_v18, 0.0  ;;  %v30_v5 = vld [vmem:[%s1030_s0 + $0x80] sm:$0xff]  ;;  %v31_v9 = vld [vmem:[%s1030_s0 + $0x88] sm:$0xff] }
   0x8   :  { %v285_v26 = vmul.f32 0.2, %v157_v18  ;;  %vm222_vm2 = vcmp.gt.f32.partialorder %v158_v19, 0.0  ;;  %v286_v27 = vmul.f32 0.2, %v158_v19  ;;  %vm223_vm3 = vcmp.gt.f32.partialorder %v159_v20, 0.0 }
   0x9   :  { %v348_v28 = vsel %vm220_vm0, %v156_v13, %v284_v22  ;;  %v287_v29 = vmul.f32 0.2, %v159_v20  ;;  %vm224_vm4 = vcmp.gt.f32.partialorder %v160_v23, 0.0  ;;  %v288_v34 = vmul.f32 0.2, %v160_v23  ;;  %v32_v10 = vld [vmem:[%s1030_s0 + $0x90] sm:$0xff] }
   0xa   :  { %412 = vst [vmem:[%s1033_s3] sm:$0xff] %v348_v28  ;;  %v349_v32 = vsel %vm221_vm1, %v157_v18, %v285_v26  ;;  %v350_v33 = vsel %vm222_vm2, %v158_v19, %v286_v27  ;;  %vm225_vm5 = vcmp.gt.f32.partialorder %v161_v24, 0.0  ;;  %v289_v36 = vmul.f32 0.2, %v161_v24  ;;  %v33_v17 = vld [vmem:[%s1030_s0 + $0x98] sm:$0xff]  ;;  %v34_v18 = vld [vmem:[%s1030_s0 + $0xa0] sm:$0xff] }
   0xb   :  { %413 = vst [vmem:[%s1033_s3 + $0x8] sm:$0xff] %v349_v32  ;;  %414 = vst [vmem:[%s1033_s3 + $0x10] sm:$0xff] %v350_v33  ;;  %v351_v35 = vsel %vm223_vm3, %v159_v20, %v287_v29  ;;  %v352_v39 = vsel %vm224_vm4, %v160_v23, %v288_v34  ;;  %v93_v40 = vmul.f32 %v508_v1, %v22_v25  ;;  %vm226_vm6 = vcmp.gt.f32.partialorder %v162_v37, 0.0  ;;  %v35_v32 = vld [vmem:[%s1030_s0 + $0xa8] sm:$0xff]  ;;  %v36_v33 = vld [vmem:[%s1030_s0 + $0xb0] sm:$0xff] }
   0xc   :  { %415 = vst [vmem:[%s1033_s3 + $0x18] sm:$0xff] %v351_v35  ;;  %v94_v41 = vmul.f32 %v508_v1, %v23_v30  ;;  %v95_v42 = vmul.f32 %v508_v1, %v24_v31  ;;  %416 = vst [vmem:[%s1033_s3 + $0x20] sm:$0xff] %v352_v39  ;;  %v353_v46 = vsel %vm225_vm5, %v161_v24, %v289_v36  ;;  %v290_v47 = vmul.f32 0.2, %v162_v37 }
   0xd   :  { %vm227_vm7 = vcmp.gt.f32.partialorder %v163_v38, 0.0  ;;  %417 = vst [vmem:[%s1033_s3 + $0x28] sm:$0xff] %v353_v46  ;;  %v291_v48 = vmul.f32 0.2, %v163_v38  ;;  %v164_v49 = vadd.f32 %v513_v2, %v93_v40  ;;  %v96_v53 = vmul.f32 %v508_v1, %v25_v43  ;;  %v37_v40 = vld [vmem:[%s1030_s0 + $0xb8] sm:$0xff]  ;;  %v39_v46 = vld [vmem:[%s1030_s0 + $0xc8] sm:$0xff] }
   0xe   :  { %v165_v50 = vadd.f32 %v513_v2, %v94_v41  ;;  %v166_v51 = vadd.f32 %v513_v2, %v95_v42  ;;  %v354_v52 = vsel %vm226_vm6, %v162_v37, %v290_v47  ;;  %v97_v54 = vmul.f32 %v508_v1, %v26_v44  ;;  %v40_v47 = vld [vmem:[%s1030_s0 + $0xd0] sm:$0xff] }
   0xf   :  { %v98_v55 = vmul.f32 %v508_v1, %v27_v45  ;;  %418 = vst [vmem:[%s1033_s3 + $0x30] sm:$0xff] %v354_v52  ;;  %v355_v57 = vsel %vm227_vm7, %v163_v38, %v291_v48  ;;  %vm228_vm8 = vcmp.gt.f32.partialorder %v164_v49, 0.0  ;;  %v292_v58 = vmul.f32 0.2, %v164_v49  ;;  %v38_v45 = vld [vmem:[%s1030_s0 + $0xc0] sm:$0xff] }
  0x10   :  { %vm229_vm9 = vcmp.gt.f32.partialorder %v165_v50, 0.0  ;;  %419 = vst [vmem:[%s1033_s3 + $0x38] sm:$0xff] %v355_v57  ;;  %v293_v59 = vmul.f32 0.2, %v165_v50  ;;  %vm230_vm10 = vcmp.gt.f32.partialorder %v166_v51, 0.0  ;;  %v167_v61 = vadd.f32 %v513_v2, %v96_v53 }
  0x11   :  { %v294_v60 = vmul.f32 0.2, %v166_v51  ;;  %v356_v62 = vsel %vm228_vm8, %v164_v49, %v292_v58  ;;  %v168_v63 = vadd.f32 %v513_v2, %v97_v54  ;;  %v169_v0 = vadd.f32 %v513_v2, %v98_v55  ;;  %v41_v58 = vld [vmem:[%s1030_s0 + $0xd8] sm:$0xff] }
  0x12   :  { %v99_v3 = vmul.f32 %v508_v1, %v28_v56  ;;  %420 = vst [vmem:[%s1033_s3 + $0x40] sm:$0xff] %v356_v62  ;;  %v357_v6 = vsel %vm229_vm9, %v165_v50, %v293_v59  ;;  %vm231_vm11 = vcmp.gt.f32.partialorder %v167_v61, 0.0  ;;  %v295_v8 = vmul.f32 0.2, %v167_v61  ;;  %v42_v59 = vld [vmem:[%s1030_s0 + $0xe0] sm:$0xff] }
  0x13   :  { %v358_v7 = vsel %vm230_vm10, %v166_v51, %v294_v60  ;;  %421 = vst [vmem:[%s1033_s3 + $0x48] sm:$0xff] %v357_v6  ;;  %vm232_vm12 = vcmp.gt.f32.partialorder %v168_v63, 0.0  ;;  %v296_v11 = vmul.f32 0.2, %v168_v63  ;;  %vm233_vm13 = vcmp.gt.f32.partialorder %v169_v0, 0.0 }
  0x14   :  { %422 = vst [vmem:[%s1033_s3 + $0x50] sm:$0xff] %v358_v7  ;;  %v297_v12 = vmul.f32 0.2, %v169_v0  ;;  %v359_v13 = vsel %vm231_vm11, %v167_v61, %v295_v8  ;;  %v170_v14 = vadd.f32 %v513_v2, %v99_v3  ;;  %v100_v15 = vmul.f32 %v508_v1, %v29_v4 }
  0x15   :  { %v101_v16 = vmul.f32 %v508_v1, %v30_v5  ;;  %423 = vst [vmem:[%s1033_s3 + $0x58] sm:$0xff] %v359_v13  ;;  %v360_v19 = vsel %vm232_vm12, %v168_v63, %v296_v11  ;;  %v102_v21 = vmul.f32 %v508_v1, %v31_v9  ;;  %v103_v22 = vmul.f32 %v508_v1, %v32_v10  ;;  %v43_v10 = vld [vmem:[%s1030_s0 + $0xe8] sm:$0xff]  ;;  %v44_v11 = vld [vmem:[%s1030_s0 + $0xf0] sm:$0xff] }
  0x16   :  { %v361_v20 = vsel %vm233_vm13, %v169_v0, %v297_v12  ;;  %424 = vst [vmem:[%s1033_s3 + $0x60] sm:$0xff] %v360_v19  ;;  %vm234_vm14 = vcmp.gt.f32.partialorder %v170_v14, 0.0  ;;  %v298_v23 = vmul.f32 0.2, %v170_v14  ;;  %v171_v24 = vadd.f32 %v513_v2, %v100_v15 }
  0x17   :  { %425 = vst [vmem:[%s1033_s3 + $0x68] sm:$0xff] %v361_v20  ;;  %v172_v25 = vadd.f32 %v513_v2, %v101_v16  ;;  %v173_v26 = vadd.f32 %v513_v2, %v102_v21  ;;  %v174_v27 = vadd.f32 %v513_v2, %v103_v22  ;;  %v104_v28 = vmul.f32 %v508_v1, %v33_v17 }
  0x18   :  { %v105_v29 = vmul.f32 %v508_v1, %v34_v18  ;;  %v362_v30 = vsel %vm234_vm14, %v170_v14, %v298_v23  ;;  %vm235_vm15 = vcmp.gt.f32.partialorder %v171_v24, 0.0  ;;  %v299_v31 = vmul.f32 0.2, %v171_v24  ;;  %v45_v18 = vld [vmem:[%s1030_s0 + $0xf8] sm:$0xff]  ;;  %v46_v23 = vld [vmem:[%s1030_s0 + $0x100] sm:$0xff] }
  0x19   :  { %vm236_vm0 = vcmp.gt.f32.partialorder %v172_v25, 0.0  ;;  %426 = vst [vmem:[%s1033_s3 + $0x70] sm:$0xff] %v362_v30  ;;  %v300_v34 = vmul.f32 0.2, %v172_v25  ;;  %vm237_vm1 = vcmp.gt.f32.partialorder %v173_v26, 0.0  ;;  %vm238_vm2 = vcmp.gt.f32.partialorder %v174_v27, 0.0 }
  0x1a   :  { %v301_v35 = vmul.f32 0.2, %v173_v26  ;;  %v363_v36 = vsel %vm235_vm15, %v171_v24, %v299_v31  ;;  %v302_v37 = vmul.f32 0.2, %v174_v27  ;;  %v175_v38 = vadd.f32 %v513_v2, %v104_v28  ;;  %v47_v24 = vld [vmem:[%s1030_s0 + $0x108] sm:$0xff] }
  0x1b   :  { %v176_v39 = vadd.f32 %v513_v2, %v105_v29  ;;  %427 = vst [vmem:[%s1033_s3 + $0x78] sm:$0xff] %v363_v36  ;;  %v364_v41 = vsel %vm236_vm0, %v172_v25, %v300_v34  ;;  %v106_v43 = vmul.f32 %v508_v1, %v35_v32  ;;  %v107_v44 = vmul.f32 %v508_v1, %v36_v33  ;;  %v48_v25 = vld [vmem:[%s1030_s0 + $0x110] sm:$0xff]  ;;  %v49_v36 = vld [vmem:[%s1030_s0 + $0x118] sm:$0xff] }
  0x1c   :  { %v365_v42 = vsel %vm237_vm1, %v173_v26, %v301_v35  ;;  %428 = vst [vmem:[%s1033_s3 + $0x80] sm:$0xff] %v364_v41  ;;  %v366_v48 = vsel %vm238_vm2, %v174_v27, %v302_v37  ;;  %vm239_vm3 = vcmp.gt.f32.partialorder %v175_v38, 0.0  ;;  %v303_v49 = vmul.f32 0.2, %v175_v38  ;;  %v50_v37 = vld [vmem:[%s1030_s0 + $0x120] sm:$0xff] }
  0x1d   :  { %429 = vst [vmem:[%s1033_s3 + $0x88] sm:$0xff] %v365_v42  ;;  %vm240_vm4 = vcmp.gt.f32.partialorder %v176_v39, 0.0  ;;  %430 = vst [vmem:[%s1033_s3 + $0x90] sm:$0xff] %v366_v48  ;;  %v304_v50 = vmul.f32 0.2, %v176_v39  ;;  %v177_v51 = vadd.f32 %v513_v2, %v106_v43  ;;  %v178_v52 = vadd.f32 %v513_v2, %v107_v44 }
  0x1e   :  { %v108_v53 = vmul.f32 %v508_v1, %v37_v40  ;;  %v367_v54 = vsel %vm239_vm3, %v175_v38, %v303_v49  ;;  %v109_v55 = vmul.f32 %v508_v1, %v38_v45  ;;  %v110_v56 = vmul.f32 %v508_v1, %v39_v46 }
  0x1f   :  { %v111_v57 = vmul.f32 %v508_v1, %v40_v47  ;;  %431 = vst [vmem:[%s1033_s3 + $0x98] sm:$0xff] %v367_v54  ;;  %v368_v60 = vsel %vm240_vm4, %v176_v39, %v304_v50  ;;  %vm241_vm5 = vcmp.gt.f32.partialorder %v177_v51, 0.0  ;;  %v305_v61 = vmul.f32 0.2, %v177_v51  ;;  %v51_v50 = vld [vmem:[%s1030_s0 + $0x128] sm:$0xff] }
  0x20   :  { %vm242_vm6 = vcmp.gt.f32.partialorder %v178_v52, 0.0  ;;  %432 = vst [vmem:[%s1033_s3 + $0xa0] sm:$0xff] %v368_v60  ;;  %v306_v62 = vmul.f32 0.2, %v178_v52  ;;  %v179_v63 = vadd.f32 %v513_v2, %v108_v53  ;;  %v180_v0 = vadd.f32 %v513_v2, %v109_v55 }
  0x21   :  { %v181_v3 = vadd.f32 %v513_v2, %v110_v56  ;;  %v369_v4 = vsel %vm241_vm5, %v177_v51, %v305_v61  ;;  %v182_v5 = vadd.f32 %v513_v2, %v111_v57  ;;  %v112_v6 = vmul.f32 %v508_v1, %v41_v58  ;;  %v52_v51 = vld [vmem:[%s1030_s0 + $0x130] sm:$0xff]  ;;  %v53_v58 = vld [vmem:[%s1030_s0 + $0x138] sm:$0xff] }
  0x22   :  { %v113_v7 = vmul.f32 %v508_v1, %v42_v59  ;;  %433 = vst [vmem:[%s1033_s3 + $0xa8] sm:$0xff] %v369_v4  ;;  %v370_v8 = vsel %vm242_vm6, %v178_v52, %v306_v62  ;;  %vm243_vm7 = vcmp.gt.f32.partialorder %v179_v63, 0.0  ;;  %v307_v9 = vmul.f32 0.2, %v179_v63 }
  0x23   :  { %vm244_vm8 = vcmp.gt.f32.partialorder %v180_v0, 0.0  ;;  %434 = vst [vmem:[%s1033_s3 + $0xb0] sm:$0xff] %v370_v8  ;;  %v308_v12 = vmul.f32 0.2, %v180_v0  ;;  %vm245_vm9 = vcmp.gt.f32.partialorder %v181_v3, 0.0  ;;  %vm246_vm10 = vcmp.gt.f32.partialorder %v182_v5, 0.0 }
  0x24   :  { %v309_v13 = vmul.f32 0.2, %v181_v3  ;;  %v371_v14 = vsel %vm243_vm7, %v179_v63, %v307_v9  ;;  %v310_v15 = vmul.f32 0.2, %v182_v5  ;;  %v183_v16 = vadd.f32 %v513_v2, %v112_v6  ;;  %v54_v63 = vld [vmem:[%s1030_s0 + $0x140] sm:$0xff] }
  0x25   :  { %v184_v17 = vadd.f32 %v513_v2, %v113_v7  ;;  %435 = vst [vmem:[%s1033_s3 + $0xb8] sm:$0xff] %v371_v14  ;;  %v372_v19 = vsel %vm244_vm8, %v180_v0, %v308_v12  ;;  %v114_v21 = vmul.f32 %v508_v1, %v43_v10  ;;  %v115_v22 = vmul.f32 %v508_v1, %v44_v11  ;;  %v55_v0 = vld [vmem:[%s1030_s0 + $0x148] sm:$0xff]  ;;  %v57_v14 = vld [vmem:[%s1030_s0 + $0x158] sm:$0xff] }
  0x26   :  { %v373_v20 = vsel %vm245_vm9, %v181_v3, %v309_v13  ;;  %436 = vst [vmem:[%s1033_s3 + $0xc0] sm:$0xff] %v372_v19  ;;  %v374_v26 = vsel %vm246_vm10, %v182_v5, %v310_v15  ;;  %vm247_vm11 = vcmp.gt.f32.partialorder %v183_v16, 0.0  ;;  %v311_v27 = vmul.f32 0.2, %v183_v16  ;;  %v56_v3 = vld [vmem:[%s1030_s0 + $0x150] sm:$0xff]  ;;  %v58_v15 = vld [vmem:[%s1030_s0 + $0x160] sm:$0xff] }
  0x27   :  { %437 = vst [vmem:[%s1033_s3 + $0xc8] sm:$0xff] %v373_v20  ;;  %vm248_vm12 = vcmp.gt.f32.partialorder %v184_v17, 0.0  ;;  %438 = vst [vmem:[%s1033_s3 + $0xd0] sm:$0xff] %v374_v26  ;;  %v312_v28 = vmul.f32 0.2, %v184_v17  ;;  %v185_v29 = vadd.f32 %v513_v2, %v114_v21  ;;  %v186_v30 = vadd.f32 %v513_v2, %v115_v22 }
  0x28   :  { %v116_v31 = vmul.f32 %v508_v1, %v45_v18  ;;  %v375_v32 = vsel %vm247_vm11, %v183_v16, %v311_v27  ;;  %v117_v33 = vmul.f32 %v508_v1, %v46_v23  ;;  %v118_v34 = vmul.f32 %v508_v1, %v47_v24 }
  0x29   :  { %v119_v35 = vmul.f32 %v508_v1, %v48_v25  ;;  %439 = vst [vmem:[%s1033_s3 + $0xd8] sm:$0xff] %v375_v32  ;;  %v376_v38 = vsel %vm248_vm12, %v184_v17, %v312_v28  ;;  %vm249_vm13 = vcmp.gt.f32.partialorder %v185_v29, 0.0  ;;  %v313_v39 = vmul.f32 0.2, %v185_v29  ;;  %v59_v28 = vld [vmem:[%s1030_s0 + $0x168] sm:$0xff] }
  0x2a   :  { %vm250_vm14 = vcmp.gt.f32.partialorder %v186_v30, 0.0  ;;  %440 = vst [vmem:[%s1033_s3 + $0xe0] sm:$0xff] %v376_v38  ;;  %v314_v40 = vmul.f32 0.2, %v186_v30  ;;  %v187_v41 = vadd.f32 %v513_v2, %v116_v31  ;;  %v188_v42 = vadd.f32 %v513_v2, %v117_v33 }
  0x2b   :  { %v189_v43 = vadd.f32 %v513_v2, %v118_v34  ;;  %v377_v44 = vsel %vm249_vm13, %v185_v29, %v313_v39  ;;  %v190_v45 = vadd.f32 %v513_v2, %v119_v35  ;;  %v120_v46 = vmul.f32 %v508_v1, %v49_v36  ;;  %v60_v29 = vld [vmem:[%s1030_s0 + $0x170] sm:$0xff]  ;;  %v61_v36 = vld [vmem:[%s1030_s0 + $0x178] sm:$0xff] }
  0x2c   :  { %v121_v47 = vmul.f32 %v508_v1, %v50_v37  ;;  %441 = vst [vmem:[%s1033_s3 + $0xe8] sm:$0xff] %v377_v44  ;;  %v378_v48 = vsel %vm250_vm14, %v186_v30, %v314_v40  ;;  %vm251_vm15 = vcmp.gt.f32.partialorder %v187_v41, 0.0  ;;  %v315_v49 = vmul.f32 0.2, %v187_v41 }
  0x2d   :  { %vm252_vm0 = vcmp.gt.f32.partialorder %v188_v42, 0.0  ;;  %442 = vst [vmem:[%s1033_s3 + $0xf0] sm:$0xff] %v378_v48  ;;  %v316_v52 = vmul.f32 0.2, %v188_v42  ;;  %vm253_vm1 = vcmp.gt.f32.partialorder %v189_v43, 0.0  ;;  %vm254_vm2 = vcmp.gt.f32.partialorder %v190_v45, 0.0 }
  0x2e   :  { %v317_v53 = vmul.f32 0.2, %v189_v43  ;;  %v379_v54 = vsel %vm251_vm15, %v187_v41, %v315_v49  ;;  %v318_v55 = vmul.f32 0.2, %v190_v45  ;;  %v191_v56 = vadd.f32 %v513_v2, %v120_v46  ;;  %v62_v41 = vld [vmem:[%s1030_s0 + $0x180] sm:$0xff] }
  0x2f   :  { %v192_v57 = vadd.f32 %v513_v2, %v121_v47  ;;  %443 = vst [vmem:[%s1033_s3 + $0xf8] sm:$0xff] %v379_v54  ;;  %v380_v59 = vsel %vm252_vm0, %v188_v42, %v316_v52  ;;  %v122_v61 = vmul.f32 %v508_v1, %v51_v50  ;;  %v123_v62 = vmul.f32 %v508_v1, %v52_v51  ;;  %v63_v42 = vld [vmem:[%s1030_s0 + $0x188] sm:$0xff]  ;;  %v65_v54 = vld [vmem:[%s1030_s0 + $0x198] sm:$0xff] }
  0x30   :  { %v381_v60 = vsel %vm253_vm1, %v189_v43, %v317_v53  ;;  %444 = vst [vmem:[%s1033_s3 + $0x100] sm:$0xff] %v380_v59  ;;  %v382_v4 = vsel %vm254_vm2, %v190_v45, %v318_v55  ;;  %vm255_vm3 = vcmp.gt.f32.partialorder %v191_v56, 0.0  ;;  %v319_v5 = vmul.f32 0.2, %v191_v56  ;;  %v64_v43 = vld [vmem:[%s1030_s0 + $0x190] sm:$0xff]  ;;  %v66_v55 = vld [vmem:[%s1030_s0 + $0x1a0] sm:$0xff] }
  0x31   :  { %445 = vst [vmem:[%s1033_s3 + $0x108] sm:$0xff] %v381_v60  ;;  %vm256_vm4 = vcmp.gt.f32.partialorder %v192_v57, 0.0  ;;  %446 = vst [vmem:[%s1033_s3 + $0x110] sm:$0xff] %v382_v4  ;;  %v320_v6 = vmul.f32 0.2, %v192_v57  ;;  %v193_v7 = vadd.f32 %v513_v2, %v122_v61  ;;  %v194_v8 = vadd.f32 %v513_v2, %v123_v62 }
  0x32   :  { %v124_v9 = vmul.f32 %v508_v1, %v53_v58  ;;  %v383_v10 = vsel %vm255_vm3, %v191_v56, %v319_v5  ;;  %v125_v11 = vmul.f32 %v508_v1, %v54_v63  ;;  %v126_v12 = vmul.f32 %v508_v1, %v55_v0 }
  0x33   :  { %v127_v13 = vmul.f32 %v508_v1, %v56_v3  ;;  %447 = vst [vmem:[%s1033_s3 + $0x118] sm:$0xff] %v383_v10  ;;  %v384_v16 = vsel %vm256_vm4, %v192_v57, %v320_v6  ;;  %vm257_vm5 = vcmp.gt.f32.partialorder %v193_v7, 0.0  ;;  %v321_v17 = vmul.f32 0.2, %v193_v7  ;;  %v67_v6 = vld [vmem:[%s1030_s0 + $0x1a8] sm:$0xff] }
  0x34   :  { %vm258_vm6 = vcmp.gt.f32.partialorder %v194_v8, 0.0  ;;  %448 = vst [vmem:[%s1033_s3 + $0x120] sm:$0xff] %v384_v16  ;;  %v322_v18 = vmul.f32 0.2, %v194_v8  ;;  %v195_v19 = vadd.f32 %v513_v2, %v124_v9  ;;  %v196_v20 = vadd.f32 %v513_v2, %v125_v11 }
  0x35   :  { %v197_v21 = vadd.f32 %v513_v2, %v126_v12  ;;  %v385_v22 = vsel %vm257_vm5, %v193_v7, %v321_v17  ;;  %v198_v23 = vadd.f32 %v513_v2, %v127_v13  ;;  %v128_v24 = vmul.f32 %v508_v1, %v57_v14  ;;  %v68_v7 = vld [vmem:[%s1030_s0 + $0x1b0] sm:$0xff]  ;;  %v69_v14 = vld [vmem:[%s1030_s0 + $0x1b8] sm:$0xff] }
  0x36   :  { %v129_v25 = vmul.f32 %v508_v1, %v58_v15  ;;  %449 = vst [vmem:[%s1033_s3 + $0x128] sm:$0xff] %v385_v22  ;;  %v386_v26 = vsel %vm258_vm6, %v194_v8, %v322_v18  ;;  %vm259_vm7 = vcmp.gt.f32.partialorder %v195_v19, 0.0  ;;  %v323_v27 = vmul.f32 0.2, %v195_v19 }
  0x37   :  { %vm260_vm8 = vcmp.gt.f32.partialorder %v196_v20, 0.0  ;;  %450 = vst [vmem:[%s1033_s3 + $0x130] sm:$0xff] %v386_v26  ;;  %v324_v30 = vmul.f32 0.2, %v196_v20  ;;  %vm261_vm9 = vcmp.gt.f32.partialorder %v197_v21, 0.0  ;;  %vm262_vm10 = vcmp.gt.f32.partialorder %v198_v23, 0.0 }
  0x38   :  { %v325_v31 = vmul.f32 0.2, %v197_v21  ;;  %v387_v32 = vsel %vm259_vm7, %v195_v19, %v323_v27  ;;  %v326_v33 = vmul.f32 0.2, %v198_v23  ;;  %v199_v34 = vadd.f32 %v513_v2, %v128_v24  ;;  %v70_v19 = vld [vmem:[%s1030_s0 + $0x1c0] sm:$0xff] }
  0x39   :  { %v200_v35 = vadd.f32 %v513_v2, %v129_v25  ;;  %451 = vst [vmem:[%s1033_s3 + $0x138] sm:$0xff] %v387_v32  ;;  %v388_v37 = vsel %vm260_vm8, %v196_v20, %v324_v30  ;;  %v130_v39 = vmul.f32 %v508_v1, %v59_v28  ;;  %v131_v40 = vmul.f32 %v508_v1, %v60_v29  ;;  %v71_v20 = vld [vmem:[%s1030_s0 + $0x1c8] sm:$0xff]  ;;  %v73_v32 = vld [vmem:[%s1030_s0 + $0x1d8] sm:$0xff] }
  0x3a   :  { %v389_v38 = vsel %vm261_vm9, %v197_v21, %v325_v31  ;;  %452 = vst [vmem:[%s1033_s3 + $0x140] sm:$0xff] %v388_v37  ;;  %v390_v44 = vsel %vm262_vm10, %v198_v23, %v326_v33  ;;  %vm263_vm11 = vcmp.gt.f32.partialorder %v199_v34, 0.0  ;;  %v327_v45 = vmul.f32 0.2, %v199_v34  ;;  %v72_v21 = vld [vmem:[%s1030_s0 + $0x1d0] sm:$0xff]  ;;  %v74_v33 = vld [vmem:[%s1030_s0 + $0x1e0] sm:$0xff] }
  0x3b   :  { %453 = vst [vmem:[%s1033_s3 + $0x148] sm:$0xff] %v389_v38  ;;  %vm264_vm12 = vcmp.gt.f32.partialorder %v200_v35, 0.0  ;;  %454 = vst [vmem:[%s1033_s3 + $0x150] sm:$0xff] %v390_v44  ;;  %v328_v46 = vmul.f32 0.2, %v200_v35  ;;  %v201_v47 = vadd.f32 %v513_v2, %v130_v39  ;;  %v202_v48 = vadd.f32 %v513_v2, %v131_v40 }
  0x3c   :  { %v132_v49 = vmul.f32 %v508_v1, %v61_v36  ;;  %v391_v50 = vsel %vm263_vm11, %v199_v34, %v327_v45  ;;  %v133_v51 = vmul.f32 %v508_v1, %v62_v41  ;;  %v134_v52 = vmul.f32 %v508_v1, %v63_v42 }
  0x3d   :  { %v135_v53 = vmul.f32 %v508_v1, %v64_v43  ;;  %455 = vst [vmem:[%s1033_s3 + $0x158] sm:$0xff] %v391_v50  ;;  %v392_v56 = vsel %vm264_vm12, %v200_v35, %v328_v46  ;;  %vm265_vm13 = vcmp.gt.f32.partialorder %v201_v47, 0.0  ;;  %v329_v57 = vmul.f32 0.2, %v201_v47  ;;  %v75_v46 = vld [vmem:[%s1030_s0 + $0x1e8] sm:$0xff] }
  0x3e   :  { %vm266_vm14 = vcmp.gt.f32.partialorder %v202_v48, 0.0  ;;  %456 = vst [vmem:[%s1033_s3 + $0x160] sm:$0xff] %v392_v56  ;;  %v330_v58 = vmul.f32 0.2, %v202_v48  ;;  %v203_v59 = vadd.f32 %v513_v2, %v132_v49  ;;  %v204_v60 = vadd.f32 %v513_v2, %v133_v51 }
  0x3f   :  { %v205_v61 = vadd.f32 %v513_v2, %v134_v52  ;;  %v393_v62 = vsel %vm265_vm13, %v201_v47, %v329_v57  ;;  %v206_v63 = vadd.f32 %v513_v2, %v135_v53  ;;  %v136_v0 = vmul.f32 %v508_v1, %v65_v54  ;;  %v76_v47 = vld [vmem:[%s1030_s0 + $0x1f0] sm:$0xff]  ;;  %v77_v54 = vld [vmem:[%s1030_s0 + $0x1f8] sm:$0xff] }
  0x40   :  { %v137_v3 = vmul.f32 %v508_v1, %v66_v55  ;;  %457 = vst [vmem:[%s1033_s3 + $0x168] sm:$0xff] %v393_v62  ;;  %v394_v4 = vsel %vm266_vm14, %v202_v48, %v330_v58  ;;  %vm267_vm15 = vcmp.gt.f32.partialorder %v203_v59, 0.0  ;;  %v331_v5 = vmul.f32 0.2, %v203_v59 }
  0x41   :  { %vm268_vm0 = vcmp.gt.f32.partialorder %v204_v60, 0.0  ;;  %458 = vst [vmem:[%s1033_s3 + $0x170] sm:$0xff] %v394_v4  ;;  %v332_v8 = vmul.f32 0.2, %v204_v60  ;;  %vm269_vm1 = vcmp.gt.f32.partialorder %v205_v61, 0.0  ;;  %vm270_vm2 = vcmp.gt.f32.partialorder %v206_v63, 0.0 }
  0x42   :  { %v333_v9 = vmul.f32 0.2, %v205_v61  ;;  %v395_v10 = vsel %vm267_vm15, %v203_v59, %v331_v5  ;;  %v334_v11 = vmul.f32 0.2, %v206_v63  ;;  %v207_v12 = vadd.f32 %v513_v2, %v136_v0 }
  0x43   :  { %v208_v13 = vadd.f32 %v513_v2, %v137_v3  ;;  %459 = vst [vmem:[%s1033_s3 + $0x178] sm:$0xff] %v395_v10  ;;  %v396_v15 = vsel %vm268_vm0, %v204_v60, %v332_v8  ;;  %v138_v17 = vmul.f32 %v508_v1, %v67_v6  ;;  %v139_v18 = vmul.f32 %v508_v1, %v68_v7 }
  0x44   :  { %v397_v16 = vsel %vm269_vm1, %v205_v61, %v333_v9  ;;  %460 = vst [vmem:[%s1033_s3 + $0x180] sm:$0xff] %v396_v15  ;;  %v398_v22 = vsel %vm270_vm2, %v206_v63, %v334_v11  ;;  %vm271_vm3 = vcmp.gt.f32.partialorder %v207_v12, 0.0  ;;  %v335_v23 = vmul.f32 0.2, %v207_v12 }
  0x45   :  { %461 = vst [vmem:[%s1033_s3 + $0x188] sm:$0xff] %v397_v16  ;;  %vm272_vm4 = vcmp.gt.f32.partialorder %v208_v13, 0.0  ;;  %462 = vst [vmem:[%s1033_s3 + $0x190] sm:$0xff] %v398_v22  ;;  %v336_v24 = vmul.f32 0.2, %v208_v13  ;;  %v209_v25 = vadd.f32 %v513_v2, %v138_v17  ;;  %v210_v26 = vadd.f32 %v513_v2, %v139_v18 }
  0x46   :  { %v140_v27 = vmul.f32 %v508_v1, %v69_v14  ;;  %v399_v28 = vsel %vm271_vm3, %v207_v12, %v335_v23  ;;  %v141_v29 = vmul.f32 %v508_v1, %v70_v19  ;;  %v142_v30 = vmul.f32 %v508_v1, %v71_v20 }
  0x47   :  { %v143_v31 = vmul.f32 %v508_v1, %v72_v21  ;;  %463 = vst [vmem:[%s1033_s3 + $0x198] sm:$0xff] %v399_v28  ;;  %v400_v34 = vsel %vm272_vm4, %v208_v13, %v336_v24  ;;  %vm273_vm5 = vcmp.gt.f32.partialorder %v209_v25, 0.0  ;;  %v337_v35 = vmul.f32 0.2, %v209_v25 }
  0x48   :  { %vm274_vm6 = vcmp.gt.f32.partialorder %v210_v26, 0.0  ;;  %464 = vst [vmem:[%s1033_s3 + $0x1a0] sm:$0xff] %v400_v34  ;;  %v338_v36 = vmul.f32 0.2, %v210_v26  ;;  %v211_v37 = vadd.f32 %v513_v2, %v140_v27  ;;  %v212_v38 = vadd.f32 %v513_v2, %v141_v29 }
  0x49   :  { %v213_v39 = vadd.f32 %v513_v2, %v142_v30  ;;  %v401_v40 = vsel %vm273_vm5, %v209_v25, %v337_v35  ;;  %v214_v41 = vadd.f32 %v513_v2, %v143_v31  ;;  %v144_v42 = vmul.f32 %v508_v1, %v73_v32 }
  0x4a   :  { %v145_v43 = vmul.f32 %v508_v1, %v74_v33  ;;  %465 = vst [vmem:[%s1033_s3 + $0x1a8] sm:$0xff] %v401_v40  ;;  %v402_v44 = vsel %vm274_vm6, %v210_v26, %v338_v36  ;;  %vm275_vm7 = vcmp.gt.f32.partialorder %v211_v37, 0.0  ;;  %v339_v45 = vmul.f32 0.2, %v211_v37 }
  0x4b   :  { %vm276_vm8 = vcmp.gt.f32.partialorder %v212_v38, 0.0  ;;  %466 = vst [vmem:[%s1033_s3 + $0x1b0] sm:$0xff] %v402_v44  ;;  %v340_v48 = vmul.f32 0.2, %v212_v38  ;;  %vm277_vm9 = vcmp.gt.f32.partialorder %v213_v39, 0.0  ;;  %vm278_vm10 = vcmp.gt.f32.partialorder %v214_v41, 0.0 }
  0x4c   :  { %v341_v49 = vmul.f32 0.2, %v213_v39  ;;  %v403_v50 = vsel %vm275_vm7, %v211_v37, %v339_v45  ;;  %v342_v51 = vmul.f32 0.2, %v214_v41  ;;  %v215_v52 = vadd.f32 %v513_v2, %v144_v42 }
  0x4d   :  { %v216_v53 = vadd.f32 %v513_v2, %v145_v43  ;;  %467 = vst [vmem:[%s1033_s3 + $0x1b8] sm:$0xff] %v403_v50  ;;  %v404_v55 = vsel %vm276_vm8, %v212_v38, %v340_v48  ;;  %v146_v57 = vmul.f32 %v508_v1, %v75_v46  ;;  %v147_v58 = vmul.f32 %v508_v1, %v76_v47 }
  0x4e   :  { %v405_v56 = vsel %vm277_vm9, %v213_v39, %v341_v49  ;;  %468 = vst [vmem:[%s1033_s3 + $0x1c0] sm:$0xff] %v404_v55  ;;  %v406_v59 = vsel %vm278_vm10, %v214_v41, %v342_v51  ;;  %vm279_vm11 = vcmp.gt.f32.partialorder %v215_v52, 0.0  ;;  %v343_v60 = vmul.f32 0.2, %v215_v52 }
  0x4f   :  { %469 = vst [vmem:[%s1033_s3 + $0x1c8] sm:$0xff] %v405_v56  ;;  %vm280_vm12 = vcmp.gt.f32.partialorder %v216_v53, 0.0  ;;  %470 = vst [vmem:[%s1033_s3 + $0x1d0] sm:$0xff] %v406_v59  ;;  %v344_v61 = vmul.f32 0.2, %v216_v53  ;;  %v217_v62 = vadd.f32 %v513_v2, %v146_v57  ;;  %v218_v63 = vadd.f32 %v513_v2, %v147_v58 }
  0x50   :  { %v148_v0 = vmul.f32 %v508_v1, %v77_v54  ;;  %v407_v3 = vsel %vm279_vm11, %v215_v52, %v343_v60 }
  0x51   :  { %471 = vst [vmem:[%s1033_s3 + $0x1d8] sm:$0xff] %v407_v3  ;;  %v408_v4 = vsel %vm280_vm12, %v216_v53, %v344_v61  ;;  %vm281_vm13 = vcmp.gt.f32.partialorder %v217_v62, 0.0  ;;  %v345_v5 = vmul.f32 0.2, %v217_v62  ;;  %vm282_vm14 = vcmp.gt.f32.partialorder %v218_v63, 0.0 }
  0x52   :  { %472 = vst [vmem:[%s1033_s3 + $0x1e0] sm:$0xff] %v408_v4  ;;  %v346_v6 = vmul.f32 0.2, %v218_v63  ;;  %v219_v7 = vadd.f32 %v513_v2, %v148_v0 }
  0x53   :  { %v409_v8 = vsel %vm281_vm13, %v217_v62, %v345_v5 }
  0x54   :  { %473 = vst [vmem:[%s1033_s3 + $0x1e8] sm:$0xff] %v409_v8  ;;  %v410_v1 = vsel %vm282_vm14, %v218_v63, %v346_v6  ;;  %vm283_vm15 = vcmp.gt.f32.partialorder %v219_v7, 0.0  ;;  %v347_v9 = vmul.f32 0.2, %v219_v7 }
  0x55   :  { %474 = vst [vmem:[%s1033_s3 + $0x1f0] sm:$0xff] %v410_v1 }
  0x56   :  { %v411_v10 = vsel %vm283_vm15, %v219_v7, %v347_v9 }
  0x57   :  { %475 = vst [vmem:[%s1033_s3 + $0x1f8] sm:$0xff] %v411_v10 }

// kernel: conv_generator_transpose.15
= control target key start
LH: loop header
LB: loop body
LE: loop exit
PB: predicated region body
PF: predicated region fallthrough
CT: control target
= control target key end

     0   :  { %s1658_s15 = smov 0   ;;  %s1660_s16 = smov 0   ;;  %s2100_s0 = inlined_call_operand.vmem [shape: f32[4,512,64], index: 0, kind: input, shape index: {}]   ;;  %s2101_s1 = inlined_call_operand.vmem [shape: f32[4,64,128], index: 1, kind: input, shape index: {}]   ;;  %s2102_s2 = inlined_call_operand.vmem [shape: f32[4,512,128], index: 2, kind: output, shape index: {0}]   ;;  %s2103_s3 = inlined_call_operand.vmem [shape: f32[1,128], index: 3, kind: output, shape index: {1}]   ;;  %s2104_s4 = inlined_call_operand.vmem [shape: f32[1,128], index: 4, kind: output, shape index: {2}]  }
   0x1   :  { %s1662_s17 = smov 0  }
   0x2 LB: > { %s27_s18 = sadd.s32 1, %s1626_s16  ;;  %p1297_p0 = scmp.ge.s32.totalorder %s1630_s17, 1  ;;  %s1630_s17 = sphi %s1662_s17, %s15_s17   ;;  %s1626_s16 = sphi %s1660_s16, %s2106_s16   ;;  %s1622_s15 = sphi %s1658_s15, %s2105_s15  }
   0x3   : > { %p29_p1 = scmp.ge.s32.totalorder %s27_s18, 4  ;;  %p188_p2 = scmp.lt.s32.totalorder %s1630_s17, 5 }
   0x5   : > { %s2108_s18 = smov (%p29_p1, %s27_s18), 0  ;;  %p189_p3 = pnand %p1297_p0, %p188_p2 }
   0x6   : > { %p228_p4 = scmp.lt.s32.totalorder (!%p189_p3), %s1622_s15, 3  ;;  %p252_p5 = scmp.eq.s32.totalorder (!%p189_p3), %s1622_s15, 0 }
   0x7   : > { %192 = sbr.rel (%p189_p3) target bundleno = 398 (0x18e), region = 28 }
   0xe   : > { %s2110_s15 = smov (!%p228_p4, %s1622_s15), 3  ;;  %257 = sbr.rel (!%p252_p5) target bundleno = 21 (0x15), region = 32 }
   0xf   : > { %s1371_s19 = sshll.u32 %s2110_s15, 9  ;;  %s1372_s20 = sshll.u32 %s2110_s15, 6  ;;  %v1632_v0 = vmov (%p252_p5), 0.0  }
  0x10   : > { %s1679_s23 = scalar_lea.vmem %s2100_s0, %s1371_s19  ;;  %s241_s26 = scalar_lea.vmem %s2101_s1, %s1372_s20  ;;  %258 = vst [vmem:[%s2103_s3] sm:$0x1] (%p252_p5), %v1632_v0  ;;  %259 = vst [vmem:[%s2104_s4] sm:$0x1] (%p252_p5), %v1632_v0 }
  0x11   : > { %s1687_s29 = scalar_lea.vmem %s2102_s2, %s1371_s19 }
  0x15 PF: > { %v324_v1 = vld [vmem:[%s241_s26] sm:$0xff]  ;;  %v325_v2 = vld [vmem:[%s241_s26 + $0x8] sm:$0xff]  ;;  %v326_v3 = vld [vmem:[%s241_s26 + $0x10] sm:$0xff]  ;;  %vm332_vm0 = vcmask 523264  }
  0x16   : > { %v1559_v4 = vpack.c.bf16 %v325_v2, %v324_v1  ;;  %v327_v5 = vld [vmem:[%s241_s26 + $0x18] sm:$0xff]  ;;  %v328_v7 = vld [vmem:[%s241_s26 + $0x20] sm:$0xff]  ;;  %v329_v8 = vld [vmem:[%s241_s26 + $0x28] sm:$0xff] }
  0x17   : > { %v1563_v6 = vpack.c.bf16 %v327_v5, %v326_v3  ;;  %v260_v9 = vld [vmem:[%s1679_s23] sm:$0xff]  ;;  %v1567_v10 = vpack.c.bf16 %v329_v8, %v328_v7  ;;  %v330_v11 = vld [vmem:[%s241_s26 + $0x30] sm:$0xff]  ;;  %v331_v12 = vld [vmem:[%s241_s26 + $0x38] sm:$0xff] }
  0x18   : > { %1560 = vmatprep.subr.bf16.mxu0 %v1559_v4  ;;  %1463 = vmatprep.mubr.msk.f32.mxu0 %vm332_vm0, %v260_v9  ;;  %v1571_v13 = vpack.c.bf16 %v331_v12, %v330_v11  ;;  %v292_v14 = vld [vmem:[%s1679_s23 + $0x100] sm:$0xff]  ;;  %v261_v15 = vld [vmem:[%s1679_s23 + $0x8] sm:$0xff]  ;;  %v262_v16 = vld [vmem:[%s1679_s23 + $0x10] sm:$0xff] }
  0x19   : > { %1562 = vmatpush3.bf16.msra.mxu0 %v1559_v4  ;;  %1575 = vmatprep.subr.bf16.mxu1 %v1559_v4  ;;  %v293_v17 = vld [vmem:[%s1679_s23 + $0x108] sm:$0xff]  ;;  %v294_v18 = vld [vmem:[%s1679_s23 + $0x110] sm:$0xff]  ;;  %v263_v19 = vld [vmem:[%s1679_s23 + $0x18] sm:$0xff] }
  0x1a   : > { %1564 = vmatprep.subr.bf16.mxu0 %v1563_v6  ;;  %1579 = vmatpush3.bf16.msra.mxu1 %v1559_v4  ;;  %v264_v20 = vld [vmem:[%s1679_s23 + $0x20] sm:$0xff]  ;;  %v295_v21 = vld [vmem:[%s1679_s23 + $0x118] sm:$0xff]  ;;  %v265_v23 = vld [vmem:[%s1679_s23 + $0x28] sm:$0xff] }
  0x1b   : > { %1576 = vmatprep.subr.bf16.mxu1 %v1563_v6  ;;  %1511 = vmatprep.mubr.msk.f32.mxu1 %vm332_vm0, %v292_v14  ;;  %v296_v22 = vld [vmem:[%s1679_s23 + $0x120] sm:$0xff]  ;;  %v266_v24 = vld [vmem:[%s1679_s23 + $0x30] sm:$0xff]  ;;  %v297_v25 = vld [vmem:[%s1679_s23 + $0x128] sm:$0xff] }
  0x1c   : > { %v298_v26 = vld [vmem:[%s1679_s23 + $0x130] sm:$0xff]  ;;  %v267_v27 = vld [vmem:[%s1679_s23 + $0x38] sm:$0xff]  ;;  %v268_v28 = vld [vmem:[%s1679_s23 + $0x40] sm:$0xff] }
  0x1d   : > { %1566 = vmatpush3.bf16.msra.mxu0 %v1563_v6  ;;  %v299_v29 = vld [vmem:[%s1679_s23 + $0x138] sm:$0xff]  ;;  %v300_v30 = vld [vmem:[%s1679_s23 + $0x140] sm:$0xff]  ;;  %v269_v31 = vld [vmem:[%s1679_s23 + $0x48] sm:$0xff] }
  0x1e   : > { %1568 = vmatprep.subr.bf16.mxu0 %v1567_v10  ;;  %1580 = vmatpush3.bf16.msra.mxu1 %v1563_v6  ;;  %v270_v32 = vld [vmem:[%s1679_s23 + $0x50] sm:$0xff]  ;;  %v301_v33 = vld [vmem:[%s1679_s23 + $0x148] sm:$0xff]  ;;  %v271_v35 = vld [vmem:[%s1679_s23 + $0x58] sm:$0xff] }
  0x1f   : > { %1577 = vmatprep.subr.bf16.mxu1 %v1567_v10  ;;  %v302_v34 = vld [vmem:[%s1679_s23 + $0x150] sm:$0xff]  ;;  %v272_v36 = vld [vmem:[%s1679_s23 + $0x60] sm:$0xff]  ;;  %v303_v37 = vld [vmem:[%s1679_s23 + $0x158] sm:$0xff] }
  0x20   : > { %v304_v38 = vld [vmem:[%s1679_s23 + $0x160] sm:$0xff]  ;;  %v273_v39 = vld [vmem:[%s1679_s23 + $0x68] sm:$0xff]  ;;  %v274_v40 = vld [vmem:[%s1679_s23 + $0x70] sm:$0xff] }
  0x21   : > { %1570 = vmatpush3.bf16.msra.mxu0 %v1567_v10  ;;  %v305_v41 = vld [vmem:[%s1679_s23 + $0x168] sm:$0xff]  ;;  %v306_v42 = vld [vmem:[%s1679_s23 + $0x170] sm:$0xff]  ;;  %v275_v43 = vld [vmem:[%s1679_s23 + $0x78] sm:$0xff] }
  0x22   : > { %1572 = vmatprep.subr.bf16.mxu0 %v1571_v13  ;;  %1581 = vmatpush3.bf16.msra.mxu1 %v1567_v10  ;;  %v276_v44 = vld [vmem:[%s1679_s23 + $0x80] sm:$0xff]  ;;  %v307_v45 = vld [vmem:[%s1679_s23 + $0x178] sm:$0xff]  ;;  %v277_v47 = vld [vmem:[%s1679_s23 + $0x88] sm:$0xff] }
  0x23   : > { %1578 = vmatprep.subr.bf16.mxu1 %v1571_v13  ;;  %v308_v46 = vld [vmem:[%s1679_s23 + $0x180] sm:$0xff]  ;;  %v278_v48 = vld [vmem:[%s1679_s23 + $0x90] sm:$0xff]  ;;  %v309_v49 = vld [vmem:[%s1679_s23 + $0x188] sm:$0xff] }
  0x24   : > { %v310_v50 = vld [vmem:[%s1679_s23 + $0x190] sm:$0xff]  ;;  %v279_v51 = vld [vmem:[%s1679_s23 + $0x98] sm:$0xff]  ;;  %v280_v52 = vld [vmem:[%s1679_s23 + $0xa0] sm:$0xff] }
  0x25   : > { %1574 = vmatpush3.bf16.msra.mxu0 %v1571_v13  ;;  %v311_v53 = vld [vmem:[%s1679_s23 + $0x198] sm:$0xff]  ;;  %v312_v54 = vld [vmem:[%s1679_s23 + $0x1a0] sm:$0xff]  ;;  %v281_v55 = vld [vmem:[%s1679_s23 + $0xa8] sm:$0xff] }
  0x26   : > { %1582 = vmatpush3.bf16.msra.mxu1 %v1571_v13  ;;  %v282_v56 = vld [vmem:[%s1679_s23 + $0xb0] sm:$0xff]  ;;  %v313_v57 = vld [vmem:[%s1679_s23 + $0x1a8] sm:$0xff]  ;;  %v283_v59 = vld [vmem:[%s1679_s23 + $0xb8] sm:$0xff] }
  0x27   : > { %v314_v58 = vld [vmem:[%s1679_s23 + $0x1b0] sm:$0xff]  ;;  %v284_v60 = vld [vmem:[%s1679_s23 + $0xc0] sm:$0xff]  ;;  %v315_v61 = vld [vmem:[%s1679_s23 + $0x1b8] sm:$0xff] }
  0x28   : > { %1464 = vmatmul.mubr.msk.f32.vlgmr.msra.gmra.mrb[0].mxu0 %vm332_vm0, %v261_v15  ;;  %v316_v62 = vld [vmem:[%s1679_s23 + $0x1c0] sm:$0xff]  ;;  %v285_v63 = vld [vmem:[%s1679_s23 + $0xc8] sm:$0xff]  ;;  %v286_v0 = vld [vmem:[%s1679_s23 + $0xd0] sm:$0xff] }
  0x29   : > { %1466 = vmatprep.mubr.msk.f32.mxu0 %vm332_vm0, %v262_v16  ;;  %1512 = vmatmul.mubr.msk.f32.vlgmr.msra.gmra.mrb[0].mxu1 %vm332_vm0, %v293_v17  ;;  %v317_v1 = vld [vmem:[%s1679_s23 + $0x1c8] sm:$0xff]  ;;  %v318_v2 = vld [vmem:[%s1679_s23 + $0x1d0] sm:$0xff]  ;;  %v287_v3 = vld [vmem:[%s1679_s23 + $0xd8] sm:$0xff] }
  0x2a   : > { %1514 = vmatprep.mubr.msk.f32.mxu1 %vm332_vm0, %v294_v18  ;;  %v288_v4 = vld [vmem:[%s1679_s23 + $0xe0] sm:$0xff]  ;;  %v319_v5 = vld [vmem:[%s1679_s23 + $0x1d8] sm:$0xff]  ;;  %v289_v7 = vld [vmem:[%s1679_s23 + $0xe8] sm:$0xff] }
  0x2b   : > { %v320_v6 = vld [vmem:[%s1679_s23 + $0x1e0] sm:$0xff]  ;;  %v290_v8 = vld [vmem:[%s1679_s23 + $0xf0] sm:$0xff]  ;;  %v321_v9 = vld [vmem:[%s1679_s23 + $0x1e8] sm:$0xff] }
  0x2c   : > { %1467 = vmatmul.mubr.msk.f32.gmra.mrb[2].mxu0 %vm332_vm0, %v263_v19  ;;  %v322_v10 = vld [vmem:[%s1679_s23 + $0x1f0] sm:$0xff]  ;;  %v291_v11 = vld [vmem:[%s1679_s23 + $0xf8] sm:$0xff] }
  0x2d   : > { %1469 = vmatprep.mubr.msk.f32.mxu0 %vm332_vm0, %v264_v20  ;;  %1515 = vmatmul.mubr.msk.f32.gmra.mrb[2].mxu1 %vm332_vm0, %v295_v21  ;;  %v323_v12 = vld [vmem:[%s1679_s23 + $0x1f8] sm:$0xff] }
  0x2e   : > { %1517 = vmatprep.mubr.msk.f32.mxu1 %vm332_vm0, %v296_v22 }
  0x30   : > { %1470 = vmatmul.mubr.msk.f32.gmra.mrb[4].mxu0 %vm332_vm0, %v265_v23 }
  0x31   : > { %1472 = vmatprep.mubr.msk.f32.mxu0 %vm332_vm0, %v266_v24  ;;  %1518 = vmatmul.mubr.msk.f32.gmra.mrb[4].mxu1 %vm332_vm0, %v297_v25 }
  0x32   : > { %1520 = vmatprep.mubr.msk.f32.mxu1 %vm332_vm0, %v298_v26 }
  0x34   : > { %1473 = vmatmul.mubr.msk.f32.gmra.mrb[6].mxu0 %vm332_vm0, %v267_v27 }
  0x35   : > { %1475 = vmatprep.mubr.msk.f32.mxu0 %vm332_vm0, %v268_v28  ;;  %1521 = vmatmul.mubr.msk.f32.gmra.mrb[6].mxu1 %vm332_vm0, %v299_v29 }
  0x36   : > { %1523 = vmatprep.mubr.msk.f32.mxu1 %vm332_vm0, %v300_v30 }
  0x38   : > { %1476 = vmatmul.mubr.msk.f32.gmra.mrb[8].mxu0 %vm332_vm0, %v269_v31 }
  0x39   : > { %1478 = vmatprep.mubr.msk.f32.mxu0 %vm332_vm0, %v270_v32  ;;  %1524 = vmatmul.mubr.msk.f32.gmra.mrb[8].mxu1 %vm332_vm0, %v301_v33 }
  0x3a   : > { %1526 = vmatprep.mubr.msk.f32.mxu1 %vm332_vm0, %v302_v34 }
  0x3c   : > { %1479 = vmatmul.mubr.msk.f32.gmra.mrb[10].mxu0 %vm332_vm0, %v271_v35 }
  0x3d   : > { %1481 = vmatprep.mubr.msk.f32.mxu0 %vm332_vm0, %v272_v36  ;;  %1527 = vmatmul.mubr.msk.f32.gmra.mrb[10].mxu1 %vm332_vm0, %v303_v37 }
  0x3e   : > { %1529 = vmatprep.mubr.msk.f32.mxu1 %vm332_vm0, %v304_v38 }
  0x40   : > { %1482 = vmatmul.mubr.msk.f32.gmra.mrb[12].mxu0 %vm332_vm0, %v273_v39 }
  0x41   : > { %1484 = vmatprep.mubr.msk.f32.mxu0 %vm332_vm0, %v274_v40  ;;  %1530 = vmatmul.mubr.msk.f32.gmra.mrb[12].mxu1 %vm332_vm0, %v305_v41 }
  0x42   : > { %1532 = vmatprep.mubr.msk.f32.mxu1 %vm332_vm0, %v306_v42 }
  0x44   : > { %1485 = vmatmul.mubr.msk.f32.gmra.mrb[14].mxu0 %vm332_vm0, %v275_v43 }
  0x45   : > { %1487 = vmatprep.mubr.msk.f32.mxu0 %vm332_vm0, %v276_v44  ;;  %1533 = vmatmul.mubr.msk.f32.gmra.mrb[14].mxu1 %vm332_vm0, %v307_v45 }
  0x46   : > { %1535 = vmatprep.mubr.msk.f32.mxu1 %vm332_vm0, %v308_v46 }
  0x48   : > { %1488 = vmatmul.mubr.msk.f32.gmra.mrb[16].mxu0 %vm332_vm0, %v277_v47 }
  0x49   : > { %1490 = vmatprep.mubr.msk.f32.mxu0 %vm332_vm0, %v278_v48  ;;  %1536 = vmatmul.mubr.msk.f32.gmra.mrb[16].mxu1 %vm332_vm0, %v309_v49 }
  0x4a   : > { %1538 = vmatprep.mubr.msk.f32.mxu1 %vm332_vm0, %v310_v50 }
  0x4c   : > { %1491 = vmatmul.mubr.msk.f32.gmra.mrb[18].mxu0 %vm332_vm0, %v279_v51 }
  0x4d   : > { %1493 = vmatprep.mubr.msk.f32.mxu0 %vm332_vm0, %v280_v52  ;;  %1539 = vmatmul.mubr.msk.f32.gmra.mrb[18].mxu1 %vm332_vm0, %v311_v53 }
  0x4e   : > { %1541 = vmatprep.mubr.msk.f32.mxu1 %vm332_vm0, %v312_v54 }
  0x50   : > { %1494 = vmatmul.mubr.msk.f32.gmra.mrb[20].mxu0 %vm332_vm0, %v281_v55 }
  0x51   : > { %1496 = vmatprep.mubr.msk.f32.mxu0 %vm332_vm0, %v282_v56  ;;  %1542 = vmatmul.mubr.msk.f32.gmra.mrb[20].mxu1 %vm332_vm0, %v313_v57 }
  0x52   : > { %1544 = vmatprep.mubr.msk.f32.mxu1 %vm332_vm0, %v314_v58 }
  0x54   : > { %1497 = vmatmul.mubr.msk.f32.gmra.mrb[22].mxu0 %vm332_vm0, %v283_v59 }
  0x55   : > { %1499 = vmatprep.mubr.msk.f32.mxu0 %vm332_vm0, %v284_v60  ;;  %1545 = vmatmul.mubr.msk.f32.gmra.mrb[22].mxu1 %vm332_vm0, %v315_v61 }
  0x56   : > { %1547 = vmatprep.mubr.msk.f32.mxu1 %vm332_vm0, %v316_v62 }
  0x58   : > { %1500 = vmatmul.mubr.msk.f32.gmra.mrb[24].mxu0 %vm332_vm0, %v285_v63 }
  0x59   : > { %1502 = vmatprep.mubr.msk.f32.mxu0 %vm332_vm0, %v286_v0  ;;  %1548 = vmatmul.mubr.msk.f32.gmra.mrb[24].mxu1 %vm332_vm0, %v317_v1 }
  0x5a   : > { %1550 = vmatprep.mubr.msk.f32.mxu1 %vm332_vm0, %v318_v2 }
  0x5c   : > { %1503 = vmatmul.mubr.msk.f32.gmra.mrb[26].mxu0 %vm332_vm0, %v287_v3 }
  0x5d   : > { %1505 = vmatprep.mubr.msk.f32.mxu0 %vm332_vm0, %v288_v4  ;;  %1551 = vmatmul.mubr.msk.f32.gmra.mrb[26].mxu1 %vm332_vm0, %v319_v5 }
  0x5e   : > { %1553 = vmatprep.mubr.msk.f32.mxu1 %vm332_vm0, %v320_v6 }
  0x60   : > { %1506 = vmatmul.mubr.msk.f32.gmra.mrb[28].mxu0 %vm332_vm0, %v289_v7 }
  0x61   : > { %1508 = vmatprep.mubr.msk.f32.mxu0 %vm332_vm0, %v290_v8  ;;  %1554 = vmatmul.mubr.msk.f32.gmra.mrb[28].mxu1 %vm332_vm0, %v321_v9 }
  0x62   : > { %1556 = vmatprep.mubr.msk.f32.mxu1 %vm332_vm0, %v322_v10 }
  0x64   : > { %1509 = vmatmul.mubr.msk.f32.gmra.mrb[30].mxu0 %vm332_vm0, %v291_v11 }
  0x65   : > { %1557 = vmatmul.mubr.msk.f32.gmra.mrb[30].mxu1 %vm332_vm0, %v323_v12 }
  0xfb   : > { %v1465_v13 = vpop.f32.mrb[0].mxu0 }
  0xfc   : > { %911 = vst [vmem:[%s1687_s29 + $0x8] sm:$0xff] %v1465_v13  ;;  %v1048_v14 = vmul.f32 %v1465_v13, %v1465_v13  ;;  %v591_v15 = vpop.f32.mrb[1].mxu0  ;;  %v1824_v16 = vpop.f32.mrb[0].mxu1 }
  0xfd   : > { %910 = vst [vmem:[%s1687_s29] sm:$0xff] %v591_v15  ;;  %v975_v17 = vadd.f32 %v1465_v13, %v591_v15  ;;  %v1047_v18 = vmul.f32 %v591_v15, %v591_v15  ;;  %943 = vst [vmem:[%s1687_s29 + $0x108] sm:$0xff] %v1824_v16  ;;  %v1829_v19 = vpop.f32.mrb[1].mxu1 }
  0xfe   : > { %942 = vst [vmem:[%s1687_s29 + $0x100] sm:$0xff] %v1829_v19 }
  0xff   : > { %v1111_v20 = vadd.f32 %v1048_v14, %v1047_v18  ;;  %v1468_v21 = vpop.f32.mrb[2].mxu0 }
 0x100   : > { %913 = vst [vmem:[%s1687_s29 + $0x18] sm:$0xff] %v1468_v21  ;;  %v601_v22 = vpop.f32.mrb[3].mxu0  ;;  %v1834_v23 = vpop.f32.mrb[2].mxu1  ;;  %v1050_v27 = vmul.f32 %v1468_v21, %v1468_v21 }
 0x101   : > { %912 = vst [vmem:[%s1687_s29 + $0x10] sm:$0xff] %v601_v22  ;;  %v976_v24 = vadd.f32 %v975_v17, %v601_v22  ;;  %v1049_v25 = vmul.f32 %v601_v22, %v601_v22  ;;  %945 = vst [vmem:[%s1687_s29 + $0x118] sm:$0xff] %v1834_v23  ;;  %v1839_v26 = vpop.f32.mrb[3].mxu1 }
 0x102   : > { %944 = vst [vmem:[%s1687_s29 + $0x110] sm:$0xff] %v1839_v26 }
 0x103   : > { %v1112_v28 = vadd.f32 %v1111_v20, %v1049_v25  ;;  %v1471_v29 = vpop.f32.mrb[4].mxu0  ;;  %v977_v30 = vadd.f32 %v1468_v21, %v976_v24 }
 0x104   : > { %915 = vst [vmem:[%s1687_s29 + $0x28] sm:$0xff] %v1471_v29  ;;  %v611_v31 = vpop.f32.mrb[5].mxu0  ;;  %v1844_v32 = vpop.f32.mrb[4].mxu1  ;;  %v1052_v37 = vmul.f32 %v1471_v29, %v1471_v29 }
 0x105   : > { %914 = vst [vmem:[%s1687_s29 + $0x20] sm:$0xff] %v611_v31  ;;  %v978_v33 = vadd.f32 %v977_v30, %v611_v31  ;;  %v1051_v34 = vmul.f32 %v611_v31, %v611_v31  ;;  %v1113_v35 = vadd.f32 %v1112_v28, %v1050_v27  ;;  %947 = vst [vmem:[%s1687_s29 + $0x128] sm:$0xff] %v1844_v32  ;;  %v1849_v36 = vpop.f32.mrb[5].mxu1 }
 0x106   : > { %946 = vst [vmem:[%s1687_s29 + $0x120] sm:$0xff] %v1849_v36 }
 0x107   : > { %v1114_v38 = vadd.f32 %v1113_v35, %v1051_v34  ;;  %v1474_v39 = vpop.f32.mrb[6].mxu0  ;;  %v979_v40 = vadd.f32 %v1471_v29, %v978_v33 }
 0x108   : > { %917 = vst [vmem:[%s1687_s29 + $0x38] sm:$0xff] %v1474_v39  ;;  %v621_v41 = vpop.f32.mrb[7].mxu0  ;;  %v1854_v42 = vpop.f32.mrb[6].mxu1  ;;  %v1054_v47 = vmul.f32 %v1474_v39, %v1474_v39 }
 0x109   : > { %916 = vst [vmem:[%s1687_s29 + $0x30] sm:$0xff] %v621_v41  ;;  %v980_v43 = vadd.f32 %v979_v40, %v621_v41  ;;  %v1053_v44 = vmul.f32 %v621_v41, %v621_v41  ;;  %v1115_v45 = vadd.f32 %v1114_v38, %v1052_v37  ;;  %949 = vst [vmem:[%s1687_s29 + $0x138] sm:$0xff] %v1854_v42  ;;  %v1859_v46 = vpop.f32.mrb[7].mxu1 }
 0x10a   : > { %948 = vst [vmem:[%s1687_s29 + $0x130] sm:$0xff] %v1859_v46 }
 0x10b   : > { %v1116_v48 = vadd.f32 %v1115_v45, %v1053_v44  ;;  %v1477_v49 = vpop.f32.mrb[8].mxu0  ;;  %v981_v50 = vadd.f32 %v1474_v39, %v980_v43 }
 0x10c   : > { %919 = vst [vmem:[%s1687_s29 + $0x48] sm:$0xff] %v1477_v49  ;;  %v631_v51 = vpop.f32.mrb[9].mxu0  ;;  %v1864_v52 = vpop.f32.mrb[8].mxu1  ;;  %v1056_v57 = vmul.f32 %v1477_v49, %v1477_v49 }
 0x10d   : > { %918 = vst [vmem:[%s1687_s29 + $0x40] sm:$0xff] %v631_v51  ;;  %v982_v53 = vadd.f32 %v981_v50, %v631_v51  ;;  %v1055_v54 = vmul.f32 %v631_v51, %v631_v51  ;;  %v1117_v55 = vadd.f32 %v1116_v48, %v1054_v47  ;;  %951 = vst [vmem:[%s1687_s29 + $0x148] sm:$0xff] %v1864_v52  ;;  %v1869_v56 = vpop.f32.mrb[9].mxu1 }
 0x10e   : > { %950 = vst [vmem:[%s1687_s29 + $0x140] sm:$0xff] %v1869_v56 }
 0x10f   : > { %v1118_v58 = vadd.f32 %v1117_v55, %v1055_v54  ;;  %v1480_v59 = vpop.f32.mrb[10].mxu0  ;;  %v983_v60 = vadd.f32 %v1477_v49, %v982_v53 }
 0x110   : > { %921 = vst [vmem:[%s1687_s29 + $0x58] sm:$0xff] %v1480_v59  ;;  %v641_v61 = vpop.f32.mrb[11].mxu0  ;;  %v1874_v62 = vpop.f32.mrb[10].mxu1  ;;  %v1058_v3 = vmul.f32 %v1480_v59, %v1480_v59 }
 0x111   : > { %920 = vst [vmem:[%s1687_s29 + $0x50] sm:$0xff] %v641_v61  ;;  %v984_v63 = vadd.f32 %v983_v60, %v641_v61  ;;  %v1057_v0 = vmul.f32 %v641_v61, %v641_v61  ;;  %v1119_v1 = vadd.f32 %v1118_v58, %v1056_v57  ;;  %953 = vst [vmem:[%s1687_s29 + $0x158] sm:$0xff] %v1874_v62  ;;  %v1879_v2 = vpop.f32.mrb[11].mxu1 }
 0x112   : > { %952 = vst [vmem:[%s1687_s29 + $0x150] sm:$0xff] %v1879_v2 }
 0x113   : > { %v1120_v4 = vadd.f32 %v1119_v1, %v1057_v0  ;;  %v1483_v5 = vpop.f32.mrb[12].mxu0  ;;  %v985_v6 = vadd.f32 %v1480_v59, %v984_v63 }
 0x114   : > { %923 = vst [vmem:[%s1687_s29 + $0x68] sm:$0xff] %v1483_v5  ;;  %v651_v7 = vpop.f32.mrb[13].mxu0  ;;  %v1884_v8 = vpop.f32.mrb[12].mxu1  ;;  %v1060_v13 = vmul.f32 %v1483_v5, %v1483_v5 }
 0x115   : > { %922 = vst [vmem:[%s1687_s29 + $0x60] sm:$0xff] %v651_v7  ;;  %v986_v9 = vadd.f32 %v985_v6, %v651_v7  ;;  %v1059_v10 = vmul.f32 %v651_v7, %v651_v7  ;;  %v1121_v11 = vadd.f32 %v1120_v4, %v1058_v3  ;;  %955 = vst [vmem:[%s1687_s29 + $0x168] sm:$0xff] %v1884_v8  ;;  %v1889_v12 = vpop.f32.mrb[13].mxu1 }
 0x116   : > { %954 = vst [vmem:[%s1687_s29 + $0x160] sm:$0xff] %v1889_v12 }
 0x117   : > { %v1122_v14 = vadd.f32 %v1121_v11, %v1059_v10  ;;  %v1486_v15 = vpop.f32.mrb[14].mxu0  ;;  %v987_v17 = vadd.f32 %v1483_v5, %v986_v9 }
 0x118   : > { %925 = vst [vmem:[%s1687_s29 + $0x78] sm:$0xff] %v1486_v15  ;;  %v661_v18 = vpop.f32.mrb[15].mxu0  ;;  %v1894_v20 = vpop.f32.mrb[14].mxu1  ;;  %v1062_v27 = vmul.f32 %v1486_v15, %v1486_v15 }
 0x119   : > { %924 = vst [vmem:[%s1687_s29 + $0x70] sm:$0xff] %v661_v18  ;;  %v988_v21 = vadd.f32 %v987_v17, %v661_v18  ;;  %v1061_v22 = vmul.f32 %v661_v18, %v661_v18  ;;  %v1123_v24 = vadd.f32 %v1122_v14, %v1060_v13  ;;  %957 = vst [vmem:[%s1687_s29 + $0x178] sm:$0xff] %v1894_v20  ;;  %v1899_v25 = vpop.f32.mrb[15].mxu1 }
 0x11a   : > { %956 = vst [vmem:[%s1687_s29 + $0x170] sm:$0xff] %v1899_v25 }
 0x11b   : > { %v1124_v28 = vadd.f32 %v1123_v24, %v1061_v22  ;;  %v1489_v29 = vpop.f32.mrb[16].mxu0  ;;  %v989_v30 = vadd.f32 %v1486_v15, %v988_v21 }
 0x11c   : > { %927 = vst [vmem:[%s1687_s29 + $0x88] sm:$0xff] %v1489_v29  ;;  %v671_v31 = vpop.f32.mrb[17].mxu0  ;;  %v1904_v33 = vpop.f32.mrb[16].mxu1  ;;  %v1064_v39 = vmul.f32 %v1489_v29, %v1489_v29 }
 0x11d   : > { %926 = vst [vmem:[%s1687_s29 + $0x80] sm:$0xff] %v671_v31  ;;  %v990_v34 = vadd.f32 %v989_v30, %v671_v31  ;;  %v1063_v35 = vmul.f32 %v671_v31, %v671_v31  ;;  %v1125_v37 = vadd.f32 %v1124_v28, %v1062_v27  ;;  %959 = vst [vmem:[%s1687_s29 + $0x188] sm:$0xff] %v1904_v33  ;;  %v1909_v38 = vpop.f32.mrb[17].mxu1 }
 0x11e   : > { %958 = vst [vmem:[%s1687_s29 + $0x180] sm:$0xff] %v1909_v38 }
 0x11f   : > { %v1126_v40 = vadd.f32 %v1125_v37, %v1063_v35  ;;  %v1492_v41 = vpop.f32.mrb[18].mxu0  ;;  %v991_v43 = vadd.f32 %v1489_v29, %v990_v34 }
 0x120   : > { %929 = vst [vmem:[%s1687_s29 + $0x98] sm:$0xff] %v1492_v41  ;;  %v681_v44 = vpop.f32.mrb[19].mxu0  ;;  %v1914_v45 = vpop.f32.mrb[18].mxu1  ;;  %v1066_v51 = vmul.f32 %v1492_v41, %v1492_v41 }
 0x121   : > { %928 = vst [vmem:[%s1687_s29 + $0x90] sm:$0xff] %v681_v44  ;;  %v992_v47 = vadd.f32 %v991_v43, %v681_v44  ;;  %v1065_v48 = vmul.f32 %v681_v44, %v681_v44  ;;  %v1127_v49 = vadd.f32 %v1126_v40, %v1064_v39  ;;  %961 = vst [vmem:[%s1687_s29 + $0x198] sm:$0xff] %v1914_v45  ;;  %v1919_v50 = vpop.f32.mrb[19].mxu1 }
 0x122   : > { %960 = vst [vmem:[%s1687_s29 + $0x190] sm:$0xff] %v1919_v50 }
 0x123   : > { %v1128_v53 = vadd.f32 %v1127_v49, %v1065_v48  ;;  %v1495_v54 = vpop.f32.mrb[20].mxu0  ;;  %v993_v55 = vadd.f32 %v1492_v41, %v992_v47 }
 0x124   : > { %931 = vst [vmem:[%s1687_s29 + $0xa8] sm:$0xff] %v1495_v54  ;;  %v691_v57 = vpop.f32.mrb[21].mxu0  ;;  %v1924_v58 = vpop.f32.mrb[20].mxu1  ;;  %v1068_v0 = vmul.f32 %v1495_v54, %v1495_v54 }
 0x125   : > { %930 = vst [vmem:[%s1687_s29 + $0xa0] sm:$0xff] %v691_v57  ;;  %v994_v59 = vadd.f32 %v993_v55, %v691_v57  ;;  %v1067_v60 = vmul.f32 %v691_v57, %v691_v57  ;;  %v1129_v61 = vadd.f32 %v1128_v53, %v1066_v51  ;;  %963 = vst [vmem:[%s1687_s29 + $0x1a8] sm:$0xff] %v1924_v58  ;;  %v1929_v63 = vpop.f32.mrb[21].mxu1 }
 0x126   : > { %962 = vst [vmem:[%s1687_s29 + $0x1a0] sm:$0xff] %v1929_v63 }
 0x127   : > { %v1130_v1 = vadd.f32 %v1129_v61, %v1067_v60  ;;  %v1498_v3 = vpop.f32.mrb[22].mxu0  ;;  %v995_v4 = vadd.f32 %v1495_v54, %v994_v59 }
 0x128   : > { %933 = vst [vmem:[%s1687_s29 + $0xb8] sm:$0xff] %v1498_v3  ;;  %v701_v5 = vpop.f32.mrb[23].mxu0  ;;  %v1934_v6 = vpop.f32.mrb[22].mxu1  ;;  %v1070_v13 = vmul.f32 %v1498_v3, %v1498_v3 }
 0x129   : > { %932 = vst [vmem:[%s1687_s29 + $0xb0] sm:$0xff] %v701_v5  ;;  %v996_v7 = vadd.f32 %v995_v4, %v701_v5  ;;  %v1069_v9 = vmul.f32 %v701_v5, %v701_v5  ;;  %v1131_v10 = vadd.f32 %v1130_v1, %v1068_v0  ;;  %965 = vst [vmem:[%s1687_s29 + $0x1b8] sm:$0xff] %v1934_v6  ;;  %v1939_v11 = vpop.f32.mrb[23].mxu1 }
 0x12a   : > { %964 = vst [vmem:[%s1687_s29 + $0x1b0] sm:$0xff] %v1939_v11 }
 0x12b   : > { %v1132_v14 = vadd.f32 %v1131_v10, %v1069_v9  ;;  %v1501_v15 = vpop.f32.mrb[24].mxu0  ;;  %v997_v17 = vadd.f32 %v1498_v3, %v996_v7 }
 0x12c   : > { %935 = vst [vmem:[%s1687_s29 + $0xc8] sm:$0xff] %v1501_v15  ;;  %v711_v18 = vpop.f32.mrb[25].mxu0  ;;  %v1944_v21 = vpop.f32.mrb[24].mxu1  ;;  %v1072_v29 = vmul.f32 %v1501_v15, %v1501_v15 }
 0x12d   : > { %934 = vst [vmem:[%s1687_s29 + $0xc0] sm:$0xff] %v711_v18  ;;  %v998_v22 = vadd.f32 %v997_v17, %v711_v18  ;;  %v1071_v24 = vmul.f32 %v711_v18, %v711_v18  ;;  %v1133_v27 = vadd.f32 %v1132_v14, %v1070_v13  ;;  %967 = vst [vmem:[%s1687_s29 + $0x1c8] sm:$0xff] %v1944_v21  ;;  %v1949_v28 = vpop.f32.mrb[25].mxu1 }
 0x12e   : > { %966 = vst [vmem:[%s1687_s29 + $0x1c0] sm:$0xff] %v1949_v28  ;;  %v1079_v17 = vmul.f32 %v1829_v19, %v1829_v19 }
 0x12f   : > { %v1134_v30 = vadd.f32 %v1133_v27, %v1071_v24  ;;  %v1504_v31 = vpop.f32.mrb[26].mxu0  ;;  %v999_v34 = vadd.f32 %v1501_v15, %v998_v22  ;;  %v1080_v24 = vmul.f32 %v1824_v16, %v1824_v16 }
 0x130   : > { %937 = vst [vmem:[%s1687_s29 + $0xd8] sm:$0xff] %v1504_v31  ;;  %v721_v35 = vpop.f32.mrb[27].mxu0  ;;  %v1954_v37 = vpop.f32.mrb[26].mxu1  ;;  %v1074_v44 = vmul.f32 %v1504_v31, %v1504_v31 }
 0x131   : > { %936 = vst [vmem:[%s1687_s29 + $0xd0] sm:$0xff] %v721_v35  ;;  %v1000_v39 = vadd.f32 %v999_v34, %v721_v35  ;;  %v1073_v40 = vmul.f32 %v721_v35, %v721_v35  ;;  %v1135_v41 = vadd.f32 %v1134_v30, %v1072_v29  ;;  %969 = vst [vmem:[%s1687_s29 + $0x1d8] sm:$0xff] %v1954_v37  ;;  %v1959_v43 = vpop.f32.mrb[27].mxu1 }
 0x132   : > { %968 = vst [vmem:[%s1687_s29 + $0x1d0] sm:$0xff] %v1959_v43  ;;  %v1081_v30 = vmul.f32 %v1839_v26, %v1839_v26  ;;  %v1082_v35 = vmul.f32 %v1834_v23, %v1834_v23 }
 0x133   : > { %v1136_v47 = vadd.f32 %v1135_v41, %v1073_v40  ;;  %v1507_v48 = vpop.f32.mrb[28].mxu0  ;;  %v1001_v49 = vadd.f32 %v1504_v31, %v1000_v39 }
 0x134   : > { %939 = vst [vmem:[%s1687_s29 + $0xe8] sm:$0xff] %v1507_v48  ;;  %v731_v51 = vpop.f32.mrb[29].mxu0  ;;  %v1964_v53 = vpop.f32.mrb[28].mxu1  ;;  %v1076_v60 = vmul.f32 %v1507_v48, %v1507_v48 }
 0x135   : > { %938 = vst [vmem:[%s1687_s29 + $0xe0] sm:$0xff] %v731_v51  ;;  %v1002_v54 = vadd.f32 %v1001_v49, %v731_v51  ;;  %v1075_v55 = vmul.f32 %v731_v51, %v731_v51  ;;  %v1137_v57 = vadd.f32 %v1136_v47, %v1074_v44  ;;  %971 = vst [vmem:[%s1687_s29 + $0x1e8] sm:$0xff] %v1964_v53  ;;  %v1969_v59 = vpop.f32.mrb[29].mxu1 }
 0x136   : > { %970 = vst [vmem:[%s1687_s29 + $0x1e0] sm:$0xff] %v1969_v59 }
 0x137   : > { %v1138_v61 = vadd.f32 %v1137_v57, %v1075_v55  ;;  %v1510_v0 = vpop.f32.mrb[30].mxu0  ;;  %v1003_v1 = vadd.f32 %v1507_v48, %v1002_v54 }
 0x138   : > { %941 = vst [vmem:[%s1687_s29 + $0xf8] sm:$0xff] %v1510_v0  ;;  %v741_v3 = vpop.f32.mrb[31].mxu0  ;;  %v1974_v4 = vpop.f32.mrb[30].mxu1  ;;  %v1078_v13 = vmul.f32 %v1510_v0, %v1510_v0 }
 0x139   : > { %940 = vst [vmem:[%s1687_s29 + $0xf0] sm:$0xff] %v741_v3  ;;  %v1004_v5 = vadd.f32 %v1003_v1, %v741_v3  ;;  %v1077_v7 = vmul.f32 %v741_v3, %v741_v3  ;;  %v1139_v9 = vadd.f32 %v1138_v61, %v1076_v60  ;;  %973 = vst [vmem:[%s1687_s29 + $0x1f8] sm:$0xff] %v1974_v4  ;;  %v1979_v10 = vpop.f32.mrb[31].mxu1 }
 0x13a   : > { %972 = vst [vmem:[%s1687_s29 + $0x1f0] sm:$0xff] %v1979_v10 }
 0x13b   : > { %v1005_v14 = vadd.f32 %v1510_v0, %v1004_v5  ;;  %v1140_v15 = vadd.f32 %v1139_v9, %v1077_v7 }
 0x13d   : > { %v1141_v18 = vadd.f32 %v1140_v15, %v1078_v13  ;;  %v1006_v22 = vadd.f32 %v1005_v14, %v1829_v19  ;;  %v1083_v19 = vmul.f32 %v1849_v36, %v1849_v36 }
 0x13f   : > { %v1142_v27 = vadd.f32 %v1141_v18, %v1079_v17  ;;  %v1007_v29 = vadd.f32 %v1824_v16, %v1006_v22  ;;  %v1084_v16 = vmul.f32 %v1844_v32, %v1844_v32 }
 0x141   : > { %v1008_v31 = vadd.f32 %v1007_v29, %v1839_v26  ;;  %v1143_v34 = vadd.f32 %v1142_v27, %v1080_v24  ;;  %v1085_v26 = vmul.f32 %v1859_v46, %v1859_v46 }
 0x143   : > { %v1144_v39 = vadd.f32 %v1143_v34, %v1081_v30  ;;  %v1009_v40 = vadd.f32 %v1834_v23, %v1008_v31  ;;  %v1086_v23 = vmul.f32 %v1854_v42, %v1854_v42 }
 0x145   : > { %v1010_v41 = vadd.f32 %v1009_v40, %v1849_v36  ;;  %v1145_v44 = vadd.f32 %v1144_v39, %v1082_v35  ;;  %v1087_v36 = vmul.f32 %v1869_v56, %v1869_v56 }
 0x147   : > { %v1146_v47 = vadd.f32 %v1145_v44, %v1083_v19  ;;  %v1011_v48 = vadd.f32 %v1844_v32, %v1010_v41  ;;  %v1088_v32 = vmul.f32 %v1864_v52, %v1864_v52 }
 0x149   : > { %v1012_v49 = vadd.f32 %v1011_v48, %v1859_v46  ;;  %v1147_v51 = vadd.f32 %v1146_v47, %v1084_v16  ;;  %v1089_v46 = vmul.f32 %v1879_v2, %v1879_v2 }
 0x14b   : > { %v1148_v54 = vadd.f32 %v1147_v51, %v1085_v26  ;;  %v1013_v55 = vadd.f32 %v1854_v42, %v1012_v49  ;;  %v1090_v42 = vmul.f32 %v1874_v62, %v1874_v62 }
 0x14d   : > { %v1014_v57 = vadd.f32 %v1013_v55, %v1869_v56  ;;  %v1149_v60 = vadd.f32 %v1148_v54, %v1086_v23  ;;  %v1091_v56 = vmul.f32 %v1889_v12, %v1889_v12 }
 0x14f   : > { %v1150_v61 = vadd.f32 %v1149_v60, %v1087_v36  ;;  %v1015_v0 = vadd.f32 %v1864_v52, %v1014_v57  ;;  %v1092_v52 = vmul.f32 %v1884_v8, %v1884_v8 }
 0x151   : > { %v1016_v1 = vadd.f32 %v1015_v0, %v1879_v2  ;;  %v1151_v3 = vadd.f32 %v1150_v61, %v1088_v32  ;;  %v1093_v2 = vmul.f32 %v1899_v25, %v1899_v25 }
 0x153   : > { %v1152_v5 = vadd.f32 %v1151_v3, %v1089_v46  ;;  %v1017_v7 = vadd.f32 %v1874_v62, %v1016_v1  ;;  %v1094_v62 = vmul.f32 %v1894_v20, %v1894_v20 }
 0x155   : > { %v1018_v9 = vadd.f32 %v1017_v7, %v1889_v12  ;;  %v1153_v13 = vadd.f32 %v1152_v5, %v1090_v42  ;;  %v1095_v12 = vmul.f32 %v1909_v38, %v1909_v38 }
 0x157   : > { %v1154_v14 = vadd.f32 %v1153_v13, %v1091_v56  ;;  %v1019_v15 = vadd.f32 %v1884_v8, %v1018_v9  ;;  %v1096_v8 = vmul.f32 %v1904_v33, %v1904_v33 }
 0x159   : > { %v1020_v17 = vadd.f32 %v1019_v15, %v1899_v25  ;;  %v1155_v18 = vadd.f32 %v1154_v14, %v1092_v52  ;;  %v1097_v25 = vmul.f32 %v1919_v50, %v1919_v50 }
 0x15b   : > { %v1156_v22 = vadd.f32 %v1155_v18, %v1093_v2  ;;  %v1021_v24 = vadd.f32 %v1894_v20, %v1020_v17  ;;  %v1098_v20 = vmul.f32 %v1914_v45, %v1914_v45 }
 0x15d   : > { %v1022_v27 = vadd.f32 %v1021_v24, %v1909_v38  ;;  %v1157_v29 = vadd.f32 %v1156_v22, %v1094_v62  ;;  %v1099_v38 = vmul.f32 %v1929_v63, %v1929_v63 }
 0x15f   : > { %v1158_v30 = vadd.f32 %v1157_v29, %v1095_v12  ;;  %v1023_v31 = vadd.f32 %v1904_v33, %v1022_v27  ;;  %v1100_v33 = vmul.f32 %v1924_v58, %v1924_v58 }
 0x161   : > { %v1024_v34 = vadd.f32 %v1023_v31, %v1919_v50  ;;  %v1159_v35 = vadd.f32 %v1158_v30, %v1096_v8  ;;  %v1101_v50 = vmul.f32 %v1939_v11, %v1939_v11 }
 0x163   : > { %v1160_v39 = vadd.f32 %v1159_v35, %v1097_v25  ;;  %v1025_v40 = vadd.f32 %v1914_v45, %v1024_v34  ;;  %v1102_v45 = vmul.f32 %v1934_v6, %v1934_v6 }
 0x165   : > { %v1026_v19 = vadd.f32 %v1025_v40, %v1929_v63  ;;  %v1161_v41 = vadd.f32 %v1160_v39, %v1098_v20  ;;  %v1103_v63 = vmul.f32 %v1949_v28, %v1949_v28 }
 0x167   : > { %v1162_v44 = vadd.f32 %v1161_v41, %v1099_v38  ;;  %v1027_v16 = vadd.f32 %v1924_v58, %v1026_v19  ;;  %v1104_v58 = vmul.f32 %v1944_v21, %v1944_v21 }
 0x169   : > { %v1028_v47 = vadd.f32 %v1027_v16, %v1939_v11  ;;  %v1163_v48 = vadd.f32 %v1162_v44, %v1100_v33  ;;  %v1105_v11 = vmul.f32 %v1959_v43, %v1959_v43 }
 0x16b   : > { %v1164_v26 = vadd.f32 %v1163_v48, %v1101_v50  ;;  %v1029_v49 = vadd.f32 %v1934_v6, %v1028_v47  ;;  %v1106_v6 = vmul.f32 %v1954_v37, %v1954_v37 }
 0x16d   : > { %v1030_v51 = vadd.f32 %v1029_v49, %v1949_v28  ;;  %v1165_v23 = vadd.f32 %v1164_v26, %v1102_v45  ;;  %v1107_v28 = vmul.f32 %v1969_v59, %v1969_v59 }
 0x16f   : > { %v1166_v54 = vadd.f32 %v1165_v23, %v1103_v63  ;;  %v1031_v55 = vadd.f32 %v1944_v21, %v1030_v51  ;;  %v1108_v21 = vmul.f32 %v1964_v53, %v1964_v53 }
 0x171   : > { %v1032_v36 = vadd.f32 %v1031_v55, %v1959_v43  ;;  %v1167_v57 = vadd.f32 %v1166_v54, %v1104_v58  ;;  %v1109_v43 = vmul.f32 %v1979_v10, %v1979_v10 }
 0x173   : > { %v1168_v60 = vadd.f32 %v1167_v57, %v1105_v11  ;;  %v1033_v32 = vadd.f32 %v1954_v37, %v1032_v36  ;;  %v1110_v37 = vmul.f32 %v1974_v4, %v1974_v4 }
 0x175   : > { %v1034_v61 = vadd.f32 %v1033_v32, %v1969_v59  ;;  %v1169_v0 = vadd.f32 %v1168_v60, %v1106_v6 }
 0x177   : > { %v1170_v46 = vadd.f32 %v1169_v0, %v1107_v28  ;;  %v1035_v1 = vadd.f32 %v1964_v53, %v1034_v61 }
 0x179   : > { %v1036_v3 = vadd.f32 %v1035_v1, %v1979_v10  ;;  %v1171_v42 = vadd.f32 %v1170_v46, %v1108_v21  ;;  %v974_v10 = vld [vmem:[%s2103_s3] sm:$0x1] }
 0x17b   : > { %v1037_v5 = vadd.f32 %v1974_v4, %v1036_v3  ;;  %v1172_v7 = vadd.f32 %v1171_v42, %v1109_v43  ;;  %v1046_v4 = vld [vmem:[%s2104_s4] sm:$0x1] }
 0x17d   : > { %v1038_v59 = vrot.slane %v1037_v5, 4  ;;  %v1173_v56 = vadd.f32 %v1172_v7, %v1110_v37 }
 0x17f   : > { %v1039_v9 = vadd.f32 %v1038_v59, %v1037_v5  ;;  %v1174_v13 = vrot.slane %v1173_v56, 4 }
 0x181   : > { %v1040_v52 = vrot.slane %v1039_v9, 2  ;;  %v1175_v14 = vadd.f32 %v1174_v13, %v1173_v56 }
 0x183   : > { %v1041_v15 = vadd.f32 %v1040_v52, %v1039_v9  ;;  %v1176_v53 = vrot.slane %v1175_v14, 2 }
 0x185   : > { %v1042_v2 = vrot.slane %v1041_v15, 1  ;;  %v1177_v17 = vadd.f32 %v1176_v53, %v1175_v14 }
 0x187   : > { %v1043_v18 = vadd.f32 %v1042_v2, %v1041_v15  ;;  %v1178_v62 = vrot.slane %v1177_v17, 1 }
 0x189   : > { %v1044_v22 = vadd.f32 %v1043_v18, %v974_v10  ;;  %v1179_v24 = vadd.f32 %v1178_v62, %v1177_v17 }
 0x18b   : > { %1045 = vst [vmem:[%s2103_s3] sm:$0x1] %v1044_v22  ;;  %v1180_v12 = vadd.f32 %v1179_v24, %v1046_v4 }
 0x18d   : > { %1181 = vst [vmem:[%s2104_s4] sm:$0x1] %v1180_v12 }
 0x18e PF: > { %s15_s17 = sadd.s32 1, %s1630_s17   ;;  %s2105_s15 = smov %s1626_s16 }
 0x18f   : > { %p12_p6 = scmp.ge.s32.totalorder %s15_s17, 6   ;;  %s2106_s16 = smov %s2108_s18 }
 0x191   :  { %14 = sbr.rel (!%p12_p6) target bundleno = 2 (0x2), region = 81 }

// kernel: conv_generator_transpose.16
= control target key start
LH: loop header
LB: loop body
LE: loop exit
PB: predicated region body
PF: predicated region fallthrough
CT: control target
= control target key end

     0   :  { %s1191_s12 = smov 0   ;;  %s1747_s0 = inlined_call_operand.vmem [shape: f32[2048,128], index: 0, kind: input, shape index: {}]   ;;  %s1748_s1 = inlined_call_operand.vmem [shape: f32[1,128], index: 1, kind: input, shape index: {}]   ;;  %s1749_s2 = inlined_call_operand.vmem [shape: f32[1,128], index: 2, kind: input, shape index: {}]   ;;  %s1750_s3 = inlined_call_operand.vmem [shape: f32[2048,128], index: 3, kind: output, shape index: {}]  }
   0x1 LB: > { %s1140_s13 = sadd.s32 4294967295, %s1169_s12   ;;  %p1144_p0 = scmp.ge.s32.totalorder %s1169_s12, 1  ;;  %s1169_s12 = sphi %s1191_s12, %s13_s12  }
   0x2   : > { %p138_p1 = scmp.lt.s32.totalorder %s1169_s12, 3 }
   0x4   : > { %p139_p2 = pnand %p1144_p0, %p138_p1 }
   0x5   : > { %s1145_s14 = sshll.u32 (!%p139_p2), %s1140_s13, 7  ;;  %v1205_v0 = vld [vmem:[%s1748_s1] ss:$0 sm:$0xff] (!%p139_p2) }
   0x6   : > { %142 = sbr.rel (%p139_p2) target bundleno = 182 (0xb6), region = 32  ;;  %p163_p3 = scmp.lt.s32.totalorder (!%p139_p2), %s1145_s14, 255  ;;  %v1215_v1 = vld [vmem:[%s1749_s2] ss:$0 sm:$0xff] (!%p139_p2) }
   0xd   : > { %s1752_s14 = smov (!%p163_p3, %s1145_s14), 255 }
   0xe   : > { %s1146_s15 = sshll.u32 %s1752_s14, 3 }
   0xf   : > { %s1210_s20 = scalar_lea.vmem %s1747_s0, %s1146_s15  ;;  %s1243_s25 = scalar_lea.vmem %s1750_s3, %s1146_s15 }
  0x10   : > { %v174_v2 = vld [vmem:[%s1210_s20] sm:$0xff]  ;;  %v175_v3 = vld [vmem:[%s1210_s20 + $0x8] sm:$0xff]  ;;  %v176_v4 = vld [vmem:[%s1210_s20 + $0x10] sm:$0xff] }
  0x11   : > { %v309_v5 = vmul.f32 %v1205_v0, %v174_v2  ;;  %v310_v6 = vmul.f32 %v1205_v0, %v175_v3  ;;  %v311_v7 = vmul.f32 %v1205_v0, %v176_v4  ;;  %v177_v8 = vld [vmem:[%s1210_s20 + $0x18] sm:$0xff]  ;;  %v178_v9 = vld [vmem:[%s1210_s20 + $0x20] sm:$0xff]  ;;  %v179_v10 = vld [vmem:[%s1210_s20 + $0x28] sm:$0xff] }
  0x12   : > { %v312_v11 = vmul.f32 %v1205_v0, %v177_v8  ;;  %v313_v12 = vmul.f32 %v1205_v0, %v178_v9  ;;  %v314_v13 = vmul.f32 %v1205_v0, %v179_v10  ;;  %v180_v14 = vld [vmem:[%s1210_s20 + $0x30] sm:$0xff]  ;;  %v181_v15 = vld [vmem:[%s1210_s20 + $0x38] sm:$0xff]  ;;  %v182_v24 = vld [vmem:[%s1210_s20 + $0x40] sm:$0xff] }
  0x13   : > { %v444_v16 = vadd.f32 %v1215_v1, %v309_v5  ;;  %v445_v17 = vadd.f32 %v1215_v1, %v310_v6  ;;  %v446_v18 = vadd.f32 %v1215_v1, %v311_v7  ;;  %v315_v19 = vmul.f32 %v1205_v0, %v180_v14  ;;  %v183_v32 = vld [vmem:[%s1210_s20 + $0x48] sm:$0xff]  ;;  %v184_v33 = vld [vmem:[%s1210_s20 + $0x50] sm:$0xff]  ;;  %v185_v34 = vld [vmem:[%s1210_s20 + $0x58] sm:$0xff] }
  0x14   : > { %v447_v20 = vadd.f32 %v1215_v1, %v312_v11  ;;  %v448_v21 = vadd.f32 %v1215_v1, %v313_v12  ;;  %v449_v22 = vadd.f32 %v1215_v1, %v314_v13  ;;  %v316_v23 = vmul.f32 %v1205_v0, %v181_v15  ;;  %v186_v46 = vld [vmem:[%s1210_s20 + $0x60] sm:$0xff]  ;;  %v187_v47 = vld [vmem:[%s1210_s20 + $0x68] sm:$0xff]  ;;  %v188_v58 = vld [vmem:[%s1210_s20 + $0x70] sm:$0xff] }
  0x15   : > { %vm572_vm0 = vcmp.gt.f32.partialorder %v444_v16, 0.0  ;;  %v700_v25 = vmul.f32 0.2, %v444_v16  ;;  %vm573_vm1 = vcmp.gt.f32.partialorder %v445_v17, 0.0  ;;  %v701_v26 = vmul.f32 0.2, %v445_v17 }
  0x16   : > { %vm574_vm2 = vcmp.gt.f32.partialorder %v446_v18, 0.0  ;;  %v702_v27 = vmul.f32 0.2, %v446_v18  ;;  %vm575_vm3 = vcmp.gt.f32.partialorder %v447_v20, 0.0  ;;  %v703_v28 = vmul.f32 0.2, %v447_v20 }
  0x17   : > { %v828_v29 = vsel %vm572_vm0, %v444_v16, %v700_v25  ;;  %v829_v30 = vsel %vm573_vm1, %v445_v17, %v701_v26  ;;  %vm576_vm4 = vcmp.gt.f32.partialorder %v448_v21, 0.0  ;;  %v704_v31 = vmul.f32 0.2, %v448_v21  ;;  %v189_v59 = vld [vmem:[%s1210_s20 + $0x78] sm:$0xff]  ;;  %v190_v6 = vld [vmem:[%s1210_s20 + $0x80] sm:$0xff]  ;;  %v191_v7 = vld [vmem:[%s1210_s20 + $0x88] sm:$0xff] }
  0x18   : > { %956 = vst [vmem:[%s1243_s25] sm:$0xff] %v828_v29  ;;  %957 = vst [vmem:[%s1243_s25 + $0x8] sm:$0xff] %v829_v30  ;;  %v830_v35 = vsel %vm574_vm2, %v446_v18, %v702_v27  ;;  %v831_v36 = vsel %vm575_vm3, %v447_v20, %v703_v28  ;;  %vm577_vm5 = vcmp.gt.f32.partialorder %v449_v22, 0.0  ;;  %v705_v37 = vmul.f32 0.2, %v449_v22  ;;  %v192_v12 = vld [vmem:[%s1210_s20 + $0x90] sm:$0xff]  ;;  %v193_v13 = vld [vmem:[%s1210_s20 + $0x98] sm:$0xff] }
  0x19   : > { %958 = vst [vmem:[%s1243_s25 + $0x10] sm:$0xff] %v830_v35  ;;  %959 = vst [vmem:[%s1243_s25 + $0x18] sm:$0xff] %v831_v36  ;;  %v832_v38 = vsel %vm576_vm4, %v448_v21, %v704_v31  ;;  %v450_v39 = vadd.f32 %v1215_v1, %v315_v19  ;;  %v451_v40 = vadd.f32 %v1215_v1, %v316_v23  ;;  %v195_v25 = vld [vmem:[%s1210_s20 + $0xa8] sm:$0xff]  ;;  %v196_v36 = vld [vmem:[%s1210_s20 + $0xb0] sm:$0xff] }
  0x1a   : > { %v317_v41 = vmul.f32 %v1205_v0, %v182_v24  ;;  %960 = vst [vmem:[%s1243_s25 + $0x20] sm:$0xff] %v832_v38  ;;  %v833_v42 = vsel %vm577_vm5, %v449_v22, %v705_v37  ;;  %v318_v43 = vmul.f32 %v1205_v0, %v183_v32  ;;  %v319_v44 = vmul.f32 %v1205_v0, %v184_v33  ;;  %v194_v24 = vld [vmem:[%s1210_s20 + $0xa0] sm:$0xff]  ;;  %v197_v37 = vld [vmem:[%s1210_s20 + $0xb8] sm:$0xff] }
  0x1b   : > { %v320_v45 = vmul.f32 %v1205_v0, %v185_v34  ;;  %961 = vst [vmem:[%s1243_s25 + $0x28] sm:$0xff] %v833_v42  ;;  %vm578_vm6 = vcmp.gt.f32.partialorder %v450_v39, 0.0  ;;  %v706_v48 = vmul.f32 0.2, %v450_v39  ;;  %vm579_vm7 = vcmp.gt.f32.partialorder %v451_v40, 0.0 }
  0x1c   : > { %v707_v49 = vmul.f32 0.2, %v451_v40  ;;  %v452_v50 = vadd.f32 %v1215_v1, %v317_v41  ;;  %v453_v51 = vadd.f32 %v1215_v1, %v318_v43  ;;  %v454_v52 = vadd.f32 %v1215_v1, %v319_v44 }
  0x1d   : > { %v455_v53 = vadd.f32 %v1215_v1, %v320_v45  ;;  %v834_v54 = vsel %vm578_vm6, %v450_v39, %v706_v48  ;;  %v321_v56 = vmul.f32 %v1205_v0, %v186_v46  ;;  %v322_v57 = vmul.f32 %v1205_v0, %v187_v47  ;;  %v198_v46 = vld [vmem:[%s1210_s20 + $0xc0] sm:$0xff]  ;;  %v199_v47 = vld [vmem:[%s1210_s20 + $0xc8] sm:$0xff] }
  0x1e   : > { %v835_v55 = vsel %vm579_vm7, %v451_v40, %v707_v49  ;;  %962 = vst [vmem:[%s1243_s25 + $0x30] sm:$0xff] %v834_v54  ;;  %vm580_vm8 = vcmp.gt.f32.partialorder %v452_v50, 0.0  ;;  %v708_v60 = vmul.f32 0.2, %v452_v50  ;;  %vm581_vm9 = vcmp.gt.f32.partialorder %v453_v51, 0.0 }
  0x1f   : > { %963 = vst [vmem:[%s1243_s25 + $0x38] sm:$0xff] %v835_v55  ;;  %v709_v61 = vmul.f32 0.2, %v453_v51  ;;  %vm582_vm10 = vcmp.gt.f32.partialorder %v454_v52, 0.0  ;;  %v710_v62 = vmul.f32 0.2, %v454_v52  ;;  %v456_v4 = vadd.f32 %v1215_v1, %v321_v56 }
  0x20   : > { %vm583_vm11 = vcmp.gt.f32.partialorder %v455_v53, 0.0  ;;  %v711_v63 = vmul.f32 0.2, %v455_v53  ;;  %v836_v2 = vsel %vm580_vm8, %v452_v50, %v708_v60  ;;  %v457_v5 = vadd.f32 %v1215_v1, %v322_v57 }
  0x21   : > { %v837_v3 = vsel %vm581_vm9, %v453_v51, %v709_v61  ;;  %964 = vst [vmem:[%s1243_s25 + $0x40] sm:$0xff] %v836_v2  ;;  %v838_v8 = vsel %vm582_vm10, %v454_v52, %v710_v62  ;;  %v323_v10 = vmul.f32 %v1205_v0, %v188_v58  ;;  %v324_v11 = vmul.f32 %v1205_v0, %v189_v59  ;;  %v200_v52 = vld [vmem:[%s1210_s20 + $0xd0] sm:$0xff]  ;;  %v202_v2 = vld [vmem:[%s1210_s20 + $0xe0] sm:$0xff] }
  0x22   : > { %965 = vst [vmem:[%s1243_s25 + $0x48] sm:$0xff] %v837_v3  ;;  %v839_v9 = vsel %vm583_vm11, %v455_v53, %v711_v63  ;;  %966 = vst [vmem:[%s1243_s25 + $0x50] sm:$0xff] %v838_v8  ;;  %vm584_vm12 = vcmp.gt.f32.partialorder %v456_v4, 0.0  ;;  %v712_v14 = vmul.f32 0.2, %v456_v4  ;;  %vm585_vm13 = vcmp.gt.f32.partialorder %v457_v5, 0.0 }
  0x23   : > { %967 = vst [vmem:[%s1243_s25 + $0x58] sm:$0xff] %v839_v9  ;;  %v713_v15 = vmul.f32 0.2, %v457_v5  ;;  %v458_v16 = vadd.f32 %v1215_v1, %v323_v10  ;;  %v459_v17 = vadd.f32 %v1215_v1, %v324_v11  ;;  %v325_v18 = vmul.f32 %v1205_v0, %v190_v6  ;;  %v201_v53 = vld [vmem:[%s1210_s20 + $0xd8] sm:$0xff]  ;;  %v203_v3 = vld [vmem:[%s1210_s20 + $0xe8] sm:$0xff] }
  0x24   : > { %v326_v19 = vmul.f32 %v1205_v0, %v191_v7  ;;  %v840_v20 = vsel %vm584_vm12, %v456_v4, %v712_v14  ;;  %v327_v22 = vmul.f32 %v1205_v0, %v192_v12  ;;  %v328_v23 = vmul.f32 %v1205_v0, %v193_v13  ;;  %v204_v14 = vld [vmem:[%s1210_s20 + $0xf0] sm:$0xff] }
  0x25   : > { %v841_v21 = vsel %vm585_vm13, %v457_v5, %v713_v15  ;;  %968 = vst [vmem:[%s1243_s25 + $0x60] sm:$0xff] %v840_v20  ;;  %vm586_vm14 = vcmp.gt.f32.partialorder %v458_v16, 0.0  ;;  %v714_v26 = vmul.f32 0.2, %v458_v16  ;;  %vm587_vm15 = vcmp.gt.f32.partialorder %v459_v17, 0.0  ;;  %v205_v15 = vld [vmem:[%s1210_s20 + $0xf8] sm:$0xff] }
  0x26   : > { %969 = vst [vmem:[%s1243_s25 + $0x68] sm:$0xff] %v841_v21  ;;  %v715_v27 = vmul.f32 0.2, %v459_v17  ;;  %v460_v28 = vadd.f32 %v1215_v1, %v325_v18  ;;  %v461_v29 = vadd.f32 %v1215_v1, %v326_v19  ;;  %v462_v30 = vadd.f32 %v1215_v1, %v327_v22 }
  0x27   : > { %v463_v31 = vadd.f32 %v1215_v1, %v328_v23  ;;  %v842_v32 = vsel %vm586_vm14, %v458_v16, %v714_v26  ;;  %v329_v34 = vmul.f32 %v1205_v0, %v194_v24  ;;  %v330_v35 = vmul.f32 %v1205_v0, %v195_v25  ;;  %v206_v24 = vld [vmem:[%s1210_s20 + $0x100] sm:$0xff]  ;;  %v207_v25 = vld [vmem:[%s1210_s20 + $0x108] sm:$0xff] }
  0x28   : > { %v843_v33 = vsel %vm587_vm15, %v459_v17, %v715_v27  ;;  %970 = vst [vmem:[%s1243_s25 + $0x70] sm:$0xff] %v842_v32  ;;  %vm588_vm0 = vcmp.gt.f32.partialorder %v460_v28, 0.0  ;;  %v716_v38 = vmul.f32 0.2, %v460_v28  ;;  %vm589_vm1 = vcmp.gt.f32.partialorder %v461_v29, 0.0 }
  0x29   : > { %971 = vst [vmem:[%s1243_s25 + $0x78] sm:$0xff] %v843_v33  ;;  %v717_v39 = vmul.f32 0.2, %v461_v29  ;;  %vm590_vm2 = vcmp.gt.f32.partialorder %v462_v30, 0.0  ;;  %v718_v40 = vmul.f32 0.2, %v462_v30  ;;  %v464_v44 = vadd.f32 %v1215_v1, %v329_v34 }
  0x2a   : > { %vm591_vm3 = vcmp.gt.f32.partialorder %v463_v31, 0.0  ;;  %v719_v41 = vmul.f32 0.2, %v463_v31  ;;  %v844_v42 = vsel %vm588_vm0, %v460_v28, %v716_v38  ;;  %v465_v45 = vadd.f32 %v1215_v1, %v330_v35 }
  0x2b   : > { %v845_v43 = vsel %vm589_vm1, %v461_v29, %v717_v39  ;;  %972 = vst [vmem:[%s1243_s25 + $0x80] sm:$0xff] %v844_v42  ;;  %v846_v48 = vsel %vm590_vm2, %v462_v30, %v718_v40  ;;  %v331_v50 = vmul.f32 %v1205_v0, %v196_v36  ;;  %v332_v51 = vmul.f32 %v1205_v0, %v197_v37  ;;  %v208_v30 = vld [vmem:[%s1210_s20 + $0x110] sm:$0xff]  ;;  %v210_v42 = vld [vmem:[%s1210_s20 + $0x120] sm:$0xff] }
  0x2c   : > { %973 = vst [vmem:[%s1243_s25 + $0x88] sm:$0xff] %v845_v43  ;;  %v847_v49 = vsel %vm591_vm3, %v463_v31, %v719_v41  ;;  %974 = vst [vmem:[%s1243_s25 + $0x90] sm:$0xff] %v846_v48  ;;  %vm592_vm4 = vcmp.gt.f32.partialorder %v464_v44, 0.0  ;;  %v720_v54 = vmul.f32 0.2, %v464_v44  ;;  %vm593_vm5 = vcmp.gt.f32.partialorder %v465_v45, 0.0 }
  0x2d   : > { %975 = vst [vmem:[%s1243_s25 + $0x98] sm:$0xff] %v847_v49  ;;  %v721_v55 = vmul.f32 0.2, %v465_v45  ;;  %v466_v56 = vadd.f32 %v1215_v1, %v331_v50  ;;  %v467_v57 = vadd.f32 %v1215_v1, %v332_v51  ;;  %v333_v58 = vmul.f32 %v1205_v0, %v198_v46  ;;  %v209_v31 = vld [vmem:[%s1210_s20 + $0x118] sm:$0xff]  ;;  %v211_v43 = vld [vmem:[%s1210_s20 + $0x128] sm:$0xff] }
  0x2e   : > { %v334_v59 = vmul.f32 %v1205_v0, %v199_v47  ;;  %v848_v60 = vsel %vm592_vm4, %v464_v44, %v720_v54  ;;  %v335_v62 = vmul.f32 %v1205_v0, %v200_v52  ;;  %v336_v63 = vmul.f32 %v1205_v0, %v201_v53  ;;  %v212_v54 = vld [vmem:[%s1210_s20 + $0x130] sm:$0xff] }
  0x2f   : > { %v849_v61 = vsel %vm593_vm5, %v465_v45, %v721_v55  ;;  %976 = vst [vmem:[%s1243_s25 + $0xa0] sm:$0xff] %v848_v60  ;;  %vm594_vm6 = vcmp.gt.f32.partialorder %v466_v56, 0.0  ;;  %v722_v4 = vmul.f32 0.2, %v466_v56  ;;  %vm595_vm7 = vcmp.gt.f32.partialorder %v467_v57, 0.0  ;;  %v213_v55 = vld [vmem:[%s1210_s20 + $0x138] sm:$0xff] }
  0x30   : > { %977 = vst [vmem:[%s1243_s25 + $0xa8] sm:$0xff] %v849_v61  ;;  %v723_v5 = vmul.f32 0.2, %v467_v57  ;;  %v468_v6 = vadd.f32 %v1215_v1, %v333_v58  ;;  %v469_v7 = vadd.f32 %v1215_v1, %v334_v59  ;;  %v470_v8 = vadd.f32 %v1215_v1, %v335_v62 }
  0x31   : > { %v471_v9 = vadd.f32 %v1215_v1, %v336_v63  ;;  %v850_v10 = vsel %vm594_vm6, %v466_v56, %v722_v4  ;;  %v337_v12 = vmul.f32 %v1205_v0, %v202_v2  ;;  %v338_v13 = vmul.f32 %v1205_v0, %v203_v3  ;;  %v214_v2 = vld [vmem:[%s1210_s20 + $0x140] sm:$0xff]  ;;  %v215_v3 = vld [vmem:[%s1210_s20 + $0x148] sm:$0xff] }
  0x32   : > { %v851_v11 = vsel %vm595_vm7, %v467_v57, %v723_v5  ;;  %978 = vst [vmem:[%s1243_s25 + $0xb0] sm:$0xff] %v850_v10  ;;  %vm596_vm8 = vcmp.gt.f32.partialorder %v468_v6, 0.0  ;;  %v724_v16 = vmul.f32 0.2, %v468_v6  ;;  %vm597_vm9 = vcmp.gt.f32.partialorder %v469_v7, 0.0 }
  0x33   : > { %979 = vst [vmem:[%s1243_s25 + $0xb8] sm:$0xff] %v851_v11  ;;  %v725_v17 = vmul.f32 0.2, %v469_v7  ;;  %vm598_vm10 = vcmp.gt.f32.partialorder %v470_v8, 0.0  ;;  %v726_v18 = vmul.f32 0.2, %v470_v8  ;;  %v472_v22 = vadd.f32 %v1215_v1, %v337_v12 }
  0x34   : > { %vm599_vm11 = vcmp.gt.f32.partialorder %v471_v9, 0.0  ;;  %v727_v19 = vmul.f32 0.2, %v471_v9  ;;  %v852_v20 = vsel %vm596_vm8, %v468_v6, %v724_v16  ;;  %v473_v23 = vadd.f32 %v1215_v1, %v338_v13 }
  0x35   : > { %v853_v21 = vsel %vm597_vm9, %v469_v7, %v725_v17  ;;  %980 = vst [vmem:[%s1243_s25 + $0xc0] sm:$0xff] %v852_v20  ;;  %v854_v26 = vsel %vm598_vm10, %v470_v8, %v726_v18  ;;  %v339_v28 = vmul.f32 %v1205_v0, %v204_v14  ;;  %v340_v29 = vmul.f32 %v1205_v0, %v205_v15  ;;  %v216_v8 = vld [vmem:[%s1210_s20 + $0x150] sm:$0xff]  ;;  %v218_v20 = vld [vmem:[%s1210_s20 + $0x160] sm:$0xff] }
  0x36   : > { %981 = vst [vmem:[%s1243_s25 + $0xc8] sm:$0xff] %v853_v21  ;;  %v855_v27 = vsel %vm599_vm11, %v471_v9, %v727_v19  ;;  %982 = vst [vmem:[%s1243_s25 + $0xd0] sm:$0xff] %v854_v26  ;;  %vm600_vm12 = vcmp.gt.f32.partialorder %v472_v22, 0.0  ;;  %v728_v32 = vmul.f32 0.2, %v472_v22  ;;  %vm601_vm13 = vcmp.gt.f32.partialorder %v473_v23, 0.0 }
  0x37   : > { %983 = vst [vmem:[%s1243_s25 + $0xd8] sm:$0xff] %v855_v27  ;;  %v729_v33 = vmul.f32 0.2, %v473_v23  ;;  %v474_v34 = vadd.f32 %v1215_v1, %v339_v28  ;;  %v475_v35 = vadd.f32 %v1215_v1, %v340_v29  ;;  %v341_v36 = vmul.f32 %v1205_v0, %v206_v24  ;;  %v217_v9 = vld [vmem:[%s1210_s20 + $0x158] sm:$0xff]  ;;  %v219_v21 = vld [vmem:[%s1210_s20 + $0x168] sm:$0xff] }
  0x38   : > { %v342_v37 = vmul.f32 %v1205_v0, %v207_v25  ;;  %v856_v38 = vsel %vm600_vm12, %v472_v22, %v728_v32  ;;  %v343_v40 = vmul.f32 %v1205_v0, %v208_v30  ;;  %v344_v41 = vmul.f32 %v1205_v0, %v209_v31  ;;  %v220_v32 = vld [vmem:[%s1210_s20 + $0x170] sm:$0xff] }
  0x39   : > { %v857_v39 = vsel %vm601_vm13, %v473_v23, %v729_v33  ;;  %984 = vst [vmem:[%s1243_s25 + $0xe0] sm:$0xff] %v856_v38  ;;  %vm602_vm14 = vcmp.gt.f32.partialorder %v474_v34, 0.0  ;;  %v730_v44 = vmul.f32 0.2, %v474_v34  ;;  %vm603_vm15 = vcmp.gt.f32.partialorder %v475_v35, 0.0  ;;  %v221_v33 = vld [vmem:[%s1210_s20 + $0x178] sm:$0xff] }
  0x3a   : > { %985 = vst [vmem:[%s1243_s25 + $0xe8] sm:$0xff] %v857_v39  ;;  %v731_v45 = vmul.f32 0.2, %v475_v35  ;;  %v476_v46 = vadd.f32 %v1215_v1, %v341_v36  ;;  %v477_v47 = vadd.f32 %v1215_v1, %v342_v37  ;;  %v478_v48 = vadd.f32 %v1215_v1, %v343_v40 }
  0x3b   : > { %v479_v49 = vadd.f32 %v1215_v1, %v344_v41  ;;  %v858_v50 = vsel %vm602_vm14, %v474_v34, %v730_v44  ;;  %v345_v52 = vmul.f32 %v1205_v0, %v210_v42  ;;  %v346_v53 = vmul.f32 %v1205_v0, %v211_v43  ;;  %v222_v42 = vld [vmem:[%s1210_s20 + $0x180] sm:$0xff]  ;;  %v223_v43 = vld [vmem:[%s1210_s20 + $0x188] sm:$0xff] }
  0x3c   : > { %v859_v51 = vsel %vm603_vm15, %v475_v35, %v731_v45  ;;  %986 = vst [vmem:[%s1243_s25 + $0xf0] sm:$0xff] %v858_v50  ;;  %vm604_vm0 = vcmp.gt.f32.partialorder %v476_v46, 0.0  ;;  %v732_v56 = vmul.f32 0.2, %v476_v46  ;;  %vm605_vm1 = vcmp.gt.f32.partialorder %v477_v47, 0.0 }
  0x3d   : > { %987 = vst [vmem:[%s1243_s25 + $0xf8] sm:$0xff] %v859_v51  ;;  %v733_v57 = vmul.f32 0.2, %v477_v47  ;;  %vm606_vm2 = vcmp.gt.f32.partialorder %v478_v48, 0.0  ;;  %v734_v58 = vmul.f32 0.2, %v478_v48  ;;  %v480_v62 = vadd.f32 %v1215_v1, %v345_v52 }
  0x3e   : > { %vm607_vm3 = vcmp.gt.f32.partialorder %v479_v49, 0.0  ;;  %v735_v59 = vmul.f32 0.2, %v479_v49  ;;  %v860_v60 = vsel %vm604_vm0, %v476_v46, %v732_v56  ;;  %v481_v63 = vadd.f32 %v1215_v1, %v346_v53 }
  0x3f   : > { %v861_v61 = vsel %vm605_vm1, %v477_v47, %v733_v57  ;;  %988 = vst [vmem:[%s1243_s25 + $0x100] sm:$0xff] %v860_v60  ;;  %v862_v4 = vsel %vm606_vm2, %v478_v48, %v734_v58  ;;  %v347_v6 = vmul.f32 %v1205_v0, %v212_v54  ;;  %v348_v7 = vmul.f32 %v1205_v0, %v213_v55  ;;  %v224_v48 = vld [vmem:[%s1210_s20 + $0x190] sm:$0xff]  ;;  %v226_v60 = vld [vmem:[%s1210_s20 + $0x1a0] sm:$0xff] }
  0x40   : > { %989 = vst [vmem:[%s1243_s25 + $0x108] sm:$0xff] %v861_v61  ;;  %v863_v5 = vsel %vm607_vm3, %v479_v49, %v735_v59  ;;  %990 = vst [vmem:[%s1243_s25 + $0x110] sm:$0xff] %v862_v4  ;;  %vm608_vm4 = vcmp.gt.f32.partialorder %v480_v62, 0.0  ;;  %v736_v10 = vmul.f32 0.2, %v480_v62  ;;  %vm609_vm5 = vcmp.gt.f32.partialorder %v481_v63, 0.0 }
  0x41   : > { %991 = vst [vmem:[%s1243_s25 + $0x118] sm:$0xff] %v863_v5  ;;  %v737_v11 = vmul.f32 0.2, %v481_v63  ;;  %v482_v12 = vadd.f32 %v1215_v1, %v347_v6  ;;  %v483_v13 = vadd.f32 %v1215_v1, %v348_v7  ;;  %v349_v14 = vmul.f32 %v1205_v0, %v214_v2  ;;  %v225_v49 = vld [vmem:[%s1210_s20 + $0x198] sm:$0xff]  ;;  %v227_v61 = vld [vmem:[%s1210_s20 + $0x1a8] sm:$0xff] }
  0x42   : > { %v350_v15 = vmul.f32 %v1205_v0, %v215_v3  ;;  %v864_v16 = vsel %vm608_vm4, %v480_v62, %v736_v10  ;;  %v351_v18 = vmul.f32 %v1205_v0, %v216_v8  ;;  %v352_v19 = vmul.f32 %v1205_v0, %v217_v9  ;;  %v228_v10 = vld [vmem:[%s1210_s20 + $0x1b0] sm:$0xff] }
  0x43   : > { %v865_v17 = vsel %vm609_vm5, %v481_v63, %v737_v11  ;;  %992 = vst [vmem:[%s1243_s25 + $0x120] sm:$0xff] %v864_v16  ;;  %vm610_vm6 = vcmp.gt.f32.partialorder %v482_v12, 0.0  ;;  %v738_v22 = vmul.f32 0.2, %v482_v12  ;;  %vm611_vm7 = vcmp.gt.f32.partialorder %v483_v13, 0.0  ;;  %v229_v11 = vld [vmem:[%s1210_s20 + $0x1b8] sm:$0xff] }
  0x44   : > { %993 = vst [vmem:[%s1243_s25 + $0x128] sm:$0xff] %v865_v17  ;;  %v739_v23 = vmul.f32 0.2, %v483_v13  ;;  %v484_v24 = vadd.f32 %v1215_v1, %v349_v14  ;;  %v485_v25 = vadd.f32 %v1215_v1, %v350_v15  ;;  %v486_v26 = vadd.f32 %v1215_v1, %v351_v18 }
  0x45   : > { %v487_v27 = vadd.f32 %v1215_v1, %v352_v19  ;;  %v866_v28 = vsel %vm610_vm6, %v482_v12, %v738_v22  ;;  %v353_v30 = vmul.f32 %v1205_v0, %v218_v20  ;;  %v354_v31 = vmul.f32 %v1205_v0, %v219_v21  ;;  %v230_v20 = vld [vmem:[%s1210_s20 + $0x1c0] sm:$0xff]  ;;  %v231_v21 = vld [vmem:[%s1210_s20 + $0x1c8] sm:$0xff] }
  0x46   : > { %v867_v29 = vsel %vm611_vm7, %v483_v13, %v739_v23  ;;  %994 = vst [vmem:[%s1243_s25 + $0x130] sm:$0xff] %v866_v28  ;;  %vm612_vm8 = vcmp.gt.f32.partialorder %v484_v24, 0.0  ;;  %v740_v34 = vmul.f32 0.2, %v484_v24  ;;  %vm613_vm9 = vcmp.gt.f32.partialorder %v485_v25, 0.0 }
  0x47   : > { %995 = vst [vmem:[%s1243_s25 + $0x138] sm:$0xff] %v867_v29  ;;  %v741_v35 = vmul.f32 0.2, %v485_v25  ;;  %vm614_vm10 = vcmp.gt.f32.partialorder %v486_v26, 0.0  ;;  %v742_v36 = vmul.f32 0.2, %v486_v26  ;;  %v488_v40 = vadd.f32 %v1215_v1, %v353_v30 }
  0x48   : > { %vm615_vm11 = vcmp.gt.f32.partialorder %v487_v27, 0.0  ;;  %v743_v37 = vmul.f32 0.2, %v487_v27  ;;  %v868_v38 = vsel %vm612_vm8, %v484_v24, %v740_v34  ;;  %v489_v41 = vadd.f32 %v1215_v1, %v354_v31 }
  0x49   : > { %v869_v39 = vsel %vm613_vm9, %v485_v25, %v741_v35  ;;  %996 = vst [vmem:[%s1243_s25 + $0x140] sm:$0xff] %v868_v38  ;;  %v870_v44 = vsel %vm614_vm10, %v486_v26, %v742_v36  ;;  %v355_v46 = vmul.f32 %v1205_v0, %v220_v32  ;;  %v356_v47 = vmul.f32 %v1205_v0, %v221_v33  ;;  %v232_v26 = vld [vmem:[%s1210_s20 + $0x1d0] sm:$0xff]  ;;  %v234_v38 = vld [vmem:[%s1210_s20 + $0x1e0] sm:$0xff] }
  0x4a   : > { %997 = vst [vmem:[%s1243_s25 + $0x148] sm:$0xff] %v869_v39  ;;  %v871_v45 = vsel %vm615_vm11, %v487_v27, %v743_v37  ;;  %998 = vst [vmem:[%s1243_s25 + $0x150] sm:$0xff] %v870_v44  ;;  %vm616_vm12 = vcmp.gt.f32.partialorder %v488_v40, 0.0  ;;  %v744_v50 = vmul.f32 0.2, %v488_v40  ;;  %vm617_vm13 = vcmp.gt.f32.partialorder %v489_v41, 0.0 }
  0x4b   : > { %999 = vst [vmem:[%s1243_s25 + $0x158] sm:$0xff] %v871_v45  ;;  %v745_v51 = vmul.f32 0.2, %v489_v41  ;;  %v490_v52 = vadd.f32 %v1215_v1, %v355_v46  ;;  %v491_v53 = vadd.f32 %v1215_v1, %v356_v47  ;;  %v357_v54 = vmul.f32 %v1205_v0, %v222_v42  ;;  %v233_v27 = vld [vmem:[%s1210_s20 + $0x1d8] sm:$0xff]  ;;  %v235_v39 = vld [vmem:[%s1210_s20 + $0x1e8] sm:$0xff] }
  0x4c   : > { %v358_v55 = vmul.f32 %v1205_v0, %v223_v43  ;;  %v872_v56 = vsel %vm616_vm12, %v488_v40, %v744_v50  ;;  %v359_v58 = vmul.f32 %v1205_v0, %v224_v48  ;;  %v360_v59 = vmul.f32 %v1205_v0, %v225_v49  ;;  %v236_v50 = vld [vmem:[%s1210_s20 + $0x1f0] sm:$0xff] }
  0x4d   : > { %v873_v57 = vsel %vm617_vm13, %v489_v41, %v745_v51  ;;  %1000 = vst [vmem:[%s1243_s25 + $0x160] sm:$0xff] %v872_v56  ;;  %vm618_vm14 = vcmp.gt.f32.partialorder %v490_v52, 0.0  ;;  %v746_v62 = vmul.f32 0.2, %v490_v52  ;;  %vm619_vm15 = vcmp.gt.f32.partialorder %v491_v53, 0.0  ;;  %v237_v51 = vld [vmem:[%s1210_s20 + $0x1f8] sm:$0xff] }
  0x4e   : > { %1001 = vst [vmem:[%s1243_s25 + $0x168] sm:$0xff] %v873_v57  ;;  %v747_v63 = vmul.f32 0.2, %v491_v53  ;;  %v492_v2 = vadd.f32 %v1215_v1, %v357_v54  ;;  %v493_v3 = vadd.f32 %v1215_v1, %v358_v55  ;;  %v494_v4 = vadd.f32 %v1215_v1, %v359_v58 }
  0x4f   : > { %v495_v5 = vadd.f32 %v1215_v1, %v360_v59  ;;  %v874_v6 = vsel %vm618_vm14, %v490_v52, %v746_v62  ;;  %v361_v8 = vmul.f32 %v1205_v0, %v226_v60  ;;  %v362_v9 = vmul.f32 %v1205_v0, %v227_v61  ;;  %v238_v60 = vld [vmem:[%s1210_s20 + $0x200] sm:$0xff]  ;;  %v239_v61 = vld [vmem:[%s1210_s20 + $0x208] sm:$0xff] }
  0x50   : > { %v875_v7 = vsel %vm619_vm15, %v491_v53, %v747_v63  ;;  %1002 = vst [vmem:[%s1243_s25 + $0x170] sm:$0xff] %v874_v6  ;;  %vm620_vm0 = vcmp.gt.f32.partialorder %v492_v2, 0.0  ;;  %v748_v12 = vmul.f32 0.2, %v492_v2  ;;  %vm621_vm1 = vcmp.gt.f32.partialorder %v493_v3, 0.0 }
  0x51   : > { %1003 = vst [vmem:[%s1243_s25 + $0x178] sm:$0xff] %v875_v7  ;;  %v749_v13 = vmul.f32 0.2, %v493_v3  ;;  %vm622_vm2 = vcmp.gt.f32.partialorder %v494_v4, 0.0  ;;  %v750_v14 = vmul.f32 0.2, %v494_v4  ;;  %v496_v18 = vadd.f32 %v1215_v1, %v361_v8 }
  0x52   : > { %vm623_vm3 = vcmp.gt.f32.partialorder %v495_v5, 0.0  ;;  %v751_v15 = vmul.f32 0.2, %v495_v5  ;;  %v876_v16 = vsel %vm620_vm0, %v492_v2, %v748_v12  ;;  %v497_v19 = vadd.f32 %v1215_v1, %v362_v9 }
  0x53   : > { %v877_v17 = vsel %vm621_vm1, %v493_v3, %v749_v13  ;;  %1004 = vst [vmem:[%s1243_s25 + $0x180] sm:$0xff] %v876_v16  ;;  %v878_v22 = vsel %vm622_vm2, %v494_v4, %v750_v14  ;;  %v363_v24 = vmul.f32 %v1205_v0, %v228_v10  ;;  %v364_v25 = vmul.f32 %v1205_v0, %v229_v11  ;;  %v240_v4 = vld [vmem:[%s1210_s20 + $0x210] sm:$0xff]  ;;  %v242_v16 = vld [vmem:[%s1210_s20 + $0x220] sm:$0xff] }
  0x54   : > { %1005 = vst [vmem:[%s1243_s25 + $0x188] sm:$0xff] %v877_v17  ;;  %v879_v23 = vsel %vm623_vm3, %v495_v5, %v751_v15  ;;  %1006 = vst [vmem:[%s1243_s25 + $0x190] sm:$0xff] %v878_v22  ;;  %vm624_vm4 = vcmp.gt.f32.partialorder %v496_v18, 0.0  ;;  %v752_v28 = vmul.f32 0.2, %v496_v18  ;;  %vm625_vm5 = vcmp.gt.f32.partialorder %v497_v19, 0.0 }
  0x55   : > { %1007 = vst [vmem:[%s1243_s25 + $0x198] sm:$0xff] %v879_v23  ;;  %v753_v29 = vmul.f32 0.2, %v497_v19  ;;  %v498_v30 = vadd.f32 %v1215_v1, %v363_v24  ;;  %v499_v31 = vadd.f32 %v1215_v1, %v364_v25  ;;  %v365_v32 = vmul.f32 %v1205_v0, %v230_v20  ;;  %v241_v5 = vld [vmem:[%s1210_s20 + $0x218] sm:$0xff]  ;;  %v243_v17 = vld [vmem:[%s1210_s20 + $0x228] sm:$0xff] }
  0x56   : > { %v366_v33 = vmul.f32 %v1205_v0, %v231_v21  ;;  %v880_v34 = vsel %vm624_vm4, %v496_v18, %v752_v28  ;;  %v367_v36 = vmul.f32 %v1205_v0, %v232_v26  ;;  %v368_v37 = vmul.f32 %v1205_v0, %v233_v27  ;;  %v244_v28 = vld [vmem:[%s1210_s20 + $0x230] sm:$0xff] }
  0x57   : > { %v881_v35 = vsel %vm625_vm5, %v497_v19, %v753_v29  ;;  %1008 = vst [vmem:[%s1243_s25 + $0x1a0] sm:$0xff] %v880_v34  ;;  %vm626_vm6 = vcmp.gt.f32.partialorder %v498_v30, 0.0  ;;  %v754_v40 = vmul.f32 0.2, %v498_v30  ;;  %vm627_vm7 = vcmp.gt.f32.partialorder %v499_v31, 0.0  ;;  %v245_v29 = vld [vmem:[%s1210_s20 + $0x238] sm:$0xff] }
  0x58   : > { %1009 = vst [vmem:[%s1243_s25 + $0x1a8] sm:$0xff] %v881_v35  ;;  %v755_v41 = vmul.f32 0.2, %v499_v31  ;;  %v500_v42 = vadd.f32 %v1215_v1, %v365_v32  ;;  %v501_v43 = vadd.f32 %v1215_v1, %v366_v33  ;;  %v502_v44 = vadd.f32 %v1215_v1, %v367_v36 }
  0x59   : > { %v503_v45 = vadd.f32 %v1215_v1, %v368_v37  ;;  %v882_v46 = vsel %vm626_vm6, %v498_v30, %v754_v40  ;;  %v369_v48 = vmul.f32 %v1205_v0, %v234_v38  ;;  %v370_v49 = vmul.f32 %v1205_v0, %v235_v39  ;;  %v246_v38 = vld [vmem:[%s1210_s20 + $0x240] sm:$0xff]  ;;  %v247_v39 = vld [vmem:[%s1210_s20 + $0x248] sm:$0xff] }
  0x5a   : > { %v883_v47 = vsel %vm627_vm7, %v499_v31, %v755_v41  ;;  %1010 = vst [vmem:[%s1243_s25 + $0x1b0] sm:$0xff] %v882_v46  ;;  %vm628_vm8 = vcmp.gt.f32.partialorder %v500_v42, 0.0  ;;  %v756_v52 = vmul.f32 0.2, %v500_v42  ;;  %vm629_vm9 = vcmp.gt.f32.partialorder %v501_v43, 0.0 }
  0x5b   : > { %1011 = vst [vmem:[%s1243_s25 + $0x1b8] sm:$0xff] %v883_v47  ;;  %v757_v53 = vmul.f32 0.2, %v501_v43  ;;  %vm630_vm10 = vcmp.gt.f32.partialorder %v502_v44, 0.0  ;;  %v758_v54 = vmul.f32 0.2, %v502_v44  ;;  %v504_v58 = vadd.f32 %v1215_v1, %v369_v48 }
  0x5c   : > { %vm631_vm11 = vcmp.gt.f32.partialorder %v503_v45, 0.0  ;;  %v759_v55 = vmul.f32 0.2, %v503_v45  ;;  %v884_v56 = vsel %vm628_vm8, %v500_v42, %v756_v52  ;;  %v505_v59 = vadd.f32 %v1215_v1, %v370_v49 }
  0x5d   : > { %v885_v57 = vsel %vm629_vm9, %v501_v43, %v757_v53  ;;  %1012 = vst [vmem:[%s1243_s25 + $0x1c0] sm:$0xff] %v884_v56  ;;  %v886_v62 = vsel %vm630_vm10, %v502_v44, %v758_v54  ;;  %v371_v2 = vmul.f32 %v1205_v0, %v236_v50  ;;  %v372_v3 = vmul.f32 %v1205_v0, %v237_v51  ;;  %v248_v44 = vld [vmem:[%s1210_s20 + $0x250] sm:$0xff]  ;;  %v250_v56 = vld [vmem:[%s1210_s20 + $0x260] sm:$0xff] }
  0x5e   : > { %1013 = vst [vmem:[%s1243_s25 + $0x1c8] sm:$0xff] %v885_v57  ;;  %v887_v63 = vsel %vm631_vm11, %v503_v45, %v759_v55  ;;  %1014 = vst [vmem:[%s1243_s25 + $0x1d0] sm:$0xff] %v886_v62  ;;  %vm632_vm12 = vcmp.gt.f32.partialorder %v504_v58, 0.0  ;;  %v760_v6 = vmul.f32 0.2, %v504_v58  ;;  %vm633_vm13 = vcmp.gt.f32.partialorder %v505_v59, 0.0 }
  0x5f   : > { %1015 = vst [vmem:[%s1243_s25 + $0x1d8] sm:$0xff] %v887_v63  ;;  %v761_v7 = vmul.f32 0.2, %v505_v59  ;;  %v506_v8 = vadd.f32 %v1215_v1, %v371_v2  ;;  %v507_v9 = vadd.f32 %v1215_v1, %v372_v3  ;;  %v373_v10 = vmul.f32 %v1205_v0, %v238_v60  ;;  %v249_v45 = vld [vmem:[%s1210_s20 + $0x258] sm:$0xff]  ;;  %v251_v57 = vld [vmem:[%s1210_s20 + $0x268] sm:$0xff] }
  0x60   : > { %v374_v11 = vmul.f32 %v1205_v0, %v239_v61  ;;  %v888_v12 = vsel %vm632_vm12, %v504_v58, %v760_v6  ;;  %v375_v14 = vmul.f32 %v1205_v0, %v240_v4  ;;  %v376_v15 = vmul.f32 %v1205_v0, %v241_v5  ;;  %v1530_v3 = vld [vmem:[%s1748_s1] ss:$0 sm:$0xff]  ;;  %v252_v6 = vld [vmem:[%s1210_s20 + $0x270] sm:$0xff] }
  0x61   : > { %v889_v13 = vsel %vm633_vm13, %v505_v59, %v761_v7  ;;  %1016 = vst [vmem:[%s1243_s25 + $0x1e0] sm:$0xff] %v888_v12  ;;  %vm634_vm14 = vcmp.gt.f32.partialorder %v506_v8, 0.0  ;;  %v762_v18 = vmul.f32 0.2, %v506_v8  ;;  %vm635_vm15 = vcmp.gt.f32.partialorder %v507_v9, 0.0  ;;  %v253_v7 = vld [vmem:[%s1210_s20 + $0x278] sm:$0xff] }
  0x62   : > { %1017 = vst [vmem:[%s1243_s25 + $0x1e8] sm:$0xff] %v889_v13  ;;  %v763_v19 = vmul.f32 0.2, %v507_v9  ;;  %v508_v20 = vadd.f32 %v1215_v1, %v373_v10  ;;  %v509_v21 = vadd.f32 %v1215_v1, %v374_v11  ;;  %v510_v22 = vadd.f32 %v1215_v1, %v375_v14  ;;  %v1521_v59 = vld [vmem:[%s1749_s2] ss:$0 sm:$0xff] }
  0x63   : > { %v511_v23 = vadd.f32 %v1215_v1, %v376_v15  ;;  %v890_v24 = vsel %vm634_vm14, %v506_v8, %v762_v18  ;;  %v377_v26 = vmul.f32 %v1205_v0, %v242_v16  ;;  %v378_v27 = vmul.f32 %v1205_v0, %v243_v17  ;;  %v254_v16 = vld [vmem:[%s1210_s20 + $0x280] sm:$0xff]  ;;  %v255_v17 = vld [vmem:[%s1210_s20 + $0x288] sm:$0xff] }
  0x64   : > { %v891_v25 = vsel %vm635_vm15, %v507_v9, %v763_v19  ;;  %1018 = vst [vmem:[%s1243_s25 + $0x1f0] sm:$0xff] %v890_v24  ;;  %vm636_vm0 = vcmp.gt.f32.partialorder %v508_v20, 0.0  ;;  %v764_v30 = vmul.f32 0.2, %v508_v20  ;;  %vm637_vm1 = vcmp.gt.f32.partialorder %v509_v21, 0.0 }
  0x65   : > { %1019 = vst [vmem:[%s1243_s25 + $0x1f8] sm:$0xff] %v891_v25  ;;  %v765_v31 = vmul.f32 0.2, %v509_v21  ;;  %vm638_vm2 = vcmp.gt.f32.partialorder %v510_v22, 0.0  ;;  %v766_v32 = vmul.f32 0.2, %v510_v22  ;;  %v512_v36 = vadd.f32 %v1215_v1, %v377_v26 }
  0x66   : > { %vm639_vm3 = vcmp.gt.f32.partialorder %v511_v23, 0.0  ;;  %v767_v33 = vmul.f32 0.2, %v511_v23  ;;  %v892_v34 = vsel %vm636_vm0, %v508_v20, %v764_v30  ;;  %v513_v37 = vadd.f32 %v1215_v1, %v378_v27 }
  0x67   : > { %v893_v35 = vsel %vm637_vm1, %v509_v21, %v765_v31  ;;  %1020 = vst [vmem:[%s1243_s25 + $0x200] sm:$0xff] %v892_v34  ;;  %v894_v40 = vsel %vm638_vm2, %v510_v22, %v766_v32  ;;  %v379_v42 = vmul.f32 %v1205_v0, %v244_v28  ;;  %v380_v43 = vmul.f32 %v1205_v0, %v245_v29  ;;  %v256_v22 = vld [vmem:[%s1210_s20 + $0x290] sm:$0xff]  ;;  %v258_v34 = vld [vmem:[%s1210_s20 + $0x2a0] sm:$0xff] }
  0x68   : > { %1021 = vst [vmem:[%s1243_s25 + $0x208] sm:$0xff] %v893_v35  ;;  %v895_v41 = vsel %vm639_vm3, %v511_v23, %v767_v33  ;;  %1022 = vst [vmem:[%s1243_s25 + $0x210] sm:$0xff] %v894_v40  ;;  %vm640_vm4 = vcmp.gt.f32.partialorder %v512_v36, 0.0  ;;  %v768_v46 = vmul.f32 0.2, %v512_v36  ;;  %vm641_vm5 = vcmp.gt.f32.partialorder %v513_v37, 0.0 }
  0x69   : > { %1023 = vst [vmem:[%s1243_s25 + $0x218] sm:$0xff] %v895_v41  ;;  %v769_v47 = vmul.f32 0.2, %v513_v37  ;;  %v514_v48 = vadd.f32 %v1215_v1, %v379_v42  ;;  %v515_v49 = vadd.f32 %v1215_v1, %v380_v43  ;;  %v381_v50 = vmul.f32 %v1205_v0, %v246_v38  ;;  %v257_v23 = vld [vmem:[%s1210_s20 + $0x298] sm:$0xff]  ;;  %v259_v35 = vld [vmem:[%s1210_s20 + $0x2a8] sm:$0xff] }
  0x6a   : > { %v382_v51 = vmul.f32 %v1205_v0, %v247_v39  ;;  %v896_v52 = vsel %vm640_vm4, %v512_v36, %v768_v46  ;;  %v383_v54 = vmul.f32 %v1205_v0, %v248_v44  ;;  %v384_v55 = vmul.f32 %v1205_v0, %v249_v45  ;;  %v260_v46 = vld [vmem:[%s1210_s20 + $0x2b0] sm:$0xff] }
  0x6b   : > { %v897_v53 = vsel %vm641_vm5, %v513_v37, %v769_v47  ;;  %1024 = vst [vmem:[%s1243_s25 + $0x220] sm:$0xff] %v896_v52  ;;  %vm642_vm6 = vcmp.gt.f32.partialorder %v514_v48, 0.0  ;;  %v770_v58 = vmul.f32 0.2, %v514_v48  ;;  %vm643_vm7 = vcmp.gt.f32.partialorder %v515_v49, 0.0  ;;  %v261_v47 = vld [vmem:[%s1210_s20 + $0x2b8] sm:$0xff] }
  0x6c   : > { %1025 = vst [vmem:[%s1243_s25 + $0x228] sm:$0xff] %v897_v53  ;;  %v771_v1 = vmul.f32 0.2, %v515_v49  ;;  %v516_v60 = vadd.f32 %v1521_v59, %v381_v50  ;;  %v517_v0 = vadd.f32 %v1521_v59, %v382_v51  ;;  %v518_v61 = vadd.f32 %v1521_v59, %v383_v54 }
  0x6d   : > { %v519_v62 = vadd.f32 %v1521_v59, %v384_v55  ;;  %v898_v63 = vsel %vm642_vm6, %v514_v48, %v770_v58  ;;  %v385_v4 = vmul.f32 %v1530_v3, %v250_v56  ;;  %v386_v5 = vmul.f32 %v1530_v3, %v251_v57  ;;  %v262_v56 = vld [vmem:[%s1210_s20 + $0x2c0] sm:$0xff]  ;;  %v263_v57 = vld [vmem:[%s1210_s20 + $0x2c8] sm:$0xff] }
  0x6e   : > { %v899_v2 = vsel %vm643_vm7, %v515_v49, %v771_v1  ;;  %1026 = vst [vmem:[%s1243_s25 + $0x230] sm:$0xff] %v898_v63  ;;  %vm644_vm8 = vcmp.gt.f32.partialorder %v516_v60, 0.0  ;;  %v772_v8 = vmul.f32 0.2, %v516_v60  ;;  %vm645_vm9 = vcmp.gt.f32.partialorder %v517_v0, 0.0 }
  0x6f   : > { %1027 = vst [vmem:[%s1243_s25 + $0x238] sm:$0xff] %v899_v2  ;;  %v773_v9 = vmul.f32 0.2, %v517_v0  ;;  %vm646_vm10 = vcmp.gt.f32.partialorder %v518_v61, 0.0  ;;  %v774_v10 = vmul.f32 0.2, %v518_v61  ;;  %v520_v14 = vadd.f32 %v1521_v59, %v385_v4 }
  0x70   : > { %vm647_vm11 = vcmp.gt.f32.partialorder %v519_v62, 0.0  ;;  %v775_v11 = vmul.f32 0.2, %v519_v62  ;;  %v900_v12 = vsel %vm644_vm8, %v516_v60, %v772_v8  ;;  %v521_v15 = vadd.f32 %v1521_v59, %v386_v5 }
  0x71   : > { %v901_v13 = vsel %vm645_vm9, %v517_v0, %v773_v9  ;;  %1028 = vst [vmem:[%s1243_s25 + $0x240] sm:$0xff] %v900_v12  ;;  %v902_v18 = vsel %vm646_vm10, %v518_v61, %v774_v10  ;;  %v387_v20 = vmul.f32 %v1530_v3, %v252_v6  ;;  %v388_v21 = vmul.f32 %v1530_v3, %v253_v7  ;;  %v264_v61 = vld [vmem:[%s1210_s20 + $0x2d0] sm:$0xff]  ;;  %v266_v12 = vld [vmem:[%s1210_s20 + $0x2e0] sm:$0xff] }
  0x72   : > { %1029 = vst [vmem:[%s1243_s25 + $0x248] sm:$0xff] %v901_v13  ;;  %v903_v19 = vsel %vm647_vm11, %v519_v62, %v775_v11  ;;  %1030 = vst [vmem:[%s1243_s25 + $0x250] sm:$0xff] %v902_v18  ;;  %vm648_vm12 = vcmp.gt.f32.partialorder %v520_v14, 0.0  ;;  %v776_v24 = vmul.f32 0.2, %v520_v14  ;;  %vm649_vm13 = vcmp.gt.f32.partialorder %v521_v15, 0.0 }
  0x73   : > { %1031 = vst [vmem:[%s1243_s25 + $0x258] sm:$0xff] %v903_v19  ;;  %v777_v25 = vmul.f32 0.2, %v521_v15  ;;  %v522_v26 = vadd.f32 %v1521_v59, %v387_v20  ;;  %v523_v27 = vadd.f32 %v1521_v59, %v388_v21  ;;  %v389_v28 = vmul.f32 %v1530_v3, %v254_v16  ;;  %v265_v62 = vld [vmem:[%s1210_s20 + $0x2d8] sm:$0xff]  ;;  %v267_v13 = vld [vmem:[%s1210_s20 + $0x2e8] sm:$0xff] }
  0x74   : > { %v390_v29 = vmul.f32 %v1530_v3, %v255_v17  ;;  %v904_v30 = vsel %vm648_vm12, %v520_v14, %v776_v24  ;;  %v391_v32 = vmul.f32 %v1530_v3, %v256_v22  ;;  %v392_v33 = vmul.f32 %v1530_v3, %v257_v23  ;;  %v268_v24 = vld [vmem:[%s1210_s20 + $0x2f0] sm:$0xff] }
  0x75   : > { %v905_v31 = vsel %vm649_vm13, %v521_v15, %v777_v25  ;;  %1032 = vst [vmem:[%s1243_s25 + $0x260] sm:$0xff] %v904_v30  ;;  %vm650_vm14 = vcmp.gt.f32.partialorder %v522_v26, 0.0  ;;  %v778_v36 = vmul.f32 0.2, %v522_v26  ;;  %vm651_vm15 = vcmp.gt.f32.partialorder %v523_v27, 0.0  ;;  %v269_v25 = vld [vmem:[%s1210_s20 + $0x2f8] sm:$0xff] }
  0x76   : > { %1033 = vst [vmem:[%s1243_s25 + $0x268] sm:$0xff] %v905_v31  ;;  %v779_v37 = vmul.f32 0.2, %v523_v27  ;;  %v524_v38 = vadd.f32 %v1521_v59, %v389_v28  ;;  %v525_v39 = vadd.f32 %v1521_v59, %v390_v29  ;;  %v526_v40 = vadd.f32 %v1521_v59, %v391_v32 }
  0x77   : > { %v527_v41 = vadd.f32 %v1521_v59, %v392_v33  ;;  %v906_v42 = vsel %vm650_vm14, %v522_v26, %v778_v36  ;;  %v393_v44 = vmul.f32 %v1530_v3, %v258_v34  ;;  %v394_v45 = vmul.f32 %v1530_v3, %v259_v35  ;;  %v270_v34 = vld [vmem:[%s1210_s20 + $0x300] sm:$0xff]  ;;  %v271_v35 = vld [vmem:[%s1210_s20 + $0x308] sm:$0xff] }
  0x78   : > { %v907_v43 = vsel %vm651_vm15, %v523_v27, %v779_v37  ;;  %1034 = vst [vmem:[%s1243_s25 + $0x270] sm:$0xff] %v906_v42  ;;  %vm652_vm0 = vcmp.gt.f32.partialorder %v524_v38, 0.0  ;;  %v780_v48 = vmul.f32 0.2, %v524_v38  ;;  %vm653_vm1 = vcmp.gt.f32.partialorder %v525_v39, 0.0 }
  0x79   : > { %1035 = vst [vmem:[%s1243_s25 + $0x278] sm:$0xff] %v907_v43  ;;  %v781_v49 = vmul.f32 0.2, %v525_v39  ;;  %vm654_vm2 = vcmp.gt.f32.partialorder %v526_v40, 0.0  ;;  %v782_v50 = vmul.f32 0.2, %v526_v40  ;;  %v528_v54 = vadd.f32 %v1521_v59, %v393_v44 }
  0x7a   : > { %vm655_vm3 = vcmp.gt.f32.partialorder %v527_v41, 0.0  ;;  %v783_v51 = vmul.f32 0.2, %v527_v41  ;;  %v908_v52 = vsel %vm652_vm0, %v524_v38, %v780_v48  ;;  %v529_v55 = vadd.f32 %v1521_v59, %v394_v45 }
  0x7b   : > { %v909_v53 = vsel %vm653_vm1, %v525_v39, %v781_v49  ;;  %1036 = vst [vmem:[%s1243_s25 + $0x280] sm:$0xff] %v908_v52  ;;  %v910_v58 = vsel %vm654_vm2, %v526_v40, %v782_v50  ;;  %v395_v60 = vmul.f32 %v1530_v3, %v260_v46  ;;  %v396_v0 = vmul.f32 %v1530_v3, %v261_v47  ;;  %v272_v40 = vld [vmem:[%s1210_s20 + $0x310] sm:$0xff]  ;;  %v274_v52 = vld [vmem:[%s1210_s20 + $0x320] sm:$0xff] }
  0x7c   : > { %1037 = vst [vmem:[%s1243_s25 + $0x288] sm:$0xff] %v909_v53  ;;  %v911_v1 = vsel %vm655_vm3, %v527_v41, %v783_v51  ;;  %1038 = vst [vmem:[%s1243_s25 + $0x290] sm:$0xff] %v910_v58  ;;  %vm656_vm4 = vcmp.gt.f32.partialorder %v528_v54, 0.0  ;;  %v784_v63 = vmul.f32 0.2, %v528_v54  ;;  %vm657_vm5 = vcmp.gt.f32.partialorder %v529_v55, 0.0 }
  0x7d   : > { %1039 = vst [vmem:[%s1243_s25 + $0x298] sm:$0xff] %v911_v1  ;;  %v785_v2 = vmul.f32 0.2, %v529_v55  ;;  %v530_v4 = vadd.f32 %v1521_v59, %v395_v60  ;;  %v531_v5 = vadd.f32 %v1521_v59, %v396_v0  ;;  %v397_v6 = vmul.f32 %v1530_v3, %v262_v56  ;;  %v273_v41 = vld [vmem:[%s1210_s20 + $0x318] sm:$0xff]  ;;  %v275_v53 = vld [vmem:[%s1210_s20 + $0x328] sm:$0xff] }
  0x7e   : > { %v398_v7 = vmul.f32 %v1530_v3, %v263_v57  ;;  %v912_v8 = vsel %vm656_vm4, %v528_v54, %v784_v63  ;;  %v399_v10 = vmul.f32 %v1530_v3, %v264_v61  ;;  %v400_v11 = vmul.f32 %v1530_v3, %v265_v62  ;;  %v276_v63 = vld [vmem:[%s1210_s20 + $0x330] sm:$0xff] }
  0x7f   : > { %v913_v9 = vsel %vm657_vm5, %v529_v55, %v785_v2  ;;  %1040 = vst [vmem:[%s1243_s25 + $0x2a0] sm:$0xff] %v912_v8  ;;  %vm658_vm6 = vcmp.gt.f32.partialorder %v530_v4, 0.0  ;;  %v786_v14 = vmul.f32 0.2, %v530_v4  ;;  %vm659_vm7 = vcmp.gt.f32.partialorder %v531_v5, 0.0  ;;  %v277_v2 = vld [vmem:[%s1210_s20 + $0x338] sm:$0xff] }
  0x80   : > { %1041 = vst [vmem:[%s1243_s25 + $0x2a8] sm:$0xff] %v913_v9  ;;  %v787_v15 = vmul.f32 0.2, %v531_v5  ;;  %v532_v16 = vadd.f32 %v1521_v59, %v397_v6  ;;  %v533_v17 = vadd.f32 %v1521_v59, %v398_v7  ;;  %v534_v18 = vadd.f32 %v1521_v59, %v399_v10 }
  0x81   : > { %v535_v19 = vadd.f32 %v1521_v59, %v400_v11  ;;  %v914_v20 = vsel %vm658_vm6, %v530_v4, %v786_v14  ;;  %v401_v22 = vmul.f32 %v1530_v3, %v266_v12  ;;  %v402_v23 = vmul.f32 %v1530_v3, %v267_v13  ;;  %v278_v12 = vld [vmem:[%s1210_s20 + $0x340] sm:$0xff]  ;;  %v279_v13 = vld [vmem:[%s1210_s20 + $0x348] sm:$0xff] }
  0x82   : > { %v915_v21 = vsel %vm659_vm7, %v531_v5, %v787_v15  ;;  %1042 = vst [vmem:[%s1243_s25 + $0x2b0] sm:$0xff] %v914_v20  ;;  %vm660_vm8 = vcmp.gt.f32.partialorder %v532_v16, 0.0  ;;  %v788_v26 = vmul.f32 0.2, %v532_v16  ;;  %vm661_vm9 = vcmp.gt.f32.partialorder %v533_v17, 0.0 }
  0x83   : > { %1043 = vst [vmem:[%s1243_s25 + $0x2b8] sm:$0xff] %v915_v21  ;;  %v789_v27 = vmul.f32 0.2, %v533_v17  ;;  %vm662_vm10 = vcmp.gt.f32.partialorder %v534_v18, 0.0  ;;  %v790_v28 = vmul.f32 0.2, %v534_v18  ;;  %v536_v32 = vadd.f32 %v1521_v59, %v401_v22 }
  0x84   : > { %vm663_vm11 = vcmp.gt.f32.partialorder %v535_v19, 0.0  ;;  %v791_v29 = vmul.f32 0.2, %v535_v19  ;;  %v916_v30 = vsel %vm660_vm8, %v532_v16, %v788_v26  ;;  %v537_v33 = vadd.f32 %v1521_v59, %v402_v23 }
  0x85   : > { %v917_v31 = vsel %vm661_vm9, %v533_v17, %v789_v27  ;;  %1044 = vst [vmem:[%s1243_s25 + $0x2c0] sm:$0xff] %v916_v30  ;;  %v918_v36 = vsel %vm662_vm10, %v534_v18, %v790_v28  ;;  %v403_v38 = vmul.f32 %v1530_v3, %v268_v24  ;;  %v404_v39 = vmul.f32 %v1530_v3, %v269_v25  ;;  %v280_v18 = vld [vmem:[%s1210_s20 + $0x350] sm:$0xff]  ;;  %v282_v30 = vld [vmem:[%s1210_s20 + $0x360] sm:$0xff] }
  0x86   : > { %1045 = vst [vmem:[%s1243_s25 + $0x2c8] sm:$0xff] %v917_v31  ;;  %v919_v37 = vsel %vm663_vm11, %v535_v19, %v791_v29  ;;  %1046 = vst [vmem:[%s1243_s25 + $0x2d0] sm:$0xff] %v918_v36  ;;  %vm664_vm12 = vcmp.gt.f32.partialorder %v536_v32, 0.0  ;;  %v792_v42 = vmul.f32 0.2, %v536_v32  ;;  %vm665_vm13 = vcmp.gt.f32.partialorder %v537_v33, 0.0 }
  0x87   : > { %1047 = vst [vmem:[%s1243_s25 + $0x2d8] sm:$0xff] %v919_v37  ;;  %v793_v43 = vmul.f32 0.2, %v537_v33  ;;  %v538_v44 = vadd.f32 %v1521_v59, %v403_v38  ;;  %v539_v45 = vadd.f32 %v1521_v59, %v404_v39  ;;  %v405_v46 = vmul.f32 %v1530_v3, %v270_v34  ;;  %v281_v19 = vld [vmem:[%s1210_s20 + $0x358] sm:$0xff]  ;;  %v283_v31 = vld [vmem:[%s1210_s20 + $0x368] sm:$0xff] }
  0x88   : > { %v406_v47 = vmul.f32 %v1530_v3, %v271_v35  ;;  %v920_v48 = vsel %vm664_vm12, %v536_v32, %v792_v42  ;;  %v407_v50 = vmul.f32 %v1530_v3, %v272_v40  ;;  %v408_v51 = vmul.f32 %v1530_v3, %v273_v41  ;;  %v284_v42 = vld [vmem:[%s1210_s20 + $0x370] sm:$0xff] }
  0x89   : > { %v921_v49 = vsel %vm665_vm13, %v537_v33, %v793_v43  ;;  %1048 = vst [vmem:[%s1243_s25 + $0x2e0] sm:$0xff] %v920_v48  ;;  %vm666_vm14 = vcmp.gt.f32.partialorder %v538_v44, 0.0  ;;  %v794_v54 = vmul.f32 0.2, %v538_v44  ;;  %vm667_vm15 = vcmp.gt.f32.partialorder %v539_v45, 0.0  ;;  %v285_v43 = vld [vmem:[%s1210_s20 + $0x378] sm:$0xff] }
  0x8a   : > { %1049 = vst [vmem:[%s1243_s25 + $0x2e8] sm:$0xff] %v921_v49  ;;  %v795_v55 = vmul.f32 0.2, %v539_v45  ;;  %v540_v56 = vadd.f32 %v1521_v59, %v405_v46  ;;  %v541_v57 = vadd.f32 %v1521_v59, %v406_v47  ;;  %v542_v58 = vadd.f32 %v1521_v59, %v407_v50 }
  0x8b   : > { %v543_v1 = vadd.f32 %v1521_v59, %v408_v51  ;;  %v922_v60 = vsel %vm666_vm14, %v538_v44, %v794_v54  ;;  %v409_v61 = vmul.f32 %v1530_v3, %v274_v52  ;;  %v410_v62 = vmul.f32 %v1530_v3, %v275_v53  ;;  %v286_v52 = vld [vmem:[%s1210_s20 + $0x380] sm:$0xff]  ;;  %v287_v53 = vld [vmem:[%s1210_s20 + $0x388] sm:$0xff] }
  0x8c   : > { %v923_v0 = vsel %vm667_vm15, %v539_v45, %v795_v55  ;;  %1050 = vst [vmem:[%s1243_s25 + $0x2f0] sm:$0xff] %v922_v60  ;;  %vm668_vm0 = vcmp.gt.f32.partialorder %v540_v56, 0.0  ;;  %v796_v4 = vmul.f32 0.2, %v540_v56  ;;  %vm669_vm1 = vcmp.gt.f32.partialorder %v541_v57, 0.0 }
  0x8d   : > { %1051 = vst [vmem:[%s1243_s25 + $0x2f8] sm:$0xff] %v923_v0  ;;  %v797_v5 = vmul.f32 0.2, %v541_v57  ;;  %vm670_vm2 = vcmp.gt.f32.partialorder %v542_v58, 0.0  ;;  %v798_v6 = vmul.f32 0.2, %v542_v58  ;;  %v544_v10 = vadd.f32 %v1521_v59, %v409_v61 }
  0x8e   : > { %vm671_vm3 = vcmp.gt.f32.partialorder %v543_v1, 0.0  ;;  %v799_v7 = vmul.f32 0.2, %v543_v1  ;;  %v924_v8 = vsel %vm668_vm0, %v540_v56, %v796_v4  ;;  %v545_v11 = vadd.f32 %v1521_v59, %v410_v62 }
  0x8f   : > { %v925_v9 = vsel %vm669_vm1, %v541_v57, %v797_v5  ;;  %1052 = vst [vmem:[%s1243_s25 + $0x300] sm:$0xff] %v924_v8  ;;  %v926_v14 = vsel %vm670_vm2, %v542_v58, %v798_v6  ;;  %v411_v16 = vmul.f32 %v1530_v3, %v276_v63  ;;  %v412_v17 = vmul.f32 %v1530_v3, %v277_v2  ;;  %v288_v58 = vld [vmem:[%s1210_s20 + $0x390] sm:$0xff]  ;;  %v290_v8 = vld [vmem:[%s1210_s20 + $0x3a0] sm:$0xff] }
  0x90   : > { %1053 = vst [vmem:[%s1243_s25 + $0x308] sm:$0xff] %v925_v9  ;;  %v927_v15 = vsel %vm671_vm3, %v543_v1, %v799_v7  ;;  %1054 = vst [vmem:[%s1243_s25 + $0x310] sm:$0xff] %v926_v14  ;;  %vm672_vm4 = vcmp.gt.f32.partialorder %v544_v10, 0.0  ;;  %v800_v20 = vmul.f32 0.2, %v544_v10  ;;  %vm673_vm5 = vcmp.gt.f32.partialorder %v545_v11, 0.0 }
  0x91   : > { %1055 = vst [vmem:[%s1243_s25 + $0x318] sm:$0xff] %v927_v15  ;;  %v801_v21 = vmul.f32 0.2, %v545_v11  ;;  %v546_v22 = vadd.f32 %v1521_v59, %v411_v16  ;;  %v547_v23 = vadd.f32 %v1521_v59, %v412_v17  ;;  %v413_v24 = vmul.f32 %v1530_v3, %v278_v12  ;;  %v289_v1 = vld [vmem:[%s1210_s20 + $0x398] sm:$0xff]  ;;  %v291_v9 = vld [vmem:[%s1210_s20 + $0x3a8] sm:$0xff] }
  0x92   : > { %v414_v25 = vmul.f32 %v1530_v3, %v279_v13  ;;  %v928_v26 = vsel %vm672_vm4, %v544_v10, %v800_v20  ;;  %v415_v28 = vmul.f32 %v1530_v3, %v280_v18  ;;  %v416_v29 = vmul.f32 %v1530_v3, %v281_v19  ;;  %v292_v20 = vld [vmem:[%s1210_s20 + $0x3b0] sm:$0xff] }
  0x93   : > { %v929_v27 = vsel %vm673_vm5, %v545_v11, %v801_v21  ;;  %1056 = vst [vmem:[%s1243_s25 + $0x320] sm:$0xff] %v928_v26  ;;  %vm674_vm6 = vcmp.gt.f32.partialorder %v546_v22, 0.0  ;;  %v802_v32 = vmul.f32 0.2, %v546_v22  ;;  %vm675_vm7 = vcmp.gt.f32.partialorder %v547_v23, 0.0  ;;  %v293_v21 = vld [vmem:[%s1210_s20 + $0x3b8] sm:$0xff] }
  0x94   : > { %1057 = vst [vmem:[%s1243_s25 + $0x328] sm:$0xff] %v929_v27  ;;  %v803_v33 = vmul.f32 0.2, %v547_v23  ;;  %v548_v34 = vadd.f32 %v1521_v59, %v413_v24  ;;  %v549_v35 = vadd.f32 %v1521_v59, %v414_v25  ;;  %v550_v36 = vadd.f32 %v1521_v59, %v415_v28 }
  0x95   : > { %v551_v37 = vadd.f32 %v1521_v59, %v416_v29  ;;  %v930_v38 = vsel %vm674_vm6, %v546_v22, %v802_v32  ;;  %v417_v40 = vmul.f32 %v1530_v3, %v282_v30  ;;  %v418_v41 = vmul.f32 %v1530_v3, %v283_v31  ;;  %v294_v30 = vld [vmem:[%s1210_s20 + $0x3c0] sm:$0xff]  ;;  %v295_v31 = vld [vmem:[%s1210_s20 + $0x3c8] sm:$0xff] }
  0x96   : > { %v931_v39 = vsel %vm675_vm7, %v547_v23, %v803_v33  ;;  %1058 = vst [vmem:[%s1243_s25 + $0x330] sm:$0xff] %v930_v38  ;;  %vm676_vm8 = vcmp.gt.f32.partialorder %v548_v34, 0.0  ;;  %v804_v44 = vmul.f32 0.2, %v548_v34  ;;  %vm677_vm9 = vcmp.gt.f32.partialorder %v549_v35, 0.0 }
  0x97   : > { %1059 = vst [vmem:[%s1243_s25 + $0x338] sm:$0xff] %v931_v39  ;;  %v805_v45 = vmul.f32 0.2, %v549_v35  ;;  %vm678_vm10 = vcmp.gt.f32.partialorder %v550_v36, 0.0  ;;  %v806_v46 = vmul.f32 0.2, %v550_v36  ;;  %v552_v50 = vadd.f32 %v1521_v59, %v417_v40 }
  0x98   : > { %vm679_vm11 = vcmp.gt.f32.partialorder %v551_v37, 0.0  ;;  %v807_v47 = vmul.f32 0.2, %v551_v37  ;;  %v932_v48 = vsel %vm676_vm8, %v548_v34, %v804_v44  ;;  %v553_v51 = vadd.f32 %v1521_v59, %v418_v41 }
  0x99   : > { %v933_v49 = vsel %vm677_vm9, %v549_v35, %v805_v45  ;;  %1060 = vst [vmem:[%s1243_s25 + $0x340] sm:$0xff] %v932_v48  ;;  %v934_v54 = vsel %vm678_vm10, %v550_v36, %v806_v46  ;;  %v419_v56 = vmul.f32 %v1530_v3, %v284_v42  ;;  %v420_v57 = vmul.f32 %v1530_v3, %v285_v43  ;;  %v296_v36 = vld [vmem:[%s1210_s20 + $0x3d0] sm:$0xff]  ;;  %v298_v48 = vld [vmem:[%s1210_s20 + $0x3e0] sm:$0xff] }
  0x9a   : > { %1061 = vst [vmem:[%s1243_s25 + $0x348] sm:$0xff] %v933_v49  ;;  %v935_v55 = vsel %vm679_vm11, %v551_v37, %v807_v47  ;;  %1062 = vst [vmem:[%s1243_s25 + $0x350] sm:$0xff] %v934_v54  ;;  %vm680_vm12 = vcmp.gt.f32.partialorder %v552_v50, 0.0  ;;  %v808_v60 = vmul.f32 0.2, %v552_v50  ;;  %vm681_vm13 = vcmp.gt.f32.partialorder %v553_v51, 0.0 }
  0x9b   : > { %1063 = vst [vmem:[%s1243_s25 + $0x358] sm:$0xff] %v935_v55  ;;  %v809_v0 = vmul.f32 0.2, %v553_v51  ;;  %v554_v61 = vadd.f32 %v1521_v59, %v419_v56  ;;  %v555_v62 = vadd.f32 %v1521_v59, %v420_v57  ;;  %v421_v63 = vmul.f32 %v1530_v3, %v286_v52  ;;  %v297_v37 = vld [vmem:[%s1210_s20 + $0x3d8] sm:$0xff]  ;;  %v299_v49 = vld [vmem:[%s1210_s20 + $0x3e8] sm:$0xff] }
  0x9c   : > { %v422_v2 = vmul.f32 %v1530_v3, %v287_v53  ;;  %v936_v4 = vsel %vm680_vm12, %v552_v50, %v808_v60  ;;  %v423_v6 = vmul.f32 %v1530_v3, %v288_v58  ;;  %v424_v7 = vmul.f32 %v1530_v3, %v289_v1  ;;  %v300_v60 = vld [vmem:[%s1210_s20 + $0x3f0] sm:$0xff] }
  0x9d   : > { %v937_v5 = vsel %vm681_vm13, %v553_v51, %v809_v0  ;;  %1064 = vst [vmem:[%s1243_s25 + $0x360] sm:$0xff] %v936_v4  ;;  %vm682_vm14 = vcmp.gt.f32.partialorder %v554_v61, 0.0  ;;  %v810_v10 = vmul.f32 0.2, %v554_v61  ;;  %vm683_vm15 = vcmp.gt.f32.partialorder %v555_v62, 0.0  ;;  %v301_v0 = vld [vmem:[%s1210_s20 + $0x3f8] sm:$0xff] }
  0x9e   : > { %1065 = vst [vmem:[%s1243_s25 + $0x368] sm:$0xff] %v937_v5  ;;  %v811_v11 = vmul.f32 0.2, %v555_v62  ;;  %v556_v12 = vadd.f32 %v1521_v59, %v421_v63  ;;  %v557_v13 = vadd.f32 %v1521_v59, %v422_v2  ;;  %v558_v14 = vadd.f32 %v1521_v59, %v423_v6 }
  0x9f   : > { %v559_v15 = vadd.f32 %v1521_v59, %v424_v7  ;;  %v938_v16 = vsel %vm682_vm14, %v554_v61, %v810_v10  ;;  %v425_v18 = vmul.f32 %v1530_v3, %v290_v8  ;;  %v426_v19 = vmul.f32 %v1530_v3, %v291_v9 }
  0xa0   : > { %v939_v17 = vsel %vm683_vm15, %v555_v62, %v811_v11  ;;  %1066 = vst [vmem:[%s1243_s25 + $0x370] sm:$0xff] %v938_v16  ;;  %vm684_vm0 = vcmp.gt.f32.partialorder %v556_v12, 0.0  ;;  %v812_v22 = vmul.f32 0.2, %v556_v12  ;;  %vm685_vm1 = vcmp.gt.f32.partialorder %v557_v13, 0.0 }
  0xa1   : > { %1067 = vst [vmem:[%s1243_s25 + $0x378] sm:$0xff] %v939_v17  ;;  %v813_v23 = vmul.f32 0.2, %v557_v13  ;;  %vm686_vm2 = vcmp.gt.f32.partialorder %v558_v14, 0.0  ;;  %v814_v24 = vmul.f32 0.2, %v558_v14  ;;  %v560_v28 = vadd.f32 %v1521_v59, %v425_v18 }
  0xa2   : > { %vm687_vm3 = vcmp.gt.f32.partialorder %v559_v15, 0.0  ;;  %v815_v25 = vmul.f32 0.2, %v559_v15  ;;  %v940_v26 = vsel %vm684_vm0, %v556_v12, %v812_v22  ;;  %v561_v29 = vadd.f32 %v1521_v59, %v426_v19 }
  0xa3   : > { %v941_v27 = vsel %vm685_vm1, %v557_v13, %v813_v23  ;;  %1068 = vst [vmem:[%s1243_s25 + $0x380] sm:$0xff] %v940_v26  ;;  %v942_v32 = vsel %vm686_vm2, %v558_v14, %v814_v24  ;;  %v427_v34 = vmul.f32 %v1530_v3, %v292_v20  ;;  %v428_v35 = vmul.f32 %v1530_v3, %v293_v21 }
  0xa4   : > { %1069 = vst [vmem:[%s1243_s25 + $0x388] sm:$0xff] %v941_v27  ;;  %v943_v33 = vsel %vm687_vm3, %v559_v15, %v815_v25  ;;  %1070 = vst [vmem:[%s1243_s25 + $0x390] sm:$0xff] %v942_v32  ;;  %vm688_vm4 = vcmp.gt.f32.partialorder %v560_v28, 0.0  ;;  %v816_v38 = vmul.f32 0.2, %v560_v28  ;;  %vm689_vm5 = vcmp.gt.f32.partialorder %v561_v29, 0.0 }
  0xa5   : > { %1071 = vst [vmem:[%s1243_s25 + $0x398] sm:$0xff] %v943_v33  ;;  %v817_v39 = vmul.f32 0.2, %v561_v29  ;;  %v562_v40 = vadd.f32 %v1521_v59, %v427_v34  ;;  %v563_v41 = vadd.f32 %v1521_v59, %v428_v35  ;;  %v429_v42 = vmul.f32 %v1530_v3, %v294_v30 }
  0xa6   : > { %v430_v43 = vmul.f32 %v1530_v3, %v295_v31  ;;  %v944_v44 = vsel %vm688_vm4, %v560_v28, %v816_v38  ;;  %v431_v46 = vmul.f32 %v1530_v3, %v296_v36  ;;  %v432_v47 = vmul.f32 %v1530_v3, %v297_v37 }
  0xa7   : > { %v945_v45 = vsel %vm689_vm5, %v561_v29, %v817_v39  ;;  %1072 = vst [vmem:[%s1243_s25 + $0x3a0] sm:$0xff] %v944_v44  ;;  %vm690_vm6 = vcmp.gt.f32.partialorder %v562_v40, 0.0  ;;  %v818_v50 = vmul.f32 0.2, %v562_v40  ;;  %vm691_vm7 = vcmp.gt.f32.partialorder %v563_v41, 0.0 }
  0xa8   : > { %1073 = vst [vmem:[%s1243_s25 + $0x3a8] sm:$0xff] %v945_v45  ;;  %v819_v51 = vmul.f32 0.2, %v563_v41  ;;  %v564_v52 = vadd.f32 %v1521_v59, %v429_v42  ;;  %v565_v53 = vadd.f32 %v1521_v59, %v430_v43  ;;  %v566_v54 = vadd.f32 %v1521_v59, %v431_v46 }
  0xa9   : > { %v567_v55 = vadd.f32 %v1521_v59, %v432_v47  ;;  %v946_v56 = vsel %vm690_vm6, %v562_v40, %v818_v50  ;;  %v433_v58 = vmul.f32 %v1530_v3, %v298_v48  ;;  %v434_v1 = vmul.f32 %v1530_v3, %v299_v49 }
  0xaa   : > { %v947_v57 = vsel %vm691_vm7, %v563_v41, %v819_v51  ;;  %1074 = vst [vmem:[%s1243_s25 + $0x3b0] sm:$0xff] %v946_v56  ;;  %vm692_vm8 = vcmp.gt.f32.partialorder %v564_v52, 0.0  ;;  %v820_v61 = vmul.f32 0.2, %v564_v52  ;;  %vm693_vm9 = vcmp.gt.f32.partialorder %v565_v53, 0.0 }
  0xab   : > { %1075 = vst [vmem:[%s1243_s25 + $0x3b8] sm:$0xff] %v947_v57  ;;  %v821_v62 = vmul.f32 0.2, %v565_v53  ;;  %vm694_vm10 = vcmp.gt.f32.partialorder %v566_v54, 0.0  ;;  %v822_v63 = vmul.f32 0.2, %v566_v54  ;;  %v568_v6 = vadd.f32 %v1521_v59, %v433_v58 }
  0xac   : > { %vm695_vm11 = vcmp.gt.f32.partialorder %v567_v55, 0.0  ;;  %v823_v2 = vmul.f32 0.2, %v567_v55  ;;  %v948_v4 = vsel %vm692_vm8, %v564_v52, %v820_v61  ;;  %v569_v7 = vadd.f32 %v1521_v59, %v434_v1 }
  0xad   : > { %v949_v5 = vsel %vm693_vm9, %v565_v53, %v821_v62  ;;  %1076 = vst [vmem:[%s1243_s25 + $0x3c0] sm:$0xff] %v948_v4  ;;  %v950_v8 = vsel %vm694_vm10, %v566_v54, %v822_v63  ;;  %v435_v10 = vmul.f32 %v1530_v3, %v300_v60  ;;  %v436_v11 = vmul.f32 %v1530_v3, %v301_v0 }
  0xae   : > { %1077 = vst [vmem:[%s1243_s25 + $0x3c8] sm:$0xff] %v949_v5  ;;  %v951_v9 = vsel %vm695_vm11, %v567_v55, %v823_v2  ;;  %1078 = vst [vmem:[%s1243_s25 + $0x3d0] sm:$0xff] %v950_v8  ;;  %vm696_vm12 = vcmp.gt.f32.partialorder %v568_v6, 0.0  ;;  %v824_v12 = vmul.f32 0.2, %v568_v6  ;;  %vm697_vm13 = vcmp.gt.f32.partialorder %v569_v7, 0.0 }
  0xaf   : > { %1079 = vst [vmem:[%s1243_s25 + $0x3d8] sm:$0xff] %v951_v9  ;;  %v825_v13 = vmul.f32 0.2, %v569_v7  ;;  %v570_v14 = vadd.f32 %v1521_v59, %v435_v10  ;;  %v571_v15 = vadd.f32 %v1521_v59, %v436_v11 }
  0xb0   : > { %v952_v16 = vsel %vm696_vm12, %v568_v6, %v824_v12 }
  0xb1   : > { %v953_v17 = vsel %vm697_vm13, %v569_v7, %v825_v13  ;;  %1080 = vst [vmem:[%s1243_s25 + $0x3e0] sm:$0xff] %v952_v16  ;;  %vm698_vm14 = vcmp.gt.f32.partialorder %v570_v14, 0.0  ;;  %v826_v18 = vmul.f32 0.2, %v570_v14  ;;  %vm699_vm15 = vcmp.gt.f32.partialorder %v571_v15, 0.0 }
  0xb2   : > { %1081 = vst [vmem:[%s1243_s25 + $0x3e8] sm:$0xff] %v953_v17  ;;  %v827_v3 = vmul.f32 0.2, %v571_v15 }
  0xb3   : > { %v954_v19 = vsel %vm698_vm14, %v570_v14, %v826_v18 }
  0xb4   : > { %v955_v20 = vsel %vm699_vm15, %v571_v15, %v827_v3  ;;  %1082 = vst [vmem:[%s1243_s25 + $0x3f0] sm:$0xff] %v954_v19 }
  0xb5   : > { %1083 = vst [vmem:[%s1243_s25 + $0x3f8] sm:$0xff] %v955_v20 }
  0xb6 PF: > { %s13_s12 = sadd.s32 1, %s1169_s12  }
  0xb7   : > { %p10_p4 = scmp.ge.s32.totalorder %s13_s12, 4  }
  0xb9   :  { %12 = sbr.rel (!%p10_p4) target bundleno = 1 (0x1), region = 62 }

// kernel: conv_generator_transpose.17
= control target key start
LH: loop header
LB: loop body
LE: loop exit
PB: predicated region body
PF: predicated region fallthrough
CT: control target
= control target key end

     0   :  { %s2622_s9 = smov 0   ;;  %s2624_s10 = smov 0   ;;  %s3071_s0 = inlined_call_operand.vmem [shape: f32[4,2048,32], index: 0, kind: input, shape index: {}]   ;;  %s3072_s1 = inlined_call_operand.vmem [shape: f32[4,32,128], index: 1, kind: input, shape index: {}]   ;;  %s3073_s2 = inlined_call_operand.vmem [shape: f32[4,2048,128], index: 2, kind: output, shape index: {}]  }
   0x1   :  { %s2626_s11 = smov 0   ;;  %s2628_s12 = smov 0  }
   0x2   :  { %s2630_s13 = smov 0  }
   0x3 LB: > { %s21_s14 = sadd.s32 1, %s2597_s11  ;;  %s24_s15 = sadd.s32 1, %s2601_s12  ;;  %s2605_s13 = sphi %s2630_s13, %s12_s13   ;;  %s2601_s12 = sphi %s2628_s12, %s3077_s12   ;;  %s2597_s11 = sphi %s2626_s11, %s3076_s11   ;;  %s2593_s10 = sphi %s2624_s10, %s3075_s10   ;;  %s2589_s9 = sphi %s2622_s9, %s3074_s9  }
   0x4   : > { %p22_p0 = scmp.ge.s32.totalorder %s21_s14, 2  ;;  %p1787_p1 = scmp.ge.s32.totalorder %s2605_s13, 1 }
   0x5   : > { %p143_p2 = scmp.lt.s32.totalorder %s2605_s13, 9 }
   0x6   : > { %s3079_s14 = smov (%p22_p0, %s21_s14), 0  ;;  %s3081_s15 = smov (!%p22_p0, %s24_s15), %s2601_s12 }
   0x7   : > { %p144_p3 = pnand %p1787_p1, %p143_p2  ;;  %p26_p4 = scmp.ge.s32.totalorder %s3081_s15, 4 }
   0x8   : > { %s1788_s16 = sshll.u32 (!%p144_p3), %s2589_s9, 7  ;;  %p179_p5 = scmp.lt.s32.totalorder (!%p144_p3), %s2593_s10, 3  ;;  %vm335_vm0 = vcmask (!%p144_p3), 261120  }
   0x9   : > { %s3083_s15 = smov (%p26_p4, %s3081_s15), 0  ;;  %147 = sbr.rel (%p144_p3) target bundleno = 382 (0x17e), region = 28 }
   0xa   : > { %p181_p6 = scmp.lt.s32.totalorder (!%p144_p3), %s1788_s16, 255 }
  0x10   : > { %s3085_s10 = smov (!%p179_p5, %s2593_s10), 3  ;;  %s3087_s16 = smov (!%p181_p6, %s1788_s16), 255 }
  0x11   : > { %s1789_s17 = sshll.u32 %s3085_s10, 8  ;;  %s1926_s18 = sshll.u32 %s3085_s10, 5 }
  0x12   : > { %s2652_s19 = sadd.s32 %s1789_s17, %s3087_s16  ;;  %s192_s22 = scalar_lea.vmem %s3072_s1, %s1926_s18 }
  0x13   : > { %s1790_s23 = sshll.u32 %s2652_s19, 3  ;;  %v331_v0 = vld [vmem:[%s192_s22] sm:$0xff]  ;;  %v332_v1 = vld [vmem:[%s192_s22 + $0x8] sm:$0xff]  ;;  %v333_v2 = vld [vmem:[%s192_s22 + $0x10] sm:$0xff] }
  0x14   : > { %s2663_s26 = scalar_lea.vmem %s3071_s0, %s1790_s23  ;;  %v2259_v3 = vpack.c.bf16 %v332_v1, %v331_v0  ;;  %v334_v4 = vld [vmem:[%s192_s22 + $0x18] sm:$0xff]  ;;  %s2926_s29 = scalar_lea.vmem %s3073_s2, %s1790_s23 }
  0x15   : > { %v2263_v5 = vpack.c.bf16 %v334_v4, %v333_v2  ;;  %v203_v6 = vld [vmem:[%s2663_s26] sm:$0xff]  ;;  %v204_v8 = vld [vmem:[%s2663_s26 + $0x8] sm:$0xff]  ;;  %v205_v10 = vld [vmem:[%s2663_s26 + $0x10] sm:$0xff] }
  0x16   : > { %2260 = vmatprep.subr.bf16.mxu0 %v2259_v3  ;;  %2267 = vmatprep.subr.bf16.mxu1 %v2259_v3  ;;  %v267_v7 = vld [vmem:[%s2663_s26 + $0x200] sm:$0xff]  ;;  %v268_v9 = vld [vmem:[%s2663_s26 + $0x208] sm:$0xff]  ;;  %v269_v11 = vld [vmem:[%s2663_s26 + $0x210] sm:$0xff] }
  0x17   : > { %2262 = vmatpush3.bf16.msra.mxu0 %v2259_v3  ;;  %2269 = vmatpush3.bf16.msra.mxu1 %v2259_v3  ;;  %v206_v12 = vld [vmem:[%s2663_s26 + $0x18] sm:$0xff]  ;;  %v207_v14 = vld [vmem:[%s2663_s26 + $0x20] sm:$0xff]  ;;  %v208_v16 = vld [vmem:[%s2663_s26 + $0x28] sm:$0xff] }
  0x18   : > { %2264 = vmatprep.subr.bf16.mxu0 %v2263_v5  ;;  %2268 = vmatprep.subr.bf16.mxu1 %v2263_v5  ;;  %v270_v13 = vld [vmem:[%s2663_s26 + $0x218] sm:$0xff]  ;;  %v271_v15 = vld [vmem:[%s2663_s26 + $0x220] sm:$0xff]  ;;  %v272_v17 = vld [vmem:[%s2663_s26 + $0x228] sm:$0xff] }
  0x19   : > { %2067 = vmatprep.mubr.msk.f32.mxu0 %vm335_vm0, %v203_v6  ;;  %2163 = vmatprep.mubr.msk.f32.mxu1 %vm335_vm0, %v267_v7  ;;  %v209_v18 = vld [vmem:[%s2663_s26 + $0x30] sm:$0xff]  ;;  %v210_v20 = vld [vmem:[%s2663_s26 + $0x38] sm:$0xff]  ;;  %v211_v22 = vld [vmem:[%s2663_s26 + $0x40] sm:$0xff] }
  0x1a   : > { %v273_v19 = vld [vmem:[%s2663_s26 + $0x230] sm:$0xff]  ;;  %v274_v21 = vld [vmem:[%s2663_s26 + $0x238] sm:$0xff]  ;;  %v275_v23 = vld [vmem:[%s2663_s26 + $0x240] sm:$0xff] }
  0x1b   : > { %2266 = vmatpush3.bf16.msra.mxu0 %v2263_v5  ;;  %2270 = vmatpush3.bf16.msra.mxu1 %v2263_v5  ;;  %v212_v24 = vld [vmem:[%s2663_s26 + $0x48] sm:$0xff]  ;;  %v213_v26 = vld [vmem:[%s2663_s26 + $0x50] sm:$0xff]  ;;  %v214_v28 = vld [vmem:[%s2663_s26 + $0x58] sm:$0xff] }
  0x1c   : > { %v276_v25 = vld [vmem:[%s2663_s26 + $0x248] sm:$0xff]  ;;  %v277_v27 = vld [vmem:[%s2663_s26 + $0x250] sm:$0xff]  ;;  %v278_v29 = vld [vmem:[%s2663_s26 + $0x258] sm:$0xff] }
  0x1d   : > { %v215_v30 = vld [vmem:[%s2663_s26 + $0x60] sm:$0xff]  ;;  %v216_v32 = vld [vmem:[%s2663_s26 + $0x68] sm:$0xff]  ;;  %v217_v34 = vld [vmem:[%s2663_s26 + $0x70] sm:$0xff] }
  0x1e   : > { %2068 = vmatmul.mubr.msk.f32.vlgmr.msra.gmra.mrb[0].mxu0 %vm335_vm0, %v204_v8  ;;  %2164 = vmatmul.mubr.msk.f32.vlgmr.msra.gmra.mrb[0].mxu1 %vm335_vm0, %v268_v9  ;;  %v279_v31 = vld [vmem:[%s2663_s26 + $0x260] sm:$0xff]  ;;  %v280_v33 = vld [vmem:[%s2663_s26 + $0x268] sm:$0xff]  ;;  %v281_v35 = vld [vmem:[%s2663_s26 + $0x270] sm:$0xff] }
  0x1f   : > { %2070 = vmatprep.mubr.msk.f32.mxu0 %vm335_vm0, %v205_v10  ;;  %2166 = vmatprep.mubr.msk.f32.mxu1 %vm335_vm0, %v269_v11  ;;  %v218_v36 = vld [vmem:[%s2663_s26 + $0x78] sm:$0xff]  ;;  %v219_v38 = vld [vmem:[%s2663_s26 + $0x80] sm:$0xff]  ;;  %v220_v40 = vld [vmem:[%s2663_s26 + $0x88] sm:$0xff] }
  0x20   : > { %v282_v37 = vld [vmem:[%s2663_s26 + $0x278] sm:$0xff]  ;;  %v283_v39 = vld [vmem:[%s2663_s26 + $0x280] sm:$0xff]  ;;  %v284_v41 = vld [vmem:[%s2663_s26 + $0x288] sm:$0xff] }
  0x21   : > { %v221_v42 = vld [vmem:[%s2663_s26 + $0x90] sm:$0xff]  ;;  %v222_v44 = vld [vmem:[%s2663_s26 + $0x98] sm:$0xff]  ;;  %v223_v46 = vld [vmem:[%s2663_s26 + $0xa0] sm:$0xff] }
  0x22   : > { %2071 = vmatmul.mubr.msk.f32.gmra.mrb[2].mxu0 %vm335_vm0, %v206_v12  ;;  %2167 = vmatmul.mubr.msk.f32.gmra.mrb[2].mxu1 %vm335_vm0, %v270_v13  ;;  %v285_v43 = vld [vmem:[%s2663_s26 + $0x290] sm:$0xff]  ;;  %v286_v45 = vld [vmem:[%s2663_s26 + $0x298] sm:$0xff]  ;;  %v287_v47 = vld [vmem:[%s2663_s26 + $0x2a0] sm:$0xff] }
  0x23   : > { %2073 = vmatprep.mubr.msk.f32.mxu0 %vm335_vm0, %v207_v14  ;;  %2169 = vmatprep.mubr.msk.f32.mxu1 %vm335_vm0, %v271_v15  ;;  %v224_v48 = vld [vmem:[%s2663_s26 + $0xa8] sm:$0xff]  ;;  %v225_v50 = vld [vmem:[%s2663_s26 + $0xb0] sm:$0xff]  ;;  %v226_v52 = vld [vmem:[%s2663_s26 + $0xb8] sm:$0xff] }
  0x24   : > { %v288_v49 = vld [vmem:[%s2663_s26 + $0x2a8] sm:$0xff]  ;;  %v289_v51 = vld [vmem:[%s2663_s26 + $0x2b0] sm:$0xff]  ;;  %v290_v53 = vld [vmem:[%s2663_s26 + $0x2b8] sm:$0xff] }
  0x25   : > { %v227_v54 = vld [vmem:[%s2663_s26 + $0xc0] sm:$0xff]  ;;  %v228_v56 = vld [vmem:[%s2663_s26 + $0xc8] sm:$0xff]  ;;  %v229_v58 = vld [vmem:[%s2663_s26 + $0xd0] sm:$0xff] }
  0x26   : > { %2074 = vmatmul.mubr.msk.f32.gmra.mrb[4].mxu0 %vm335_vm0, %v208_v16  ;;  %2170 = vmatmul.mubr.msk.f32.gmra.mrb[4].mxu1 %vm335_vm0, %v272_v17  ;;  %v291_v55 = vld [vmem:[%s2663_s26 + $0x2c0] sm:$0xff]  ;;  %v292_v57 = vld [vmem:[%s2663_s26 + $0x2c8] sm:$0xff]  ;;  %v293_v59 = vld [vmem:[%s2663_s26 + $0x2d0] sm:$0xff] }
  0x27   : > { %2076 = vmatprep.mubr.msk.f32.mxu0 %vm335_vm0, %v209_v18  ;;  %2172 = vmatprep.mubr.msk.f32.mxu1 %vm335_vm0, %v273_v19  ;;  %v230_v60 = vld [vmem:[%s2663_s26 + $0xd8] sm:$0xff]  ;;  %v231_v62 = vld [vmem:[%s2663_s26 + $0xe0] sm:$0xff]  ;;  %v232_v0 = vld [vmem:[%s2663_s26 + $0xe8] sm:$0xff] }
  0x28   : > { %v294_v61 = vld [vmem:[%s2663_s26 + $0x2d8] sm:$0xff]  ;;  %v295_v63 = vld [vmem:[%s2663_s26 + $0x2e0] sm:$0xff]  ;;  %v296_v1 = vld [vmem:[%s2663_s26 + $0x2e8] sm:$0xff] }
  0x29   : > { %v233_v2 = vld [vmem:[%s2663_s26 + $0xf0] sm:$0xff]  ;;  %v234_v4 = vld [vmem:[%s2663_s26 + $0xf8] sm:$0xff]  ;;  %v235_v6 = vld [vmem:[%s2663_s26 + $0x100] sm:$0xff] }
  0x2a   : > { %2077 = vmatmul.mubr.msk.f32.gmra.mrb[6].mxu0 %vm335_vm0, %v210_v20  ;;  %2173 = vmatmul.mubr.msk.f32.gmra.mrb[6].mxu1 %vm335_vm0, %v274_v21  ;;  %v297_v3 = vld [vmem:[%s2663_s26 + $0x2f0] sm:$0xff]  ;;  %v298_v5 = vld [vmem:[%s2663_s26 + $0x2f8] sm:$0xff]  ;;  %v299_v7 = vld [vmem:[%s2663_s26 + $0x300] sm:$0xff] }
  0x2b   : > { %2079 = vmatprep.mubr.msk.f32.mxu0 %vm335_vm0, %v211_v22  ;;  %2175 = vmatprep.mubr.msk.f32.mxu1 %vm335_vm0, %v275_v23  ;;  %v236_v8 = vld [vmem:[%s2663_s26 + $0x108] sm:$0xff]  ;;  %v237_v10 = vld [vmem:[%s2663_s26 + $0x110] sm:$0xff]  ;;  %v238_v12 = vld [vmem:[%s2663_s26 + $0x118] sm:$0xff] }
  0x2c   : > { %v300_v9 = vld [vmem:[%s2663_s26 + $0x308] sm:$0xff]  ;;  %v301_v11 = vld [vmem:[%s2663_s26 + $0x310] sm:$0xff]  ;;  %v302_v13 = vld [vmem:[%s2663_s26 + $0x318] sm:$0xff] }
  0x2d   : > { %v239_v14 = vld [vmem:[%s2663_s26 + $0x120] sm:$0xff]  ;;  %v240_v16 = vld [vmem:[%s2663_s26 + $0x128] sm:$0xff]  ;;  %v241_v18 = vld [vmem:[%s2663_s26 + $0x130] sm:$0xff] }
  0x2e   : > { %2080 = vmatmul.mubr.msk.f32.gmra.mrb[8].mxu0 %vm335_vm0, %v212_v24  ;;  %2176 = vmatmul.mubr.msk.f32.gmra.mrb[8].mxu1 %vm335_vm0, %v276_v25  ;;  %v303_v15 = vld [vmem:[%s2663_s26 + $0x320] sm:$0xff]  ;;  %v304_v17 = vld [vmem:[%s2663_s26 + $0x328] sm:$0xff]  ;;  %v305_v19 = vld [vmem:[%s2663_s26 + $0x330] sm:$0xff] }
  0x2f   : > { %2082 = vmatprep.mubr.msk.f32.mxu0 %vm335_vm0, %v213_v26  ;;  %2178 = vmatprep.mubr.msk.f32.mxu1 %vm335_vm0, %v277_v27  ;;  %v242_v20 = vld [vmem:[%s2663_s26 + $0x138] sm:$0xff]  ;;  %v243_v22 = vld [vmem:[%s2663_s26 + $0x140] sm:$0xff]  ;;  %v244_v24 = vld [vmem:[%s2663_s26 + $0x148] sm:$0xff] }
  0x30   : > { %v306_v21 = vld [vmem:[%s2663_s26 + $0x338] sm:$0xff]  ;;  %v307_v23 = vld [vmem:[%s2663_s26 + $0x340] sm:$0xff]  ;;  %v308_v25 = vld [vmem:[%s2663_s26 + $0x348] sm:$0xff] }
  0x31   : > { %v245_v26 = vld [vmem:[%s2663_s26 + $0x150] sm:$0xff] }
  0x32   : > { %2083 = vmatmul.mubr.msk.f32.gmra.mrb[10].mxu0 %vm335_vm0, %v214_v28  ;;  %2179 = vmatmul.mubr.msk.f32.gmra.mrb[10].mxu1 %vm335_vm0, %v278_v29  ;;  %v309_v27 = vld [vmem:[%s2663_s26 + $0x350] sm:$0xff]  ;;  %v246_v28 = vld [vmem:[%s2663_s26 + $0x158] sm:$0xff] }
  0x33   : > { %2085 = vmatprep.mubr.msk.f32.mxu0 %vm335_vm0, %v215_v30  ;;  %2181 = vmatprep.mubr.msk.f32.mxu1 %vm335_vm0, %v279_v31  ;;  %v310_v29 = vld [vmem:[%s2663_s26 + $0x358] sm:$0xff]  ;;  %v247_v30 = vld [vmem:[%s2663_s26 + $0x160] sm:$0xff] }
  0x34   : > { %v311_v31 = vld [vmem:[%s2663_s26 + $0x360] sm:$0xff] }
  0x36   : > { %2086 = vmatmul.mubr.msk.f32.gmra.mrb[12].mxu0 %vm335_vm0, %v216_v32  ;;  %2182 = vmatmul.mubr.msk.f32.gmra.mrb[12].mxu1 %vm335_vm0, %v280_v33  ;;  %v248_v32 = vld [vmem:[%s2663_s26 + $0x168] sm:$0xff] }
  0x37   : > { %2088 = vmatprep.mubr.msk.f32.mxu0 %vm335_vm0, %v217_v34  ;;  %2184 = vmatprep.mubr.msk.f32.mxu1 %vm335_vm0, %v281_v35  ;;  %v312_v33 = vld [vmem:[%s2663_s26 + $0x368] sm:$0xff]  ;;  %v249_v34 = vld [vmem:[%s2663_s26 + $0x170] sm:$0xff] }
  0x38   : > { %v313_v35 = vld [vmem:[%s2663_s26 + $0x370] sm:$0xff] }
  0x3a   : > { %2089 = vmatmul.mubr.msk.f32.gmra.mrb[14].mxu0 %vm335_vm0, %v218_v36  ;;  %2185 = vmatmul.mubr.msk.f32.gmra.mrb[14].mxu1 %vm335_vm0, %v282_v37  ;;  %v250_v36 = vld [vmem:[%s2663_s26 + $0x178] sm:$0xff] }
  0x3b   : > { %2091 = vmatprep.mubr.msk.f32.mxu0 %vm335_vm0, %v219_v38  ;;  %2187 = vmatprep.mubr.msk.f32.mxu1 %vm335_vm0, %v283_v39  ;;  %v314_v37 = vld [vmem:[%s2663_s26 + $0x378] sm:$0xff]  ;;  %v251_v38 = vld [vmem:[%s2663_s26 + $0x180] sm:$0xff] }
  0x3c   : > { %v315_v39 = vld [vmem:[%s2663_s26 + $0x380] sm:$0xff] }
  0x3e   : > { %2092 = vmatmul.mubr.msk.f32.gmra.mrb[16].mxu0 %vm335_vm0, %v220_v40  ;;  %2188 = vmatmul.mubr.msk.f32.gmra.mrb[16].mxu1 %vm335_vm0, %v284_v41  ;;  %v252_v40 = vld [vmem:[%s2663_s26 + $0x188] sm:$0xff] }
  0x3f   : > { %2094 = vmatprep.mubr.msk.f32.mxu0 %vm335_vm0, %v221_v42  ;;  %2190 = vmatprep.mubr.msk.f32.mxu1 %vm335_vm0, %v285_v43  ;;  %v316_v41 = vld [vmem:[%s2663_s26 + $0x388] sm:$0xff]  ;;  %v253_v42 = vld [vmem:[%s2663_s26 + $0x190] sm:$0xff] }
  0x40   : > { %v317_v43 = vld [vmem:[%s2663_s26 + $0x390] sm:$0xff] }
  0x42   : > { %2095 = vmatmul.mubr.msk.f32.gmra.mrb[18].mxu0 %vm335_vm0, %v222_v44  ;;  %2191 = vmatmul.mubr.msk.f32.gmra.mrb[18].mxu1 %vm335_vm0, %v286_v45  ;;  %v254_v44 = vld [vmem:[%s2663_s26 + $0x198] sm:$0xff] }
  0x43   : > { %2097 = vmatprep.mubr.msk.f32.mxu0 %vm335_vm0, %v223_v46  ;;  %2193 = vmatprep.mubr.msk.f32.mxu1 %vm335_vm0, %v287_v47  ;;  %v318_v45 = vld [vmem:[%s2663_s26 + $0x398] sm:$0xff]  ;;  %v255_v46 = vld [vmem:[%s2663_s26 + $0x1a0] sm:$0xff] }
  0x44   : > { %v319_v47 = vld [vmem:[%s2663_s26 + $0x3a0] sm:$0xff] }
  0x46   : > { %2098 = vmatmul.mubr.msk.f32.gmra.mrb[20].mxu0 %vm335_vm0, %v224_v48  ;;  %2194 = vmatmul.mubr.msk.f32.gmra.mrb[20].mxu1 %vm335_vm0, %v288_v49  ;;  %v256_v48 = vld [vmem:[%s2663_s26 + $0x1a8] sm:$0xff] }
  0x47   : > { %2100 = vmatprep.mubr.msk.f32.mxu0 %vm335_vm0, %v225_v50  ;;  %2196 = vmatprep.mubr.msk.f32.mxu1 %vm335_vm0, %v289_v51  ;;  %v320_v49 = vld [vmem:[%s2663_s26 + $0x3a8] sm:$0xff]  ;;  %v257_v50 = vld [vmem:[%s2663_s26 + $0x1b0] sm:$0xff] }
  0x48   : > { %v321_v51 = vld [vmem:[%s2663_s26 + $0x3b0] sm:$0xff] }
  0x4a   : > { %2101 = vmatmul.mubr.msk.f32.gmra.mrb[22].mxu0 %vm335_vm0, %v226_v52  ;;  %2197 = vmatmul.mubr.msk.f32.gmra.mrb[22].mxu1 %vm335_vm0, %v290_v53  ;;  %v258_v52 = vld [vmem:[%s2663_s26 + $0x1b8] sm:$0xff] }
  0x4b   : > { %2103 = vmatprep.mubr.msk.f32.mxu0 %vm335_vm0, %v227_v54  ;;  %2199 = vmatprep.mubr.msk.f32.mxu1 %vm335_vm0, %v291_v55  ;;  %v322_v53 = vld [vmem:[%s2663_s26 + $0x3b8] sm:$0xff]  ;;  %v259_v54 = vld [vmem:[%s2663_s26 + $0x1c0] sm:$0xff] }
  0x4c   : > { %v323_v55 = vld [vmem:[%s2663_s26 + $0x3c0] sm:$0xff] }
  0x4e   : > { %2104 = vmatmul.mubr.msk.f32.gmra.mrb[24].mxu0 %vm335_vm0, %v228_v56  ;;  %2200 = vmatmul.mubr.msk.f32.gmra.mrb[24].mxu1 %vm335_vm0, %v292_v57  ;;  %v260_v56 = vld [vmem:[%s2663_s26 + $0x1c8] sm:$0xff] }
  0x4f   : > { %2106 = vmatprep.mubr.msk.f32.mxu0 %vm335_vm0, %v229_v58  ;;  %2202 = vmatprep.mubr.msk.f32.mxu1 %vm335_vm0, %v293_v59  ;;  %v324_v57 = vld [vmem:[%s2663_s26 + $0x3c8] sm:$0xff]  ;;  %v261_v58 = vld [vmem:[%s2663_s26 + $0x1d0] sm:$0xff] }
  0x50   : > { %v325_v59 = vld [vmem:[%s2663_s26 + $0x3d0] sm:$0xff] }
  0x52   : > { %2107 = vmatmul.mubr.msk.f32.gmra.mrb[26].mxu0 %vm335_vm0, %v230_v60  ;;  %2203 = vmatmul.mubr.msk.f32.gmra.mrb[26].mxu1 %vm335_vm0, %v294_v61  ;;  %v262_v60 = vld [vmem:[%s2663_s26 + $0x1d8] sm:$0xff] }
  0x53   : > { %2109 = vmatprep.mubr.msk.f32.mxu0 %vm335_vm0, %v231_v62  ;;  %2205 = vmatprep.mubr.msk.f32.mxu1 %vm335_vm0, %v295_v63  ;;  %v326_v61 = vld [vmem:[%s2663_s26 + $0x3d8] sm:$0xff]  ;;  %v263_v62 = vld [vmem:[%s2663_s26 + $0x1e0] sm:$0xff] }
  0x54   : > { %v327_v63 = vld [vmem:[%s2663_s26 + $0x3e0] sm:$0xff] }
  0x56   : > { %2110 = vmatmul.mubr.msk.f32.gmra.mrb[28].mxu0 %vm335_vm0, %v232_v0  ;;  %2206 = vmatmul.mubr.msk.f32.gmra.mrb[28].mxu1 %vm335_vm0, %v296_v1  ;;  %v264_v0 = vld [vmem:[%s2663_s26 + $0x1e8] sm:$0xff] }
  0x57   : > { %2112 = vmatprep.mubr.msk.f32.mxu0 %vm335_vm0, %v233_v2  ;;  %2208 = vmatprep.mubr.msk.f32.mxu1 %vm335_vm0, %v297_v3  ;;  %v328_v1 = vld [vmem:[%s2663_s26 + $0x3e8] sm:$0xff]  ;;  %v265_v2 = vld [vmem:[%s2663_s26 + $0x1f0] sm:$0xff] }
  0x58   : > { %v329_v3 = vld [vmem:[%s2663_s26 + $0x3f0] sm:$0xff] }
  0x5a   : > { %2113 = vmatmul.mubr.msk.f32.gmra.mrb[30].mxu0 %vm335_vm0, %v234_v4  ;;  %2209 = vmatmul.mubr.msk.f32.gmra.mrb[30].mxu1 %vm335_vm0, %v298_v5  ;;  %v266_v4 = vld [vmem:[%s2663_s26 + $0x1f8] sm:$0xff] }
  0x5b   : > { %2115 = vmatprep.mubr.msk.f32.mxu0 %vm335_vm0, %v235_v6  ;;  %2211 = vmatprep.mubr.msk.f32.mxu1 %vm335_vm0, %v299_v7  ;;  %v330_v5 = vld [vmem:[%s2663_s26 + $0x3f8] sm:$0xff] }
  0x5e   : > { %2116 = vmatmul.mubr.msk.f32.gmra.mrb[32].mxu0 %vm335_vm0, %v236_v8  ;;  %2212 = vmatmul.mubr.msk.f32.gmra.mrb[32].mxu1 %vm335_vm0, %v300_v9 }
  0x5f   : > { %2118 = vmatprep.mubr.msk.f32.mxu0 %vm335_vm0, %v237_v10  ;;  %2214 = vmatprep.mubr.msk.f32.mxu1 %vm335_vm0, %v301_v11 }
  0x62   : > { %2119 = vmatmul.mubr.msk.f32.gmra.mrb[34].mxu0 %vm335_vm0, %v238_v12  ;;  %2215 = vmatmul.mubr.msk.f32.gmra.mrb[34].mxu1 %vm335_vm0, %v302_v13 }
  0x63   : > { %2121 = vmatprep.mubr.msk.f32.mxu0 %vm335_vm0, %v239_v14  ;;  %2217 = vmatprep.mubr.msk.f32.mxu1 %vm335_vm0, %v303_v15 }
  0x66   : > { %2122 = vmatmul.mubr.msk.f32.gmra.mrb[36].mxu0 %vm335_vm0, %v240_v16  ;;  %2218 = vmatmul.mubr.msk.f32.gmra.mrb[36].mxu1 %vm335_vm0, %v304_v17 }
  0x67   : > { %2124 = vmatprep.mubr.msk.f32.mxu0 %vm335_vm0, %v241_v18  ;;  %2220 = vmatprep.mubr.msk.f32.mxu1 %vm335_vm0, %v305_v19 }
  0x6a   : > { %2125 = vmatmul.mubr.msk.f32.gmra.mrb[38].mxu0 %vm335_vm0, %v242_v20  ;;  %2221 = vmatmul.mubr.msk.f32.gmra.mrb[38].mxu1 %vm335_vm0, %v306_v21 }
  0x6b   : > { %2127 = vmatprep.mubr.msk.f32.mxu0 %vm335_vm0, %v243_v22  ;;  %2223 = vmatprep.mubr.msk.f32.mxu1 %vm335_vm0, %v307_v23 }
  0x6e   : > { %2128 = vmatmul.mubr.msk.f32.gmra.mrb[40].mxu0 %vm335_vm0, %v244_v24  ;;  %2224 = vmatmul.mubr.msk.f32.gmra.mrb[40].mxu1 %vm335_vm0, %v308_v25 }
  0x6f   : > { %2130 = vmatprep.mubr.msk.f32.mxu0 %vm335_vm0, %v245_v26  ;;  %2226 = vmatprep.mubr.msk.f32.mxu1 %vm335_vm0, %v309_v27 }
  0x72   : > { %2131 = vmatmul.mubr.msk.f32.gmra.mrb[42].mxu0 %vm335_vm0, %v246_v28  ;;  %2227 = vmatmul.mubr.msk.f32.gmra.mrb[42].mxu1 %vm335_vm0, %v310_v29 }
  0x73   : > { %2133 = vmatprep.mubr.msk.f32.mxu0 %vm335_vm0, %v247_v30  ;;  %2229 = vmatprep.mubr.msk.f32.mxu1 %vm335_vm0, %v311_v31 }
  0x76   : > { %2134 = vmatmul.mubr.msk.f32.gmra.mrb[44].mxu0 %vm335_vm0, %v248_v32  ;;  %2230 = vmatmul.mubr.msk.f32.gmra.mrb[44].mxu1 %vm335_vm0, %v312_v33 }
  0x77   : > { %2136 = vmatprep.mubr.msk.f32.mxu0 %vm335_vm0, %v249_v34  ;;  %2232 = vmatprep.mubr.msk.f32.mxu1 %vm335_vm0, %v313_v35 }
  0x7a   : > { %2137 = vmatmul.mubr.msk.f32.gmra.mrb[46].mxu0 %vm335_vm0, %v250_v36  ;;  %2233 = vmatmul.mubr.msk.f32.gmra.mrb[46].mxu1 %vm335_vm0, %v314_v37 }
  0x7b   : > { %2139 = vmatprep.mubr.msk.f32.mxu0 %vm335_vm0, %v251_v38  ;;  %2235 = vmatprep.mubr.msk.f32.mxu1 %vm335_vm0, %v315_v39 }
  0x7e   : > { %2140 = vmatmul.mubr.msk.f32.gmra.mrb[48].mxu0 %vm335_vm0, %v252_v40  ;;  %2236 = vmatmul.mubr.msk.f32.gmra.mrb[48].mxu1 %vm335_vm0, %v316_v41 }
  0x7f   : > { %2142 = vmatprep.mubr.msk.f32.mxu0 %vm335_vm0, %v253_v42  ;;  %2238 = vmatprep.mubr.msk.f32.mxu1 %vm335_vm0, %v317_v43 }
  0x82   : > { %2143 = vmatmul.mubr.msk.f32.gmra.mrb[50].mxu0 %vm335_vm0, %v254_v44  ;;  %2239 = vmatmul.mubr.msk.f32.gmra.mrb[50].mxu1 %vm335_vm0, %v318_v45 }
  0x83   : > { %2145 = vmatprep.mubr.msk.f32.mxu0 %vm335_vm0, %v255_v46  ;;  %2241 = vmatprep.mubr.msk.f32.mxu1 %vm335_vm0, %v319_v47 }
  0x86   : > { %2146 = vmatmul.mubr.msk.f32.gmra.mrb[52].mxu0 %vm335_vm0, %v256_v48  ;;  %2242 = vmatmul.mubr.msk.f32.gmra.mrb[52].mxu1 %vm335_vm0, %v320_v49 }
  0x87   : > { %2148 = vmatprep.mubr.msk.f32.mxu0 %vm335_vm0, %v257_v50  ;;  %2244 = vmatprep.mubr.msk.f32.mxu1 %vm335_vm0, %v321_v51 }
  0x8a   : > { %2149 = vmatmul.mubr.msk.f32.gmra.mrb[54].mxu0 %vm335_vm0, %v258_v52  ;;  %2245 = vmatmul.mubr.msk.f32.gmra.mrb[54].mxu1 %vm335_vm0, %v322_v53 }
  0x8b   : > { %2151 = vmatprep.mubr.msk.f32.mxu0 %vm335_vm0, %v259_v54  ;;  %2247 = vmatprep.mubr.msk.f32.mxu1 %vm335_vm0, %v323_v55 }
  0x8e   : > { %2152 = vmatmul.mubr.msk.f32.gmra.mrb[56].mxu0 %vm335_vm0, %v260_v56  ;;  %2248 = vmatmul.mubr.msk.f32.gmra.mrb[56].mxu1 %vm335_vm0, %v324_v57 }
  0x8f   : > { %2154 = vmatprep.mubr.msk.f32.mxu0 %vm335_vm0, %v261_v58  ;;  %2250 = vmatprep.mubr.msk.f32.mxu1 %vm335_vm0, %v325_v59 }
  0x92   : > { %2155 = vmatmul.mubr.msk.f32.gmra.mrb[58].mxu0 %vm335_vm0, %v262_v60  ;;  %2251 = vmatmul.mubr.msk.f32.gmra.mrb[58].mxu1 %vm335_vm0, %v326_v61 }
  0x93   : > { %2157 = vmatprep.mubr.msk.f32.mxu0 %vm335_vm0, %v263_v62  ;;  %2253 = vmatprep.mubr.msk.f32.mxu1 %vm335_vm0, %v327_v63 }
  0x96   : > { %2158 = vmatmul.mubr.msk.f32.gmra.mrb[60].mxu0 %vm335_vm0, %v264_v0  ;;  %2254 = vmatmul.mubr.msk.f32.gmra.mrb[60].mxu1 %vm335_vm0, %v328_v1 }
  0x97   : > { %2160 = vmatprep.mubr.msk.f32.mxu0 %vm335_vm0, %v265_v2  ;;  %2256 = vmatprep.mubr.msk.f32.mxu1 %vm335_vm0, %v329_v3 }
  0x9a   : > { %2161 = vmatmul.mubr.msk.f32.gmra.mrb[62].mxu0 %vm335_vm0, %v266_v4  ;;  %2257 = vmatmul.mubr.msk.f32.gmra.mrb[62].mxu1 %vm335_vm0, %v330_v5 }
  0xf1   : > { %v2069_v6 = vpop.f32.mrb[0].mxu0  ;;  %v2165_v7 = vpop.f32.mrb[0].mxu1 }
  0xf2   : > { %2311 = vtanh.f32 %v2069_v6  ;;  %v786_v8 = vpop.f32.mrb[1].mxu0  ;;  %v1106_v9 = vpop.f32.mrb[1].mxu1 }
  0xf3   : > { %2313 = vtanh.f32 %v2165_v7 }
  0xf4   : > { %2315 = vtanh.f32 %v786_v8 }
  0xf5   : > { %2317 = vtanh.f32 %v1106_v9  ;;  %v2072_v10 = vpop.f32.mrb[2].mxu0  ;;  %v2168_v11 = vpop.f32.mrb[2].mxu1 }
  0xf6   : > { %2319 = vtanh.f32 %v2072_v10  ;;  %v796_v12 = vpop.f32.mrb[3].mxu0  ;;  %v1116_v13 = vpop.f32.mrb[3].mxu1 }
  0xf7   : > { %2321 = vtanh.f32 %v2168_v11 }
  0xf8   : > { %2323 = vtanh.f32 %v796_v12 }
  0xf9   : > { %2325 = vtanh.f32 %v1116_v13  ;;  %v2075_v14 = vpop.f32.mrb[4].mxu0  ;;  %v2171_v15 = vpop.f32.mrb[4].mxu1 }
  0xfa   : > { %2327 = vtanh.f32 %v2075_v14  ;;  %v806_v16 = vpop.f32.mrb[5].mxu0  ;;  %v1126_v17 = vpop.f32.mrb[5].mxu1 }
  0xfb   : > { %2329 = vtanh.f32 %v2171_v15 }
  0xfc   : > { %v2312_v18 = vpop.eup %2311  ;;  %2331 = vtanh.f32 %v806_v16 }
  0xfd   : > { %v2314_v19 = vpop.eup %2313  ;;  %1554 = vst [vmem:[%s2926_s29 + $0x8] sm:$0xff] %v2312_v18  ;;  %2333 = vtanh.f32 %v1126_v17  ;;  %v2078_v20 = vpop.f32.mrb[6].mxu0 }
  0xfe   : > { %v2174_v21 = vpop.f32.mrb[6].mxu1  ;;  %v2316_v22 = vpop.eup %2315  ;;  %1618 = vst [vmem:[%s2926_s29 + $0x208] sm:$0xff] %v2314_v19  ;;  %2335 = vtanh.f32 %v2078_v20 }
  0xff   : > { %v816_v23 = vpop.f32.mrb[7].mxu0  ;;  %v1136_v24 = vpop.f32.mrb[7].mxu1  ;;  %1553 = vst [vmem:[%s2926_s29] sm:$0xff] %v2316_v22  ;;  %2337 = vtanh.f32 %v2174_v21 }
 0x100   : > { %v2318_v25 = vpop.eup %2317  ;;  %2339 = vtanh.f32 %v816_v23 }
 0x101   : > { %v2320_v26 = vpop.eup %2319  ;;  %1617 = vst [vmem:[%s2926_s29 + $0x200] sm:$0xff] %v2318_v25  ;;  %2341 = vtanh.f32 %v1136_v24  ;;  %v2081_v28 = vpop.f32.mrb[8].mxu0 }
 0x102   : > { %v2322_v27 = vpop.eup %2321  ;;  %1556 = vst [vmem:[%s2926_s29 + $0x18] sm:$0xff] %v2320_v26  ;;  %v2177_v29 = vpop.f32.mrb[8].mxu1  ;;  %2343 = vtanh.f32 %v2081_v28 }
 0x103   : > { %v2324_v30 = vpop.eup %2323  ;;  %1620 = vst [vmem:[%s2926_s29 + $0x218] sm:$0xff] %v2322_v27  ;;  %v826_v31 = vpop.f32.mrb[9].mxu0  ;;  %2345 = vtanh.f32 %v2177_v29 }
 0x104   : > { %v1146_v32 = vpop.f32.mrb[9].mxu1  ;;  %v2326_v33 = vpop.eup %2325  ;;  %1555 = vst [vmem:[%s2926_s29 + $0x10] sm:$0xff] %v2324_v30  ;;  %2347 = vtanh.f32 %v826_v31 }
 0x105   : > { %v2328_v34 = vpop.eup %2327  ;;  %1619 = vst [vmem:[%s2926_s29 + $0x210] sm:$0xff] %v2326_v33  ;;  %2349 = vtanh.f32 %v1146_v32  ;;  %v2084_v36 = vpop.f32.mrb[10].mxu0 }
 0x106   : > { %v2330_v35 = vpop.eup %2329  ;;  %1558 = vst [vmem:[%s2926_s29 + $0x28] sm:$0xff] %v2328_v34  ;;  %v2180_v37 = vpop.f32.mrb[10].mxu1  ;;  %2351 = vtanh.f32 %v2084_v36 }
 0x107   : > { %v2332_v38 = vpop.eup %2331  ;;  %1622 = vst [vmem:[%s2926_s29 + $0x228] sm:$0xff] %v2330_v35  ;;  %v836_v39 = vpop.f32.mrb[11].mxu0  ;;  %2353 = vtanh.f32 %v2180_v37 }
 0x108   : > { %v1156_v40 = vpop.f32.mrb[11].mxu1  ;;  %v2334_v41 = vpop.eup %2333  ;;  %1557 = vst [vmem:[%s2926_s29 + $0x20] sm:$0xff] %v2332_v38  ;;  %2355 = vtanh.f32 %v836_v39 }
 0x109   : > { %v2336_v42 = vpop.eup %2335  ;;  %1621 = vst [vmem:[%s2926_s29 + $0x220] sm:$0xff] %v2334_v41  ;;  %2357 = vtanh.f32 %v1156_v40  ;;  %v2087_v44 = vpop.f32.mrb[12].mxu0 }
 0x10a   : > { %v2338_v43 = vpop.eup %2337  ;;  %1560 = vst [vmem:[%s2926_s29 + $0x38] sm:$0xff] %v2336_v42  ;;  %v2183_v45 = vpop.f32.mrb[12].mxu1  ;;  %2359 = vtanh.f32 %v2087_v44 }
 0x10b   : > { %v2340_v46 = vpop.eup %2339  ;;  %1624 = vst [vmem:[%s2926_s29 + $0x238] sm:$0xff] %v2338_v43  ;;  %v846_v47 = vpop.f32.mrb[13].mxu0  ;;  %2361 = vtanh.f32 %v2183_v45 }
 0x10c   : > { %v1166_v48 = vpop.f32.mrb[13].mxu1  ;;  %v2342_v49 = vpop.eup %2341  ;;  %1559 = vst [vmem:[%s2926_s29 + $0x30] sm:$0xff] %v2340_v46  ;;  %2363 = vtanh.f32 %v846_v47 }
 0x10d   : > { %v2344_v50 = vpop.eup %2343  ;;  %1623 = vst [vmem:[%s2926_s29 + $0x230] sm:$0xff] %v2342_v49  ;;  %2365 = vtanh.f32 %v1166_v48  ;;  %v2090_v52 = vpop.f32.mrb[14].mxu0 }
 0x10e   : > { %v2346_v51 = vpop.eup %2345  ;;  %1562 = vst [vmem:[%s2926_s29 + $0x48] sm:$0xff] %v2344_v50  ;;  %v2186_v53 = vpop.f32.mrb[14].mxu1  ;;  %2367 = vtanh.f32 %v2090_v52 }
 0x10f   : > { %v2348_v54 = vpop.eup %2347  ;;  %1626 = vst [vmem:[%s2926_s29 + $0x248] sm:$0xff] %v2346_v51  ;;  %v856_v55 = vpop.f32.mrb[15].mxu0  ;;  %2369 = vtanh.f32 %v2186_v53 }
 0x110   : > { %v1176_v56 = vpop.f32.mrb[15].mxu1  ;;  %v2350_v57 = vpop.eup %2349  ;;  %1561 = vst [vmem:[%s2926_s29 + $0x40] sm:$0xff] %v2348_v54  ;;  %2371 = vtanh.f32 %v856_v55 }
 0x111   : > { %v2352_v58 = vpop.eup %2351  ;;  %1625 = vst [vmem:[%s2926_s29 + $0x240] sm:$0xff] %v2350_v57  ;;  %2373 = vtanh.f32 %v1176_v56  ;;  %v2093_v60 = vpop.f32.mrb[16].mxu0 }
 0x112   : > { %v2354_v59 = vpop.eup %2353  ;;  %1564 = vst [vmem:[%s2926_s29 + $0x58] sm:$0xff] %v2352_v58  ;;  %v2189_v61 = vpop.f32.mrb[16].mxu1  ;;  %2375 = vtanh.f32 %v2093_v60 }
 0x113   : > { %v2356_v62 = vpop.eup %2355  ;;  %1628 = vst [vmem:[%s2926_s29 + $0x258] sm:$0xff] %v2354_v59  ;;  %v866_v63 = vpop.f32.mrb[17].mxu0  ;;  %2377 = vtanh.f32 %v2189_v61 }
 0x114   : > { %v1186_v0 = vpop.f32.mrb[17].mxu1  ;;  %v2358_v1 = vpop.eup %2357  ;;  %1563 = vst [vmem:[%s2926_s29 + $0x50] sm:$0xff] %v2356_v62  ;;  %2379 = vtanh.f32 %v866_v63 }
 0x115   : > { %v2360_v2 = vpop.eup %2359  ;;  %1627 = vst [vmem:[%s2926_s29 + $0x250] sm:$0xff] %v2358_v1  ;;  %2381 = vtanh.f32 %v1186_v0  ;;  %v2096_v4 = vpop.f32.mrb[18].mxu0 }
 0x116   : > { %v2362_v3 = vpop.eup %2361  ;;  %1566 = vst [vmem:[%s2926_s29 + $0x68] sm:$0xff] %v2360_v2  ;;  %v2192_v5 = vpop.f32.mrb[18].mxu1  ;;  %2383 = vtanh.f32 %v2096_v4 }
 0x117   : > { %v2364_v6 = vpop.eup %2363  ;;  %1630 = vst [vmem:[%s2926_s29 + $0x268] sm:$0xff] %v2362_v3  ;;  %v876_v7 = vpop.f32.mrb[19].mxu0  ;;  %2385 = vtanh.f32 %v2192_v5 }
 0x118   : > { %v1196_v8 = vpop.f32.mrb[19].mxu1  ;;  %v2366_v9 = vpop.eup %2365  ;;  %1565 = vst [vmem:[%s2926_s29 + $0x60] sm:$0xff] %v2364_v6  ;;  %2387 = vtanh.f32 %v876_v7 }
 0x119   : > { %v2368_v10 = vpop.eup %2367  ;;  %1629 = vst [vmem:[%s2926_s29 + $0x260] sm:$0xff] %v2366_v9  ;;  %2389 = vtanh.f32 %v1196_v8  ;;  %v2099_v12 = vpop.f32.mrb[20].mxu0 }
 0x11a   : > { %v2370_v11 = vpop.eup %2369  ;;  %1568 = vst [vmem:[%s2926_s29 + $0x78] sm:$0xff] %v2368_v10  ;;  %v2195_v13 = vpop.f32.mrb[20].mxu1  ;;  %2391 = vtanh.f32 %v2099_v12 }
 0x11b   : > { %v2372_v14 = vpop.eup %2371  ;;  %1632 = vst [vmem:[%s2926_s29 + $0x278] sm:$0xff] %v2370_v11  ;;  %v886_v15 = vpop.f32.mrb[21].mxu0  ;;  %2393 = vtanh.f32 %v2195_v13 }
 0x11c   : > { %v1206_v16 = vpop.f32.mrb[21].mxu1  ;;  %v2374_v17 = vpop.eup %2373  ;;  %1567 = vst [vmem:[%s2926_s29 + $0x70] sm:$0xff] %v2372_v14  ;;  %2395 = vtanh.f32 %v886_v15 }
 0x11d   : > { %v2376_v18 = vpop.eup %2375  ;;  %1631 = vst [vmem:[%s2926_s29 + $0x270] sm:$0xff] %v2374_v17  ;;  %2397 = vtanh.f32 %v1206_v16  ;;  %v2102_v20 = vpop.f32.mrb[22].mxu0 }
 0x11e   : > { %v2378_v19 = vpop.eup %2377  ;;  %1570 = vst [vmem:[%s2926_s29 + $0x88] sm:$0xff] %v2376_v18  ;;  %v2198_v21 = vpop.f32.mrb[22].mxu1  ;;  %2399 = vtanh.f32 %v2102_v20 }
 0x11f   : > { %v2380_v22 = vpop.eup %2379  ;;  %1634 = vst [vmem:[%s2926_s29 + $0x288] sm:$0xff] %v2378_v19  ;;  %v896_v23 = vpop.f32.mrb[23].mxu0  ;;  %2401 = vtanh.f32 %v2198_v21 }
 0x120   : > { %v1216_v24 = vpop.f32.mrb[23].mxu1  ;;  %v2382_v25 = vpop.eup %2381  ;;  %1569 = vst [vmem:[%s2926_s29 + $0x80] sm:$0xff] %v2380_v22  ;;  %2403 = vtanh.f32 %v896_v23 }
 0x121   : > { %v2384_v26 = vpop.eup %2383  ;;  %1633 = vst [vmem:[%s2926_s29 + $0x280] sm:$0xff] %v2382_v25  ;;  %2405 = vtanh.f32 %v1216_v24  ;;  %v2105_v28 = vpop.f32.mrb[24].mxu0 }
 0x122   : > { %v2386_v27 = vpop.eup %2385  ;;  %1572 = vst [vmem:[%s2926_s29 + $0x98] sm:$0xff] %v2384_v26  ;;  %v2201_v29 = vpop.f32.mrb[24].mxu1  ;;  %2407 = vtanh.f32 %v2105_v28 }
 0x123   : > { %v2388_v30 = vpop.eup %2387  ;;  %1636 = vst [vmem:[%s2926_s29 + $0x298] sm:$0xff] %v2386_v27  ;;  %v906_v31 = vpop.f32.mrb[25].mxu0  ;;  %2409 = vtanh.f32 %v2201_v29 }
 0x124   : > { %v1226_v32 = vpop.f32.mrb[25].mxu1  ;;  %v2390_v33 = vpop.eup %2389  ;;  %1571 = vst [vmem:[%s2926_s29 + $0x90] sm:$0xff] %v2388_v30  ;;  %2411 = vtanh.f32 %v906_v31 }
 0x125   : > { %v2392_v34 = vpop.eup %2391  ;;  %1635 = vst [vmem:[%s2926_s29 + $0x290] sm:$0xff] %v2390_v33  ;;  %2413 = vtanh.f32 %v1226_v32  ;;  %v2108_v36 = vpop.f32.mrb[26].mxu0 }
 0x126   : > { %v2394_v35 = vpop.eup %2393  ;;  %1574 = vst [vmem:[%s2926_s29 + $0xa8] sm:$0xff] %v2392_v34  ;;  %v2204_v37 = vpop.f32.mrb[26].mxu1  ;;  %2415 = vtanh.f32 %v2108_v36 }
 0x127   : > { %v2396_v38 = vpop.eup %2395  ;;  %1638 = vst [vmem:[%s2926_s29 + $0x2a8] sm:$0xff] %v2394_v35  ;;  %v916_v39 = vpop.f32.mrb[27].mxu0  ;;  %2417 = vtanh.f32 %v2204_v37 }
 0x128   : > { %v1236_v40 = vpop.f32.mrb[27].mxu1  ;;  %v2398_v41 = vpop.eup %2397  ;;  %1573 = vst [vmem:[%s2926_s29 + $0xa0] sm:$0xff] %v2396_v38  ;;  %2419 = vtanh.f32 %v916_v39 }
 0x129   : > { %v2400_v42 = vpop.eup %2399  ;;  %1637 = vst [vmem:[%s2926_s29 + $0x2a0] sm:$0xff] %v2398_v41  ;;  %2421 = vtanh.f32 %v1236_v40  ;;  %v2111_v44 = vpop.f32.mrb[28].mxu0 }
 0x12a   : > { %v2402_v43 = vpop.eup %2401  ;;  %1576 = vst [vmem:[%s2926_s29 + $0xb8] sm:$0xff] %v2400_v42  ;;  %v2207_v45 = vpop.f32.mrb[28].mxu1  ;;  %2423 = vtanh.f32 %v2111_v44 }
 0x12b   : > { %v2404_v46 = vpop.eup %2403  ;;  %1640 = vst [vmem:[%s2926_s29 + $0x2b8] sm:$0xff] %v2402_v43  ;;  %v926_v47 = vpop.f32.mrb[29].mxu0  ;;  %2425 = vtanh.f32 %v2207_v45 }
 0x12c   : > { %v1246_v48 = vpop.f32.mrb[29].mxu1  ;;  %v2406_v49 = vpop.eup %2405  ;;  %1575 = vst [vmem:[%s2926_s29 + $0xb0] sm:$0xff] %v2404_v46  ;;  %2427 = vtanh.f32 %v926_v47 }
 0x12d   : > { %v2408_v50 = vpop.eup %2407  ;;  %1639 = vst [vmem:[%s2926_s29 + $0x2b0] sm:$0xff] %v2406_v49  ;;  %2429 = vtanh.f32 %v1246_v48  ;;  %v2114_v52 = vpop.f32.mrb[30].mxu0 }
 0x12e   : > { %v2410_v51 = vpop.eup %2409  ;;  %1578 = vst [vmem:[%s2926_s29 + $0xc8] sm:$0xff] %v2408_v50  ;;  %v2210_v53 = vpop.f32.mrb[30].mxu1  ;;  %2431 = vtanh.f32 %v2114_v52 }
 0x12f   : > { %v2412_v54 = vpop.eup %2411  ;;  %1642 = vst [vmem:[%s2926_s29 + $0x2c8] sm:$0xff] %v2410_v51  ;;  %v936_v55 = vpop.f32.mrb[31].mxu0  ;;  %2433 = vtanh.f32 %v2210_v53 }
 0x130   : > { %v1256_v56 = vpop.f32.mrb[31].mxu1  ;;  %v2414_v57 = vpop.eup %2413  ;;  %1577 = vst [vmem:[%s2926_s29 + $0xc0] sm:$0xff] %v2412_v54  ;;  %2435 = vtanh.f32 %v936_v55 }
 0x131   : > { %v2416_v58 = vpop.eup %2415  ;;  %1641 = vst [vmem:[%s2926_s29 + $0x2c0] sm:$0xff] %v2414_v57  ;;  %2437 = vtanh.f32 %v1256_v56  ;;  %v2117_v60 = vpop.f32.mrb[32].mxu0 }
 0x132   : > { %v2418_v59 = vpop.eup %2417  ;;  %1580 = vst [vmem:[%s2926_s29 + $0xd8] sm:$0xff] %v2416_v58  ;;  %v2213_v61 = vpop.f32.mrb[32].mxu1  ;;  %2439 = vtanh.f32 %v2117_v60 }
 0x133   : > { %v2420_v62 = vpop.eup %2419  ;;  %1644 = vst [vmem:[%s2926_s29 + $0x2d8] sm:$0xff] %v2418_v59  ;;  %v946_v63 = vpop.f32.mrb[33].mxu0  ;;  %2441 = vtanh.f32 %v2213_v61 }
 0x134   : > { %v1266_v0 = vpop.f32.mrb[33].mxu1  ;;  %v2422_v1 = vpop.eup %2421  ;;  %1579 = vst [vmem:[%s2926_s29 + $0xd0] sm:$0xff] %v2420_v62  ;;  %2443 = vtanh.f32 %v946_v63 }
 0x135   : > { %v2424_v2 = vpop.eup %2423  ;;  %1643 = vst [vmem:[%s2926_s29 + $0x2d0] sm:$0xff] %v2422_v1  ;;  %2445 = vtanh.f32 %v1266_v0  ;;  %v2120_v4 = vpop.f32.mrb[34].mxu0 }
 0x136   : > { %v2426_v3 = vpop.eup %2425  ;;  %1582 = vst [vmem:[%s2926_s29 + $0xe8] sm:$0xff] %v2424_v2  ;;  %v2216_v5 = vpop.f32.mrb[34].mxu1  ;;  %2447 = vtanh.f32 %v2120_v4 }
 0x137   : > { %v2428_v6 = vpop.eup %2427  ;;  %1646 = vst [vmem:[%s2926_s29 + $0x2e8] sm:$0xff] %v2426_v3  ;;  %v956_v7 = vpop.f32.mrb[35].mxu0  ;;  %2449 = vtanh.f32 %v2216_v5 }
 0x138   : > { %v1276_v8 = vpop.f32.mrb[35].mxu1  ;;  %v2430_v9 = vpop.eup %2429  ;;  %1581 = vst [vmem:[%s2926_s29 + $0xe0] sm:$0xff] %v2428_v6  ;;  %2451 = vtanh.f32 %v956_v7 }
 0x139   : > { %v2432_v10 = vpop.eup %2431  ;;  %1645 = vst [vmem:[%s2926_s29 + $0x2e0] sm:$0xff] %v2430_v9  ;;  %2453 = vtanh.f32 %v1276_v8  ;;  %v2123_v12 = vpop.f32.mrb[36].mxu0 }
 0x13a   : > { %v2434_v11 = vpop.eup %2433  ;;  %1584 = vst [vmem:[%s2926_s29 + $0xf8] sm:$0xff] %v2432_v10  ;;  %v2219_v13 = vpop.f32.mrb[36].mxu1  ;;  %2455 = vtanh.f32 %v2123_v12 }
 0x13b   : > { %v2436_v14 = vpop.eup %2435  ;;  %1648 = vst [vmem:[%s2926_s29 + $0x2f8] sm:$0xff] %v2434_v11  ;;  %v966_v15 = vpop.f32.mrb[37].mxu0  ;;  %2457 = vtanh.f32 %v2219_v13 }
 0x13c   : > { %v1286_v16 = vpop.f32.mrb[37].mxu1  ;;  %v2438_v17 = vpop.eup %2437  ;;  %1583 = vst [vmem:[%s2926_s29 + $0xf0] sm:$0xff] %v2436_v14  ;;  %2459 = vtanh.f32 %v966_v15 }
 0x13d   : > { %v2440_v18 = vpop.eup %2439  ;;  %1647 = vst [vmem:[%s2926_s29 + $0x2f0] sm:$0xff] %v2438_v17  ;;  %2461 = vtanh.f32 %v1286_v16  ;;  %v2126_v20 = vpop.f32.mrb[38].mxu0 }
 0x13e   : > { %v2442_v19 = vpop.eup %2441  ;;  %1586 = vst [vmem:[%s2926_s29 + $0x108] sm:$0xff] %v2440_v18  ;;  %v2222_v21 = vpop.f32.mrb[38].mxu1  ;;  %2463 = vtanh.f32 %v2126_v20 }
 0x13f   : > { %v2444_v22 = vpop.eup %2443  ;;  %1650 = vst [vmem:[%s2926_s29 + $0x308] sm:$0xff] %v2442_v19  ;;  %v976_v23 = vpop.f32.mrb[39].mxu0  ;;  %2465 = vtanh.f32 %v2222_v21 }
 0x140   : > { %v1296_v24 = vpop.f32.mrb[39].mxu1  ;;  %v2446_v25 = vpop.eup %2445  ;;  %1585 = vst [vmem:[%s2926_s29 + $0x100] sm:$0xff] %v2444_v22  ;;  %2467 = vtanh.f32 %v976_v23 }
 0x141   : > { %v2448_v26 = vpop.eup %2447  ;;  %1649 = vst [vmem:[%s2926_s29 + $0x300] sm:$0xff] %v2446_v25  ;;  %2469 = vtanh.f32 %v1296_v24  ;;  %v2129_v28 = vpop.f32.mrb[40].mxu0 }
 0x142   : > { %v2450_v27 = vpop.eup %2449  ;;  %1588 = vst [vmem:[%s2926_s29 + $0x118] sm:$0xff] %v2448_v26  ;;  %v2225_v29 = vpop.f32.mrb[40].mxu1  ;;  %2471 = vtanh.f32 %v2129_v28 }
 0x143   : > { %v2452_v30 = vpop.eup %2451  ;;  %1652 = vst [vmem:[%s2926_s29 + $0x318] sm:$0xff] %v2450_v27  ;;  %v986_v31 = vpop.f32.mrb[41].mxu0  ;;  %2473 = vtanh.f32 %v2225_v29 }
 0x144   : > { %v1306_v32 = vpop.f32.mrb[41].mxu1  ;;  %v2454_v33 = vpop.eup %2453  ;;  %1587 = vst [vmem:[%s2926_s29 + $0x110] sm:$0xff] %v2452_v30  ;;  %2475 = vtanh.f32 %v986_v31 }
 0x145   : > { %v2456_v34 = vpop.eup %2455  ;;  %1651 = vst [vmem:[%s2926_s29 + $0x310] sm:$0xff] %v2454_v33  ;;  %2477 = vtanh.f32 %v1306_v32  ;;  %v2132_v36 = vpop.f32.mrb[42].mxu0 }
 0x146   : > { %v2458_v35 = vpop.eup %2457  ;;  %1590 = vst [vmem:[%s2926_s29 + $0x128] sm:$0xff] %v2456_v34  ;;  %v2228_v37 = vpop.f32.mrb[42].mxu1  ;;  %2479 = vtanh.f32 %v2132_v36 }
 0x147   : > { %v2460_v38 = vpop.eup %2459  ;;  %1654 = vst [vmem:[%s2926_s29 + $0x328] sm:$0xff] %v2458_v35  ;;  %v996_v39 = vpop.f32.mrb[43].mxu0  ;;  %2481 = vtanh.f32 %v2228_v37 }
 0x148   : > { %v1316_v40 = vpop.f32.mrb[43].mxu1  ;;  %v2462_v41 = vpop.eup %2461  ;;  %1589 = vst [vmem:[%s2926_s29 + $0x120] sm:$0xff] %v2460_v38  ;;  %2483 = vtanh.f32 %v996_v39 }
 0x149   : > { %v2464_v42 = vpop.eup %2463  ;;  %1653 = vst [vmem:[%s2926_s29 + $0x320] sm:$0xff] %v2462_v41  ;;  %2485 = vtanh.f32 %v1316_v40  ;;  %v2135_v44 = vpop.f32.mrb[44].mxu0 }
 0x14a   : > { %v2466_v43 = vpop.eup %2465  ;;  %1592 = vst [vmem:[%s2926_s29 + $0x138] sm:$0xff] %v2464_v42  ;;  %v2231_v45 = vpop.f32.mrb[44].mxu1  ;;  %2487 = vtanh.f32 %v2135_v44 }
 0x14b   : > { %v2468_v46 = vpop.eup %2467  ;;  %1656 = vst [vmem:[%s2926_s29 + $0x338] sm:$0xff] %v2466_v43  ;;  %v1006_v47 = vpop.f32.mrb[45].mxu0  ;;  %2489 = vtanh.f32 %v2231_v45 }
 0x14c   : > { %v1326_v48 = vpop.f32.mrb[45].mxu1  ;;  %v2470_v49 = vpop.eup %2469  ;;  %1591 = vst [vmem:[%s2926_s29 + $0x130] sm:$0xff] %v2468_v46  ;;  %2491 = vtanh.f32 %v1006_v47 }
 0x14d   : > { %v2472_v50 = vpop.eup %2471  ;;  %1655 = vst [vmem:[%s2926_s29 + $0x330] sm:$0xff] %v2470_v49  ;;  %2493 = vtanh.f32 %v1326_v48  ;;  %v2138_v52 = vpop.f32.mrb[46].mxu0 }
 0x14e   : > { %v2474_v51 = vpop.eup %2473  ;;  %1594 = vst [vmem:[%s2926_s29 + $0x148] sm:$0xff] %v2472_v50  ;;  %v2234_v53 = vpop.f32.mrb[46].mxu1  ;;  %2495 = vtanh.f32 %v2138_v52 }
 0x14f   : > { %v2476_v54 = vpop.eup %2475  ;;  %1658 = vst [vmem:[%s2926_s29 + $0x348] sm:$0xff] %v2474_v51  ;;  %v1016_v55 = vpop.f32.mrb[47].mxu0  ;;  %2497 = vtanh.f32 %v2234_v53 }
 0x150   : > { %v1336_v56 = vpop.f32.mrb[47].mxu1  ;;  %v2478_v57 = vpop.eup %2477  ;;  %1593 = vst [vmem:[%s2926_s29 + $0x140] sm:$0xff] %v2476_v54  ;;  %2499 = vtanh.f32 %v1016_v55 }
 0x151   : > { %v2480_v58 = vpop.eup %2479  ;;  %1657 = vst [vmem:[%s2926_s29 + $0x340] sm:$0xff] %v2478_v57  ;;  %2501 = vtanh.f32 %v1336_v56  ;;  %v2141_v60 = vpop.f32.mrb[48].mxu0 }
 0x152   : > { %v2482_v59 = vpop.eup %2481  ;;  %1596 = vst [vmem:[%s2926_s29 + $0x158] sm:$0xff] %v2480_v58  ;;  %v2237_v61 = vpop.f32.mrb[48].mxu1  ;;  %2503 = vtanh.f32 %v2141_v60 }
 0x153   : > { %v2484_v62 = vpop.eup %2483  ;;  %1660 = vst [vmem:[%s2926_s29 + $0x358] sm:$0xff] %v2482_v59  ;;  %v1026_v63 = vpop.f32.mrb[49].mxu0  ;;  %2505 = vtanh.f32 %v2237_v61 }
 0x154   : > { %v1346_v0 = vpop.f32.mrb[49].mxu1  ;;  %v2486_v1 = vpop.eup %2485  ;;  %1595 = vst [vmem:[%s2926_s29 + $0x150] sm:$0xff] %v2484_v62  ;;  %2507 = vtanh.f32 %v1026_v63 }
 0x155   : > { %v2488_v2 = vpop.eup %2487  ;;  %1659 = vst [vmem:[%s2926_s29 + $0x350] sm:$0xff] %v2486_v1  ;;  %2509 = vtanh.f32 %v1346_v0  ;;  %v2144_v4 = vpop.f32.mrb[50].mxu0 }
 0x156   : > { %v2490_v3 = vpop.eup %2489  ;;  %1598 = vst [vmem:[%s2926_s29 + $0x168] sm:$0xff] %v2488_v2  ;;  %v2240_v5 = vpop.f32.mrb[50].mxu1  ;;  %2511 = vtanh.f32 %v2144_v4 }
 0x157   : > { %v2492_v6 = vpop.eup %2491  ;;  %1662 = vst [vmem:[%s2926_s29 + $0x368] sm:$0xff] %v2490_v3  ;;  %v1036_v7 = vpop.f32.mrb[51].mxu0  ;;  %2513 = vtanh.f32 %v2240_v5 }
 0x158   : > { %v1356_v8 = vpop.f32.mrb[51].mxu1  ;;  %v2494_v9 = vpop.eup %2493  ;;  %1597 = vst [vmem:[%s2926_s29 + $0x160] sm:$0xff] %v2492_v6  ;;  %2515 = vtanh.f32 %v1036_v7 }
 0x159   : > { %v2496_v10 = vpop.eup %2495  ;;  %1661 = vst [vmem:[%s2926_s29 + $0x360] sm:$0xff] %v2494_v9  ;;  %2517 = vtanh.f32 %v1356_v8  ;;  %v2147_v12 = vpop.f32.mrb[52].mxu0 }
 0x15a   : > { %v2498_v11 = vpop.eup %2497  ;;  %1600 = vst [vmem:[%s2926_s29 + $0x178] sm:$0xff] %v2496_v10  ;;  %v2243_v13 = vpop.f32.mrb[52].mxu1  ;;  %2519 = vtanh.f32 %v2147_v12 }
 0x15b   : > { %v2500_v14 = vpop.eup %2499  ;;  %1664 = vst [vmem:[%s2926_s29 + $0x378] sm:$0xff] %v2498_v11  ;;  %v1046_v15 = vpop.f32.mrb[53].mxu0  ;;  %2521 = vtanh.f32 %v2243_v13 }
 0x15c   : > { %v1366_v16 = vpop.f32.mrb[53].mxu1  ;;  %v2502_v17 = vpop.eup %2501  ;;  %1599 = vst [vmem:[%s2926_s29 + $0x170] sm:$0xff] %v2500_v14  ;;  %2523 = vtanh.f32 %v1046_v15 }
 0x15d   : > { %v2504_v18 = vpop.eup %2503  ;;  %1663 = vst [vmem:[%s2926_s29 + $0x370] sm:$0xff] %v2502_v17  ;;  %2525 = vtanh.f32 %v1366_v16  ;;  %v2150_v20 = vpop.f32.mrb[54].mxu0 }
 0x15e   : > { %v2506_v19 = vpop.eup %2505  ;;  %1602 = vst [vmem:[%s2926_s29 + $0x188] sm:$0xff] %v2504_v18  ;;  %v2246_v21 = vpop.f32.mrb[54].mxu1  ;;  %2527 = vtanh.f32 %v2150_v20 }
 0x15f   : > { %v2508_v22 = vpop.eup %2507  ;;  %1666 = vst [vmem:[%s2926_s29 + $0x388] sm:$0xff] %v2506_v19  ;;  %v1056_v23 = vpop.f32.mrb[55].mxu0  ;;  %2529 = vtanh.f32 %v2246_v21 }
 0x160   : > { %v1376_v24 = vpop.f32.mrb[55].mxu1  ;;  %v2510_v25 = vpop.eup %2509  ;;  %1601 = vst [vmem:[%s2926_s29 + $0x180] sm:$0xff] %v2508_v22  ;;  %2531 = vtanh.f32 %v1056_v23 }
 0x161   : > { %v2512_v26 = vpop.eup %2511  ;;  %1665 = vst [vmem:[%s2926_s29 + $0x380] sm:$0xff] %v2510_v25  ;;  %2533 = vtanh.f32 %v1376_v24  ;;  %v2153_v28 = vpop.f32.mrb[56].mxu0 }
 0x162   : > { %v2514_v27 = vpop.eup %2513  ;;  %1604 = vst [vmem:[%s2926_s29 + $0x198] sm:$0xff] %v2512_v26  ;;  %v2249_v29 = vpop.f32.mrb[56].mxu1  ;;  %2535 = vtanh.f32 %v2153_v28 }
 0x163   : > { %v2516_v30 = vpop.eup %2515  ;;  %1668 = vst [vmem:[%s2926_s29 + $0x398] sm:$0xff] %v2514_v27  ;;  %v1066_v31 = vpop.f32.mrb[57].mxu0  ;;  %2537 = vtanh.f32 %v2249_v29 }
 0x164   : > { %v1386_v32 = vpop.f32.mrb[57].mxu1  ;;  %v2518_v33 = vpop.eup %2517  ;;  %1603 = vst [vmem:[%s2926_s29 + $0x190] sm:$0xff] %v2516_v30  ;;  %2539 = vtanh.f32 %v1066_v31 }
 0x165   : > { %v2520_v34 = vpop.eup %2519  ;;  %1667 = vst [vmem:[%s2926_s29 + $0x390] sm:$0xff] %v2518_v33  ;;  %2541 = vtanh.f32 %v1386_v32  ;;  %v2156_v36 = vpop.f32.mrb[58].mxu0 }
 0x166   : > { %v2522_v35 = vpop.eup %2521  ;;  %1606 = vst [vmem:[%s2926_s29 + $0x1a8] sm:$0xff] %v2520_v34  ;;  %v2252_v37 = vpop.f32.mrb[58].mxu1  ;;  %2543 = vtanh.f32 %v2156_v36 }
 0x167   : > { %v2524_v38 = vpop.eup %2523  ;;  %1670 = vst [vmem:[%s2926_s29 + $0x3a8] sm:$0xff] %v2522_v35  ;;  %v1076_v39 = vpop.f32.mrb[59].mxu0  ;;  %2545 = vtanh.f32 %v2252_v37 }
 0x168   : > { %v1396_v40 = vpop.f32.mrb[59].mxu1  ;;  %v2526_v41 = vpop.eup %2525  ;;  %1605 = vst [vmem:[%s2926_s29 + $0x1a0] sm:$0xff] %v2524_v38  ;;  %2547 = vtanh.f32 %v1076_v39 }
 0x169   : > { %v2528_v42 = vpop.eup %2527  ;;  %1669 = vst [vmem:[%s2926_s29 + $0x3a0] sm:$0xff] %v2526_v41  ;;  %2549 = vtanh.f32 %v1396_v40  ;;  %v2159_v44 = vpop.f32.mrb[60].mxu0 }
 0x16a   : > { %v2530_v43 = vpop.eup %2529  ;;  %1608 = vst [vmem:[%s2926_s29 + $0x1b8] sm:$0xff] %v2528_v42  ;;  %v2255_v45 = vpop.f32.mrb[60].mxu1  ;;  %2551 = vtanh.f32 %v2159_v44 }
 0x16b   : > { %v2532_v46 = vpop.eup %2531  ;;  %1672 = vst [vmem:[%s2926_s29 + $0x3b8] sm:$0xff] %v2530_v43  ;;  %v1086_v47 = vpop.f32.mrb[61].mxu0  ;;  %2553 = vtanh.f32 %v2255_v45 }
 0x16c   : > { %v1406_v48 = vpop.f32.mrb[61].mxu1  ;;  %v2534_v49 = vpop.eup %2533  ;;  %1607 = vst [vmem:[%s2926_s29 + $0x1b0] sm:$0xff] %v2532_v46  ;;  %2555 = vtanh.f32 %v1086_v47 }
 0x16d   : > { %v2536_v50 = vpop.eup %2535  ;;  %1671 = vst [vmem:[%s2926_s29 + $0x3b0] sm:$0xff] %v2534_v49  ;;  %2557 = vtanh.f32 %v1406_v48  ;;  %v2162_v52 = vpop.f32.mrb[62].mxu0 }
 0x16e   : > { %v2538_v51 = vpop.eup %2537  ;;  %1610 = vst [vmem:[%s2926_s29 + $0x1c8] sm:$0xff] %v2536_v50  ;;  %v2258_v53 = vpop.f32.mrb[62].mxu1  ;;  %2559 = vtanh.f32 %v2162_v52 }
 0x16f   : > { %v2540_v54 = vpop.eup %2539  ;;  %1674 = vst [vmem:[%s2926_s29 + $0x3c8] sm:$0xff] %v2538_v51  ;;  %v1096_v55 = vpop.f32.mrb[63].mxu0  ;;  %2561 = vtanh.f32 %v2258_v53 }
 0x170   : > { %v1416_v56 = vpop.f32.mrb[63].mxu1  ;;  %v2542_v57 = vpop.eup %2541  ;;  %1609 = vst [vmem:[%s2926_s29 + $0x1c0] sm:$0xff] %v2540_v54  ;;  %2563 = vtanh.f32 %v1096_v55 }
 0x171   : > { %v2544_v58 = vpop.eup %2543  ;;  %1673 = vst [vmem:[%s2926_s29 + $0x3c0] sm:$0xff] %v2542_v57  ;;  %2565 = vtanh.f32 %v1416_v56 }
 0x172   : > { %v2546_v59 = vpop.eup %2545  ;;  %1612 = vst [vmem:[%s2926_s29 + $0x1d8] sm:$0xff] %v2544_v58 }
 0x173   : > { %v2548_v60 = vpop.eup %2547  ;;  %1676 = vst [vmem:[%s2926_s29 + $0x3d8] sm:$0xff] %v2546_v59 }
 0x174   : > { %v2550_v61 = vpop.eup %2549  ;;  %1611 = vst [vmem:[%s2926_s29 + $0x1d0] sm:$0xff] %v2548_v60 }
 0x175   : > { %v2552_v62 = vpop.eup %2551  ;;  %1675 = vst [vmem:[%s2926_s29 + $0x3d0] sm:$0xff] %v2550_v61 }
 0x176   : > { %v2554_v63 = vpop.eup %2553  ;;  %1614 = vst [vmem:[%s2926_s29 + $0x1e8] sm:$0xff] %v2552_v62 }
 0x177   : > { %v2556_v0 = vpop.eup %2555  ;;  %1678 = vst [vmem:[%s2926_s29 + $0x3e8] sm:$0xff] %v2554_v63 }
 0x178   : > { %v2558_v1 = vpop.eup %2557  ;;  %1613 = vst [vmem:[%s2926_s29 + $0x1e0] sm:$0xff] %v2556_v0 }
 0x179   : > { %v2560_v2 = vpop.eup %2559  ;;  %1677 = vst [vmem:[%s2926_s29 + $0x3e0] sm:$0xff] %v2558_v1 }
 0x17a   : > { %v2562_v3 = vpop.eup %2561  ;;  %1616 = vst [vmem:[%s2926_s29 + $0x1f8] sm:$0xff] %v2560_v2 }
 0x17b   : > { %v2564_v4 = vpop.eup %2563  ;;  %1680 = vst [vmem:[%s2926_s29 + $0x3f8] sm:$0xff] %v2562_v3 }
 0x17c   : > { %v2566_v5 = vpop.eup %2565  ;;  %1615 = vst [vmem:[%s2926_s29 + $0x1f0] sm:$0xff] %v2564_v4 }
 0x17d   : > { %1679 = vst [vmem:[%s2926_s29 + $0x3f0] sm:$0xff] %v2566_v5 }
 0x17e PF: > { %s12_s13 = sadd.s32 1, %s2605_s13   ;;  %s3074_s9 = smov %s2597_s11 }
 0x17f   : > { %p9_p7 = scmp.ge.s32.totalorder %s12_s13, 10   ;;  %s3075_s10 = smov %s2601_s12 }
 0x180   : > { %s3076_s11 = smov %s3079_s14  ;;  %s3077_s12 = smov %s3083_s15 }
 0x181   :  { %11 = sbr.rel (!%p9_p7) target bundleno = 3 (0x3), region = 61 }

</bundles_post_ra>
